<compile_context>
chip_gen: v7x
topology: tpu7x:2x2x1
jax: 0.10.0
libtpu: 0.0.40
codegen_flags: <defaults>
</compile_context>

<pallas_src>
import functools
import math

import jax
import jax.numpy as jnp
from jax import lax
from jax.experimental import pallas as pl
from jax.experimental.pallas import tpu as pltpu


# -----------------------------------------------------------------------------
# Config (synthetic, mirrors cfg used by H2OTR)
# -----------------------------------------------------------------------------
class CFG:
    obj2idx = {"background": 0, "book": 1, "espresso": 2, "lotion": 3, "spray": 4}
    hand_idx = [5, 6]          # class indices of left / right hand
    dataset = "H2O"            # two hands


NUM_CLASSES = 7                # 1 bg + 4 objects + 2 hands
NUM_QUERIES = 8
NUM_FRAMES = 2
IMG_C, IMG_H, IMG_W = 3, 16, 16
HIDDEN = 32
NUM_HANDS = 2
NUM_JOINTS = 21
MANO_VERTS = 64                # small synthetic MANO vertex count
OBJ_VERTS = 64
NUM_ACTIONS = 6
POSE_DIM = 48

N_LOGITS = NUM_QUERIES * NUM_CLASSES            # 56
N_KP = NUM_QUERIES * NUM_JOINTS * 3             # 504
HEAD_RAW = N_LOGITS + 2 * N_KP                  # 1064
HEAD_PAD = ((HEAD_RAW + 127) // 128) * 128      # 1152 (lane-dense output)


# -----------------------------------------------------------------------------
# Pallas kernels
# -----------------------------------------------------------------------------
def _hop_kernel(x_ref, wi_ref, bi_ref, wh_ref, bh_ref, o_ref):
    """Fused HOP stand-in: x @ W_in -> tanh -> @ W_head (+ sigmoid on keypoint cols)."""
    h = jnp.tanh(
        jnp.dot(x_ref[...], wi_ref[...], preferred_element_type=jnp.float32)
        + bi_ref[...]
    )
    y = jnp.dot(h, wh_ref[...], preferred_element_type=jnp.float32) + bh_ref[...]
    col = lax.broadcasted_iota(jnp.int32, y.shape, 1)
    # logits stay raw, keypoint / obj-keypoint columns get the sigmoid epilogue.
    o_ref[...] = jnp.where(col < N_LOGITS, y, jax.nn.sigmoid(y))


def pallas_hop_head(p, samples):
    # TODO(synk): real HOP is a detection transformer; stand-in = fused Pallas MLP head.
    T = samples.shape[0]
    x = samples.reshape(T, -1).astype(jnp.float32)
    head = pl.pallas_call(
        _hop_kernel,
        out_shape=jax.ShapeDtypeStruct((T, HEAD_PAD), jnp.float32),
    )(x, p["hop_in_w"], p["hop_in_b"], p["hop_head_w"], p["hop_head_b"])
    logits = head[:, :N_LOGITS].reshape(T, NUM_QUERIES, NUM_CLASSES)
    kp = head[:, N_LOGITS:N_LOGITS + N_KP].reshape(T, NUM_QUERIES, NUM_JOINTS * 3)
    okp = head[:, N_LOGITS + N_KP:HEAD_RAW].reshape(T, NUM_QUERIES, NUM_JOINTS * 3)
    return logits, kp, okp


def _hand_kernel(cam_ref, tmpl_ref, wa_ref, ba_ref, wv_ref, bv_ref, wj_ref, bj_ref,
                 verts_ref, joints_ref):
    """Fused AIK + MANO stand-in for one hand (grid step = one hand)."""
    x = (cam_ref[0] - tmpl_ref[0]) * 0.01                                  # (T, 63)
    pose = jnp.tanh(
        jnp.dot(x, wa_ref[0], preferred_element_type=jnp.float32) + ba_ref[0]
    ) * math.pi                                                            # (T, 48)
    verts_ref[0] = (
        jnp.dot(pose, wv_ref[0], preferred_element_type=jnp.float32) + bv_ref[0]
    ) * 100.0                                                              # (T, 192) mm
    joints_ref[0] = (
        jnp.dot(pose, wj_ref[0], preferred_element_type=jnp.float32) + bj_ref[0]
    ) * 100.0                                                              # (T, 63) mm


def pallas_hand_mano(p, cam_in, T_):
    # TODO(synk): analytic AIK IK + MANO LBS replaced by Pallas linear stand-ins.
    nh, T, D = cam_in.shape
    tmpl = T_.reshape(nh, 1, D).astype(jnp.float32)
    return pl.pallas_call(
        _hand_kernel,
        grid=(nh,),
        in_specs=[
            pl.BlockSpec((1, T, D), lambda i: (i, 0, 0)),
            pl.BlockSpec((1, 1, D), lambda i: (i, 0, 0)),
            pl.BlockSpec((1, D, POSE_DIM), lambda i: (i, 0, 0)),
            pl.BlockSpec((1, 1, POSE_DIM), lambda i: (i, 0, 0)),
            pl.BlockSpec((1, POSE_DIM, MANO_VERTS * 3), lambda i: (i, 0, 0)),
            pl.BlockSpec((1, 1, MANO_VERTS * 3), lambda i: (i, 0, 0)),
            pl.BlockSpec((1, POSE_DIM, NUM_JOINTS * 3), lambda i: (i, 0, 0)),
            pl.BlockSpec((1, 1, NUM_JOINTS * 3), lambda i: (i, 0, 0)),
        ],
        out_specs=(
            pl.BlockSpec((1, T, MANO_VERTS * 3), lambda i: (i, 0, 0)),
            pl.BlockSpec((1, T, NUM_JOINTS * 3), lambda i: (i, 0, 0)),
        ),
        out_shape=(
            jax.ShapeDtypeStruct((nh, T, MANO_VERTS * 3), jnp.float32),
            jax.ShapeDtypeStruct((nh, T, NUM_JOINTS * 3), jnp.float32),
        ),
        compiler_params=pltpu.CompilerParams(dimension_semantics=("parallel",)),
    )(cam_in.astype(jnp.float32), tmpl,
      p["aik_w"], p["aik_b"], p["mano_vw"], p["mano_vb"], p["mano_jw"], p["mano_jb"])


def _rigid_cov_kernel(a_ref, b_ref, h_ref, ca_ref, cb_ref, var_ref):
    """Centroids / 3x3 covariance / variance, points laid out as (3, n) (n on lanes)."""
    A = a_ref[0]                                    # (3, n)
    Bm = b_ref[...]                                 # (T, 3, n)
    n = A.shape[-1]
    inv_n = 1.0 / n
    cA = jnp.mean(A, axis=-1, keepdims=True)        # (3, 1)
    cB = jnp.mean(Bm, axis=-1, keepdims=True)       # (T, 3, 1)
    Ac = A - cA
    Bc = Bm - cB
    # H[b, d, e] = sum_n Ac[d, n] * Bc[b, e, n] / n  -> 3 lane reductions (no MXU).
    for d in range(3):
        h_ref[d] = jnp.sum(Ac[d:d + 1, :] * Bc, axis=-1) * inv_n   # (T, 3)
    ca_ref[...] = cA
    cb_ref[...] = cB
    var_ref[...] = jnp.sum(jnp.mean(Ac * Ac, axis=-1, keepdims=True),
                           axis=0, keepdims=True)                   # (1, 1)


def pallas_rigid_cov(A, B):
    """A: (1, n, 3) template, B: (T, n, 3) observations."""
    T = B.shape[0]
    At = jnp.transpose(A, (0, 2, 1)).astype(jnp.float32)
    Bt = jnp.transpose(B, (0, 2, 1)).astype(jnp.float32)
    h, ca, cb, var = pl.pallas_call(
        _rigid_cov_kernel,
        out_shape=(
            jax.ShapeDtypeStruct((3, T, 3), jnp.float32),
            jax.ShapeDtypeStruct((3, 1), jnp.float32),
            jax.ShapeDtypeStruct((T, 3, 1), jnp.float32),
            jax.ShapeDtypeStruct((1, 1), jnp.float32),
        ),
    )(At, Bt)
    H = jnp.transpose(h, (1, 0, 2))                 # (T, 3, 3)
    cA = jnp.transpose(ca, (1, 0))                  # (1, 3)
    cB = cb[..., 0]                                 # (T, 3)
    return H, cA, cB, var[0, 0]


def _pseudo_cmap(d2):
    """get_pseudo_cmap on a squared-distance tensor (runs inside kernels)."""
    d = jnp.sqrt(jnp.maximum(d2, 0.0)) * 100.0
    return 1.0 - 2.0 * (jax.nn.sigmoid(2.0 * d) - 0.5)


def _contact_kernel(r_ref, t_ref, vt_ref, hand_ref, objv_ref, hcmap_ref, ocmap_ref,
                    *, nh):
    """Fused: object-vertex rigid transform + NN squared distances + pseudo cmaps.

    One grid step = one frame.  Object vertices are kept coordinate-major (3, No)
    with the vertex index on the lane axis; K=3 contractions are VPU FMAs.
    """
    R = r_ref[0]                          # (3, 3)
    tv = t_ref[0]                         # (1, 3)
    vt = vt_ref[...] * 1000.0             # (3, No)  meters -> mm
    hand = hand_ref[0]                    # (nh, V, 3)  (mm)

    # obj[d, :] = sum_e R[d, e] * vt[e, :] + t[d]
    rows = []
    for d in range(3):
        row = tv[:, d:d + 1] + (R[d:d + 1, 0:1] * vt[0:1, :]
                                + R[d:d + 1, 1:2] * vt[1:2, :]
                                + R[d:d + 1, 2:3] * vt[2:3, :])      # (1, No)
        rows.append(row)
    objv_ref[0] = jnp.concatenate(rows, axis=0)                      # (3, No)

    obj_min = None
    hcmaps = []
    for h in range(nh):
        d2 = None
        for c in range(3):
            diff = hand[h, :, c:c + 1] - rows[c]                     # (V,1)-(1,No)->(V,No)
            sq = diff * diff
            d2 = sq if d2 is None else d2 + sq
        hmin = jnp.min(d2, axis=1, keepdims=True)                    # (V, 1) hand->obj
        hcmaps.append(_pseudo_cmap(hmin))
        omin = jnp.min(d2, axis=0, keepdims=True)                    # (1, No) obj->hand_h
        obj_min = omin if obj_min is None else jnp.minimum(obj_min, omin)

    hcmap_ref[0] = jnp.stack(hcmaps, axis=0)                         # (nh, V, 1)
    ocmap_ref[0] = _pseudo_cmap(obj_min)                             # (1, No)


def pallas_contact(R, t, obj_verts_tmpl, hand_verts):
    T, nh, V, _ = hand_verts.shape
    No = obj_verts_tmpl.shape[0]
    vt = jnp.transpose(obj_verts_tmpl, (1, 0)).astype(jnp.float32)   # (3, No)
    t3 = t.reshape(T, 1, 3).astype(jnp.float32)
    return pl.pallas_call(
        functools.partial(_contact_kernel, nh=nh),
        grid=(T,),
        in_specs=[
            pl.BlockSpec((1, 3, 3), lambda b: (b, 0, 0)),
            pl.BlockSpec((1, 1, 3), lambda b: (b, 0, 0)),
            pl.BlockSpec((3, No), lambda b: (0, 0)),        # template: no broadcast copy
            pl.BlockSpec((1, nh, V, 3), lambda b: (b, 0, 0, 0)),
        ],
        out_specs=(
            pl.BlockSpec((1, 3, No), lambda b: (b, 0, 0)),
            pl.BlockSpec((1, nh, V, 1), lambda b: (b, 0, 0, 0)),
            pl.BlockSpec((1, 1, No), lambda b: (b, 0, 0)),
        ),
        out_shape=(
            jax.ShapeDtypeStruct((T, 3, No), jnp.float32),       # obj verts (coord-major)
            jax.ShapeDtypeStruct((T, nh, V, 1), jnp.float32),    # hand pseudo cmap
            jax.ShapeDtypeStruct((T, 1, No), jnp.float32),       # obj pseudo cmap
        ),
        compiler_params=pltpu.CompilerParams(dimension_semantics=("parallel",)),
    )(R.astype(jnp.float32), t3, vt, hand_verts.astype(jnp.float32))


def _ia_kernel(x_ref, w1_ref, b1_ref, w2_ref, b2_ref, o_ref):
    """Fused IA stand-in: 2-layer MLP + mean pooling over frames."""
    h = jnp.tanh(
        jnp.dot(x_ref[...], w1_ref[...], preferred_element_type=jnp.float32)
        + b1_ref[...]
    )
    y = jnp.dot(h, w2_ref[...], preferred_element_type=jnp.float32) + b2_ref[...]
    o_ref[...] = jnp.mean(y, axis=0, keepdims=True)


def pallas_ia(p, hand_info, obj_info, obj_label_probs):
    # TODO(synk): real IA is a sequence transformer; stand-in = fused Pallas MLP.
    T = hand_info.shape[0]
    feat = jnp.concatenate(
        [hand_info.reshape(T, -1), obj_info.reshape(T, -1), obj_label_probs], axis=-1
    ).astype(jnp.float32)
    out = pl.pallas_call(
        _ia_kernel,
        out_shape=jax.ShapeDtypeStruct((1, NUM_ACTIONS), jnp.float32),
    )(feat, p["ia1_w"], p["ia1_b"], p["ia2_w"], p["ia2_b"])
    return out[0]


# -----------------------------------------------------------------------------
# Plain-JAX glue (tiny, data-dependent / SVD pieces), all inside jax.jit
# -----------------------------------------------------------------------------
def rigid_transform_3D(A, B):
    """Port of rigid_transform_3D_numpy (covariance in Pallas, SVD/det in XLA)."""
    H, cA, cB, varP = pallas_rigid_cov(A, B)
    # TODO(synk): SVD / determinant have no Pallas TPU lowering; done in XLA.
    U, s, V = jnp.linalg.svd(H)                    # V is Vh, matching np.linalg.svd
    R = jnp.matmul(jnp.transpose(V, (0, 2, 1)), jnp.transpose(U, (0, 2, 1)))
    neg = jnp.linalg.det(R) < 0
    s = s.at[:, -1].set(jnp.where(neg, -s[:, -1], s[:, -1]))
    # exact same flip as the numpy reference: V[negative_det, :, 2] = -V[...]
    V = V.at[:, :, 2].set(jnp.where(neg[:, None], -V[:, :, 2], V[:, :, 2]))
    R_flip = jnp.matmul(jnp.transpose(V, (0, 2, 1)), jnp.transpose(U, (0, 2, 1)))
    R = jnp.where(neg[:, None, None], R_flip, R)
    c = (1.0 / varP) * jnp.sum(s, axis=-1)
    t = -jnp.matmul(c[:, None, None] * R, cA[..., None])[..., -1] + cB
    return c, R, t


def pixel2cam(kp, fx, fy, cx, cy, T_=None):
    """Back-project pixel+depth keypoints to camera coords (elementwise, XLA-fused)."""
    z = kp[..., 2]
    x = (kp[..., 0] - cx) / fx * z
    y = (kp[..., 1] - cy) / fy * z
    cam = jnp.stack([x, y, z], axis=-1)
    if T_ is not None:
        # TODO(synk): exact template alignment of the original pixel2cam(..., T_) is
        # unavailable; approximate with root-relative + reference-bone scaling.
        root = cam[..., :1, :]
        rel = cam - root
        bone = jnp.linalg.norm(rel[..., 9, :], axis=-1)[..., None, None] + 1e-6
        t_root = T_[:, :1, :]
        t_bone = jnp.linalg.norm(T_[:, 9, :] - T_[:, 0, :], axis=-1)[:, None, None]
        cam = rel / bone * t_bone + t_root
    return cam


def query_select(out_logits, pred_keypoints, pred_obj_keypoints):
    T, Q, C = out_logits.shape
    prob = jax.nn.sigmoid(out_logits)
    hand0 = CFG.hand_idx[0]
    obj_prob = prob[:, :, 1:hand0]                          # (T, Q, n_obj)
    scores = jnp.max(obj_prob, axis=1)                      # (T, n_obj)
    per_class_idx = jnp.argmax(obj_prob, axis=1)            # first argmax (== torch.max)
    best_class = jnp.argmax(scores, axis=-1)                # first max class (== loop)
    obj_idx = jnp.take_along_axis(per_class_idx, best_class[:, None], axis=1)[:, 0]
    hand_idx = jnp.stack(
        [jnp.argmax(prob[:, :, i], axis=-1) for i in CFG.hand_idx], axis=-1
    )                                                       # (T, n_hands)
    keep = jnp.concatenate([hand_idx, obj_idx[:, None]], axis=-1)

    hand_kp = jnp.take_along_axis(pred_keypoints, hand_idx[..., None], axis=1)
    hand_kp = hand_kp.reshape(T, -1, NUM_JOINTS, 3)
    obj_kp = jnp.take_along_axis(pred_obj_keypoints, obj_idx[:, None, None], axis=1)
    obj_kp = obj_kp.reshape(T, NUM_JOINTS, 3)
    labels = jax.nn.softmax(
        jnp.take_along_axis(out_logits, keep[..., None], axis=1), axis=-1
    )
    return labels, hand_kp, obj_kp


# -----------------------------------------------------------------------------
# Parameters (deterministic stand-ins for HOP / AIK / MANO / IA)
# -----------------------------------------------------------------------------
def init_params(seed=42):
    key = jax.random.PRNGKey(seed)
    ks = list(jax.random.split(key, 32))

    def lin(k, fan_in, fan_out):
        kw, kb = jax.random.split(k)
        s = 1.0 / math.sqrt(fan_in)
        return (jax.random.normal(kw, (fan_in, fan_out), jnp.float32) * s,
                jax.random.normal(kb, (fan_out,), jnp.float32) * 0.01)

    p = {}
    w_in, b_in = lin(ks[0], IMG_C * IMG_H * IMG_W, HIDDEN)
    p["hop_in_w"] = w_in
    p["hop_in_b"] = b_in.reshape(1, HIDDEN)

    # fused (logits | keypoints | obj keypoints) head, padded to a 128-multiple
    wl, bl = lin(ks[1], HIDDEN, N_LOGITS)
    wk, bk = lin(ks[2], HIDDEN, N_KP)
    wo, bo = lin(ks[3], HIDDEN, N_KP)
    wh = jnp.concatenate([wl, wk, wo], axis=1)
    bh = jnp.concatenate([bl, bk, bo], axis=0)
    p["hop_head_w"] = jnp.pad(wh, ((0, 0), (0, HEAD_PAD - HEAD_RAW)))
    p["hop_head_b"] = jnp.pad(bh, (0, HEAD_PAD - HEAD_RAW)).reshape(1, HEAD_PAD)

    # per-hand AIK / MANO stand-ins, stacked along a leading hand axis
    aik = [lin(ks[4 + i], NUM_JOINTS * 3, POSE_DIM) for i in range(NUM_HANDS)]
    mv = [lin(ks[8 + i], POSE_DIM, MANO_VERTS * 3) for i in range(NUM_HANDS)]
    mj = [lin(ks[12 + i], POSE_DIM, NUM_JOINTS * 3) for i in range(NUM_HANDS)]
    p["aik_w"] = jnp.stack([w for w, _ in aik])
    p["aik_b"] = jnp.stack([b.reshape(1, -1) for _, b in aik])
    p["mano_vw"] = jnp.stack([w for w, _ in mv])
    p["mano_vb"] = jnp.stack([b.reshape(1, -1) for _, b in mv])
    p["mano_jw"] = jnp.stack([w for w, _ in mj])
    p["mano_jb"] = jnp.stack([b.reshape(1, -1) for _, b in mj])

    d_ia = NUM_HANDS * MANO_VERTS * 4 + OBJ_VERTS * 4 + (CFG.hand_idx[0] - 1)
    w1, b1 = lin(ks[16], d_ia, HIDDEN)
    w2, b2 = lin(ks[17], HIDDEN, NUM_ACTIONS)
    p["ia1_w"], p["ia1_b"] = w1, b1.reshape(1, HIDDEN)
    p["ia2_w"], p["ia2_b"] = w2, b2.reshape(1, NUM_ACTIONS)

    # Deterministic AIK hand templates (mm scale), one per hand side.
    base = jnp.arange(NUM_JOINTS, dtype=jnp.float32)
    t_right = jnp.stack([jnp.sin(base), jnp.cos(base), 0.1 * base + 1.0], -1) * 30.0
    t_left = t_right * jnp.array([-1.0, 1.0, 1.0])
    p["T_keypoints"] = jnp.stack([t_left, t_right], axis=0)    # (2, 21, 3)
    return p


# -----------------------------------------------------------------------------
# H2OTR.forward (fully jitted, no mid-graph host syncs)
# -----------------------------------------------------------------------------
@jax.jit
def h2otr_forward(p, samples, intrinsics, obj_vertices, obj_bbox):
    cam_fx, cam_fy, cam_cx, cam_cy, w, h = intrinsics
    num_frame = samples.shape[0]
    hand0 = CFG.hand_idx[0]

    out_logits, pred_kp, pred_okp = pallas_hop_head(p, samples)
    labels, hand_kp, obj_kp = query_select(out_logits, pred_kp, pred_okp)

    scale = jnp.stack([jnp.asarray(w, jnp.float32),
                       jnp.asarray(h, jnp.float32),
                       jnp.asarray(1000.0, jnp.float32)])      # xy -> pixels, z -> mm
    hand_kp = hand_kp * scale
    obj_kp = obj_kp * scale
    keypoints = jnp.concatenate([hand_kp, obj_kp[:, None]], axis=1)

    T_ = p["T_keypoints"] if hand_kp.shape[1] == 2 else p["T_keypoints"][1:2]
    nh = T_.shape[0]

    hand_cam_align = pixel2cam(hand_kp, cam_fx, cam_fy, cam_cx, cam_cy, T_)
    hand_cam = pixel2cam(hand_kp, cam_fx, cam_fy, cam_cx, cam_cy)

    # Fused per-hand AIK + MANO (one pallas_call, grid over hands).
    cam_in = jnp.transpose(hand_cam_align, (1, 0, 2, 3)).reshape(
        nh, num_frame, NUM_JOINTS * 3)
    verts_h, joints_h = pallas_hand_mano(p, cam_in, T_)
    hand_verts = jnp.transpose(
        verts_h.reshape(nh, num_frame, MANO_VERTS, 3), (1, 0, 2, 3))
    j3d_recon = jnp.transpose(
        joints_h.reshape(nh, num_frame, NUM_JOINTS, 3), (1, 0, 2, 3))
    hand_verts = hand_verts - j3d_recon[:, :, :1] + hand_cam[:, :, :1]

    # Traced object label (no host roundtrip); name lookup happens outside jit.
    obj_label = jnp.argmax(jnp.sum(labels[:, -1, :hand0], axis=0), axis=-1)
    obj_cam = pixel2cam(obj_kp, cam_fx, cam_fy, cam_cx, cam_cy)
    obj_bbox_sel = jnp.take(obj_bbox, obj_label, axis=0)
    obj_tmpl = jnp.take(obj_vertices, obj_label, axis=0)
    _, R, t = rigid_transform_3D(obj_bbox_sel[None] * 1000.0, obj_cam)

    # Fused object transform + NN distances + pseudo contact maps.
    objv_t, hand_cmap, obj_cmap_t = pallas_contact(R, t, obj_tmpl, hand_verts)
    obj_verts = jnp.transpose(objv_t, (0, 2, 1))               # (T, No, 3) mm
    obj_cmap = jnp.transpose(obj_cmap_t, (0, 2, 1))            # (T, No, 1)

    hand_info = jnp.concatenate([hand_verts / 1000.0, hand_cmap], axis=-1)
    obj_info = jnp.concatenate([obj_verts / 1000.0, obj_cmap], axis=-1)

    action_logits = pallas_ia(p, hand_info, obj_info, labels[:, -1, 1:hand0])

    return {
        "keypoints": keypoints,
        "action_logits": action_logits,
        "obj_label": obj_label,
        "obj_rot": R,
        "obj_trans": t,
        "hand_info": hand_info,
    }


def h2otr(p, cfg, samples, intrinsics, obj_vertices, obj_bbox):
    """Non-jitted wrapper: runs the jitted forward, resolves obj_name on host."""
    idx2obj = {v: k for k, v in cfg.obj2idx.items()}
    out = dict(h2otr_forward(p, samples, intrinsics, obj_vertices, obj_bbox))
    out["obj_name"] = idx2obj[int(out["obj_label"])]
    return out


# -----------------------------------------------------------------------------
# Main
# -----------------------------------------------------------------------------
if __name__ == "__main__":
    params = init_params(seed=42)

    key = jax.random.PRNGKey(0)
    k1, k2, k3 = jax.random.split(key, 3)
    samples = jax.random.normal(k1, (NUM_FRAMES, IMG_C, IMG_H, IMG_W), jnp.float32)
    obj_vertices = jax.random.uniform(
        k2, (CFG.hand_idx[0], OBJ_VERTS, 3), jnp.float32, -0.05, 0.05)
    obj_bbox = jax.random.uniform(
        k3, (CFG.hand_idx[0], NUM_JOINTS, 3), jnp.float32, -0.05, 0.05)
    intrinsics = (240.0, 240.0, 128.0, 128.0, 256.0, 256.0)

    outputs = h2otr(params, CFG, samples, intrinsics, obj_vertices, obj_bbox)

    jax.block_until_ready(outputs["action_logits"])
    jax.block_until_ready(outputs["keypoints"])
    jax.block_until_ready(outputs["hand_info"])
    assert outputs["keypoints"].shape == (NUM_FRAMES, NUM_HANDS + 1, NUM_JOINTS, 3)
    assert outputs["action_logits"].shape == (NUM_ACTIONS,)
    assert outputs["hand_info"].shape == (NUM_FRAMES, NUM_HANDS, MANO_VERTS, 4)
    assert outputs["obj_name"] in CFG.obj2idx
    print("KERNEL_OK")
</pallas_src>

<mosaic_0001>
module attributes {stable_mosaic.version = 11 : i64} {
  func.func @_hop_kernel(%arg0: memref<2x768xf32, #tpu.memory_space<vmem>>, %arg1: memref<768x32xf32, #tpu.memory_space<vmem>>, %arg2: memref<1x32xf32, #tpu.memory_space<vmem>>, %arg3: memref<32x1152xf32, #tpu.memory_space<vmem>>, %arg4: memref<1x1152xf32, #tpu.memory_space<vmem>>, %arg5: memref<2x1152xf32, #tpu.memory_space<vmem>>) attributes {dimension_semantics = [], scalar_prefetch = 0 : i64, scratch_operands = 0 : i64, tpu.core_type = #tpu.core_type<tc>} {
    %c0 = arith.constant 0 : index
    %c0_0 = arith.constant 0 : index
    %0 = vector.load %arg0[%c0, %c0_0] : memref<2x768xf32, #tpu.memory_space<vmem>>, vector<2x768xf32>
    %c0_1 = arith.constant 0 : index
    %c0_2 = arith.constant 0 : index
    %1 = vector.load %arg1[%c0_1, %c0_2] : memref<768x32xf32, #tpu.memory_space<vmem>>, vector<768x32xf32>
    %cst = arith.constant dense<0.000000e+00> : vector<2x32xf32>
    %2 = tpu.matmul %0, %1, %cst {dimension_numbers = #tpu.dot_dimension_numbers<[1], [0], [0], [1], [0, 0, 1, 1], [], []>} : vector<2x768xf32>, vector<768x32xf32>, vector<2x32xf32> -> vector<2x32xf32>
    %c0_3 = arith.constant 0 : index
    %c0_4 = arith.constant 0 : index
    %3 = vector.load %arg2[%c0_3, %c0_4] : memref<1x32xf32, #tpu.memory_space<vmem>>, vector<1x32xf32>
    %4 = vector.broadcast %3 : vector<1x32xf32> to vector<2x32xf32>
    %5 = arith.addf %2, %4 : vector<2x32xf32>
    %6 = math.tanh %5 : vector<2x32xf32>
    %c0_5 = arith.constant 0 : index
    %c0_6 = arith.constant 0 : index
    %7 = vector.load %arg3[%c0_5, %c0_6] : memref<32x1152xf32, #tpu.memory_space<vmem>>, vector<32x1152xf32>
    %cst_7 = arith.constant dense<0.000000e+00> : vector<2x1152xf32>
    %8 = tpu.matmul %6, %7, %cst_7 {dimension_numbers = #tpu.dot_dimension_numbers<[1], [0], [0], [1], [0, 0, 1, 1], [], []>} : vector<2x32xf32>, vector<32x1152xf32>, vector<2x1152xf32> -> vector<2x1152xf32>
    %c0_8 = arith.constant 0 : index
    %c0_9 = arith.constant 0 : index
    %9 = vector.load %arg4[%c0_8, %c0_9] : memref<1x1152xf32, #tpu.memory_space<vmem>>, vector<1x1152xf32>
    %10 = vector.broadcast %9 : vector<1x1152xf32> to vector<2x1152xf32>
    %11 = arith.addf %8, %10 : vector<2x1152xf32>
    %12 = tpu.iota {dimensions = array<i32: 1>} : vector<2x1152xi32>
    %c56_i32 = arith.constant 56 : i32
    %13 = vector.broadcast %c56_i32 : i32 to vector<2x1152xi32>
    %14 = arith.cmpi slt, %12, %13 : vector<2x1152xi32>
    %15 = arith.negf %11 : vector<2x1152xf32>
    %16 = math.exp %15 : vector<2x1152xf32>
    %cst_10 = arith.constant 1.000000e+00 : f32
    %17 = vector.broadcast %cst_10 : f32 to vector<2x1152xf32>
    %18 = arith.addf %17, %16 : vector<2x1152xf32>
    %19 = arith.divf %17, %18 : vector<2x1152xf32>
    %20 = arith.select %14, %11, %19 : vector<2x1152xi1>, vector<2x1152xf32>
    %c0_11 = arith.constant 0 : index
    %c0_12 = arith.constant 0 : index
    %21 = vector.load %arg5[%c0_11, %c0_12] : memref<2x1152xf32, #tpu.memory_space<vmem>>, vector<2x1152xf32>
    tpu.vector_store %arg5[%c0_11, %c0_12], %20 {strides = array<i32>} : memref<2x1152xf32, #tpu.memory_space<vmem>>, vector<2x1152xf32>,
    return
  }
}

module attributes {stable_mosaic.version = 11 : i64} {
  func.func @_rigid_cov_kernel(%arg0: memref<1x3x21xf32, #tpu.memory_space<vmem>>, %arg1: memref<2x3x21xf32, #tpu.memory_space<vmem>>, %arg2: memref<3x2x3xf32, #tpu.memory_space<vmem>>, %arg3: memref<3x1xf32, #tpu.memory_space<vmem>>, %arg4: memref<2x3x1xf32, #tpu.memory_space<vmem>>, %arg5: memref<1x1xf32, #tpu.memory_space<vmem>>) attributes {dimension_semantics = [], scalar_prefetch = 0 : i64, scratch_operands = 0 : i64, tpu.core_type = #tpu.core_type<tc>} {
    %c0 = arith.constant 0 : index
    %c0_0 = arith.constant 0 : index
    %c0_1 = arith.constant 0 : index
    %0 = vector.load %arg0[%c0, %c0_0, %c0_1] : memref<1x3x21xf32, #tpu.memory_space<vmem>>, vector<1x3x21xf32>
    %1 = vector.shape_cast %0 : vector<1x3x21xf32> to vector<3x21xf32>
    %c0_2 = arith.constant 0 : index
    %c0_3 = arith.constant 0 : index
    %c0_4 = arith.constant 0 : index
    %2 = vector.load %arg1[%c0_2, %c0_3, %c0_4] : memref<2x3x21xf32, #tpu.memory_space<vmem>>, vector<2x3x21xf32>
    %cst = arith.constant dense<0.000000e+00> : vector<3xf32>
    %3 = vector.multi_reduction <add>, %1, %cst [1] : vector<3x21xf32> to vector<3xf32>
    %4 = vector.shape_cast %3 : vector<3xf32> to vector<3x1xf32>
    %cst_5 = arith.constant 2.100000e+01 : f32
    %5 = vector.broadcast %cst_5 : f32 to vector<3x1xf32>
    %6 = arith.divf %4, %5 : vector<3x1xf32>
    %cst_6 = arith.constant dense<0.000000e+00> : vector<2x3xf32>
    %7 = vector.multi_reduction <add>, %2, %cst_6 [2] : vector<2x3x21xf32> to vector<2x3xf32>
    %8 = vector.shape_cast %7 : vector<2x3xf32> to vector<2x3x1xf32>
    %cst_7 = arith.constant 2.100000e+01 : f32
    %9 = vector.broadcast %cst_7 : f32 to vector<2x3x1xf32>
    %10 = arith.divf %8, %9 : vector<2x3x1xf32>
    %11 = vector.broadcast %6 : vector<3x1xf32> to vector<3x21xf32>
    %12 = arith.subf %1, %11 : vector<3x21xf32>
    %13 = vector.broadcast %10 : vector<2x3x1xf32> to vector<2x3x21xf32>
    %14 = arith.subf %2, %13 : vector<2x3x21xf32>
    %15 = vector.extract_strided_slice %12 {offsets = [0, 0], sizes = [1, 21], strides = [1, 1]} : vector<3x21xf32> to vector<1x21xf32>
    %16 = vector.shape_cast %15 : vector<1x21xf32> to vector<1x1x21xf32>
    %17 = vector.broadcast %16 : vector<1x1x21xf32> to vector<2x3x21xf32>
    %18 = arith.mulf %17, %14 : vector<2x3x21xf32>
    %cst_8 = arith.constant dense<0.000000e+00> : vector<2x3xf32>
    %19 = vector.multi_reduction <add>, %18, %cst_8 [2] : vector<2x3x21xf32> to vector<2x3xf32>
    %cst_9 = arith.constant 0.0476190485 : f32
    %20 = vector.broadcast %cst_9 : f32 to vector<2x3xf32>
    %21 = arith.mulf %19, %20 : vector<2x3xf32>
    %c0_10 = arith.constant 0 : index
    %c0_11 = arith.constant 0 : index
    %c0_12 = arith.constant 0 : index
    %22 = vector.load %arg2[%c0_10, %c0_11, %c0_12] : memref<3x2x3xf32, #tpu.memory_space<vmem>>, vector<1x2x3xf32>
    %23 = vector.shape_cast %22 : vector<1x2x3xf32> to vector<2x3xf32>
    %24 = vector.shape_cast %21 : vector<2x3xf32> to vector<1x2x3xf32>
    tpu.vector_store %arg2[%c0_10, %c0_11, %c0_12], %24 {strides = array<i32>} : memref<3x2x3xf32, #tpu.memory_space<vmem>>, vector<1x2x3xf32>,
    %25 = vector.extract_strided_slice %12 {offsets = [1, 0], sizes = [1, 21], strides = [1, 1]} : vector<3x21xf32> to vector<1x21xf32>
    %26 = vector.shape_cast %25 : vector<1x21xf32> to vector<1x1x21xf32>
    %27 = vector.broadcast %26 : vector<1x1x21xf32> to vector<2x3x21xf32>
    %28 = arith.mulf %27, %14 : vector<2x3x21xf32>
    %cst_13 = arith.constant dense<0.000000e+00> : vector<2x3xf32>
    %29 = vector.multi_reduction <add>, %28, %cst_13 [2] : vector<2x3x21xf32> to vector<2x3xf32>
    %cst_14 = arith.constant 0.0476190485 : f32
    %30 = vector.broadcast %cst_14 : f32 to vector<2x3xf32>
    %31 = arith.mulf %29, %30 : vector<2x3xf32>
    %c1 = arith.constant 1 : index
    %c0_15 = arith.constant 0 : index
    %c0_16 = arith.constant 0 : index
    %32 = vector.load %arg2[%c1, %c0_15, %c0_16] : memref<3x2x3xf32, #tpu.memory_space<vmem>>, vector<1x2x3xf32>
    %33 = vector.shape_cast %32 : vector<1x2x3xf32> to vector<2x3xf32>
    %34 = vector.shape_cast %31 : vector<2x3xf32> to vector<1x2x3xf32>
    tpu.vector_store %arg2[%c1, %c0_15, %c0_16], %34 {strides = array<i32>} : memref<3x2x3xf32, #tpu.memory_space<vmem>>, vector<1x2x3xf32>,
    %35 = vector.extract_strided_slice %12 {offsets = [2, 0], sizes = [1, 21], strides = [1, 1]} : vector<3x21xf32> to vector<1x21xf32>
    %36 = vector.shape_cast %35 : vector<1x21xf32> to vector<1x1x21xf32>
    %37 = vector.broadcast %36 : vector<1x1x21xf32> to vector<2x3x21xf32>
    %38 = arith.mulf %37, %14 : vector<2x3x21xf32>
    %cst_17 = arith.constant dense<0.000000e+00> : vector<2x3xf32>
    %39 = vector.multi_reduction <add>, %38, %cst_17 [2] : vector<2x3x21xf32> to vector<2x3xf32>
    %cst_18 = arith.constant 0.0476190485 : f32
    %40 = vector.broadcast %cst_18 : f32 to vector<2x3xf32>
    %41 = arith.mulf %39, %40 : vector<2x3xf32>
    %c2 = arith.constant 2 : index
    %c0_19 = arith.constant 0 : index
    %c0_20 = arith.constant 0 : index
    %42 = vector.load %arg2[%c2, %c0_19, %c0_20] : memref<3x2x3xf32, #tpu.memory_space<vmem>>, vector<1x2x3xf32>
    %43 = vector.shape_cast %42 : vector<1x2x3xf32> to vector<2x3xf32>
    %44 = vector.shape_cast %41 : vector<2x3xf32> to vector<1x2x3xf32>
    tpu.vector_store %arg2[%c2, %c0_19, %c0_20], %44 {strides = array<i32>} : memref<3x2x3xf32, #tpu.memory_space<vmem>>, vector<1x2x3xf32>,
    %c0_21 = arith.constant 0 : index
    %c0_22 = arith.constant 0 : index
    %45 = vector.load %arg3[%c0_21, %c0_22] : memref<3x1xf32, #tpu.memory_space<vmem>>, vector<3x1xf32>
    tpu.vector_store %arg3[%c0_21, %c0_22], %6 {strides = array<i32>} : memref<3x1xf32, #tpu.memory_space<vmem>>, vector<3x1xf32>,
    %c0_23 = arith.constant 0 : index
    %c0_24 = arith.constant 0 : index
    %c0_25 = arith.constant 0 : index
    %46 = vector.load %arg4[%c0_23, %c0_24, %c0_25] : memref<2x3x1xf32, #tpu.memory_space<vmem>>, vector<2x3x1xf32>
    tpu.vector_store %arg4[%c0_23, %c0_24, %c0_25], %10 {strides = array<i32>} : memref<2x3x1xf32, #tpu.memory_space<vmem>>, vector<2x3x1xf32>,
    %47 = arith.mulf %12, %12 : vector<3x21xf32>
    %cst_26 = arith.constant dense<0.000000e+00> : vector<3xf32>
    %48 = vector.multi_reduction <add>, %47, %cst_26 [1] : vector<3x21xf32> to vector<3xf32>
    %49 = vector.shape_cast %48 : vector<3xf32> to vector<3x1xf32>
    %cst_27 = arith.constant 2.100000e+01 : f32
    %50 = vector.broadcast %cst_27 : f32 to vector<3x1xf32>
    %51 = arith.divf %49, %50 : vector<3x1xf32>
    %cst_28 = arith.constant dense<0.000000e+00> : vector<1xf32>
    %52 = vector.multi_reduction <add>, %51, %cst_28 [0] : vector<3x1xf32> to vector<1xf32>
    %53 = vector.shape_cast %52 : vector<1xf32> to vector<1x1xf32>
    %c0_29 = arith.constant 0 : index
    %c0_30 = arith.constant 0 : index
    %54 = vector.load %arg5[%c0_29, %c0_30] : memref<1x1xf32, #tpu.memory_space<vmem>>, vector<1x1xf32>
    tpu.vector_store %arg5[%c0_29, %c0_30], %53 {strides = array<i32>} : memref<1x1xf32, #tpu.memory_space<vmem>>, vector<1x1xf32>,
    return
  }
}

module attributes {stable_mosaic.version = 11 : i64} {
  func.func @_hand_kernel(%arg0: i32, %arg1: memref<1x2x63xf32, #tpu.memory_space<vmem>>, %arg2: memref<1x1x63xf32, #tpu.memory_space<vmem>>, %arg3: memref<1x63x48xf32, #tpu.memory_space<vmem>>, %arg4: memref<1x1x48xf32, #tpu.memory_space<vmem>>, %arg5: memref<1x48x192xf32, #tpu.memory_space<vmem>>, %arg6: memref<1x1x192xf32, #tpu.memory_space<vmem>>, %arg7: memref<1x48x63xf32, #tpu.memory_space<vmem>>, %arg8: memref<1x1x63xf32, #tpu.memory_space<vmem>>, %arg9: memref<1x2x192xf32, #tpu.memory_space<vmem>>, %arg10: memref<1x2x63xf32, #tpu.memory_space<vmem>>) attributes {dimension_semantics = [#tpu.dimension_semantics<parallel>], iteration_bounds = array<i64: 2>, scalar_prefetch = 0 : i64, scratch_operands = 0 : i64, tpu.core_type = #tpu.core_type<tc>, window_params = [{transform_indices = @transform_0, window_bounds = array<i64: 1, 2, 63>}, {transform_indices = @transform_1, window_bounds = array<i64: 1, 1, 63>}, {transform_indices = @transform_2, window_bounds = array<i64: 1, 63, 48>}, {transform_indices = @transform_3, window_bounds = array<i64: 1, 1, 48>}, {transform_indices = @transform_4, window_bounds = array<i64: 1, 48, 192>}, {transform_indices = @transform_5, window_bounds = array<i64: 1, 1, 192>}, {transform_indices = @transform_6, window_bounds = array<i64: 1, 48, 63>}, {transform_indices = @transform_7, window_bounds = array<i64: 1, 1, 63>}, {transform_indices = @transform_8, window_bounds = array<i64: 1, 2, 192>}, {transform_indices = @transform_9, window_bounds = array<i64: 1, 2, 63>}]} {
    %c0 = arith.constant 0 : index
    %c0_0 = arith.constant 0 : index
    %c0_1 = arith.constant 0 : index
    %0 = vector.load %arg1[%c0, %c0_0, %c0_1] : memref<1x2x63xf32, #tpu.memory_space<vmem>>, vector<1x2x63xf32>
    %1 = vector.shape_cast %0 : vector<1x2x63xf32> to vector<2x63xf32>
    %c0_2 = arith.constant 0 : index
    %c0_3 = arith.constant 0 : index
    %c0_4 = arith.constant 0 : index
    %2 = vector.load %arg2[%c0_2, %c0_3, %c0_4] : memref<1x1x63xf32, #tpu.memory_space<vmem>>, vector<1x1x63xf32>
    %3 = vector.shape_cast %2 : vector<1x1x63xf32> to vector<1x63xf32>
    %4 = vector.broadcast %3 : vector<1x63xf32> to vector<2x63xf32>
    %5 = arith.subf %1, %4 : vector<2x63xf32>
    %cst = arith.constant 0.00999999977 : f32
    %6 = vector.broadcast %cst : f32 to vector<2x63xf32>
    %7 = arith.mulf %5, %6 : vector<2x63xf32>
    %c0_5 = arith.constant 0 : index
    %c0_6 = arith.constant 0 : index
    %c0_7 = arith.constant 0 : index
    %8 = vector.load %arg3[%c0_5, %c0_6, %c0_7] : memref<1x63x48xf32, #tpu.memory_space<vmem>>, vector<1x63x48xf32>
    %9 = vector.shape_cast %8 : vector<1x63x48xf32> to vector<63x48xf32>
    %cst_8 = arith.constant dense<0.000000e+00> : vector<2x48xf32>
    %10 = tpu.matmul %7, %9, %cst_8 {dimension_numbers = #tpu.dot_dimension_numbers<[1], [0], [0], [1], [0, 0, 1, 1], [], []>} : vector<2x63xf32>, vector<63x48xf32>, vector<2x48xf32> -> vector<2x48xf32>
    %c0_9 = arith.constant 0 : index
    %c0_10 = arith.constant 0 : index
    %c0_11 = arith.constant 0 : index
    %11 = vector.load %arg4[%c0_9, %c0_10, %c0_11] : memref<1x1x48xf32, #tpu.memory_space<vmem>>, vector<1x1x48xf32>
    %12 = vector.shape_cast %11 : vector<1x1x48xf32> to vector<1x48xf32>
    %13 = vector.broadcast %12 : vector<1x48xf32> to vector<2x48xf32>
    %14 = arith.addf %10, %13 : vector<2x48xf32>
    %15 = math.tanh %14 : vector<2x48xf32>
    %cst_12 = arith.constant 3.14159274 : f32
    %16 = vector.broadcast %cst_12 : f32 to vector<2x48xf32>
    %17 = arith.mulf %15, %16 : vector<2x48xf32>
    %c0_13 = arith.constant 0 : index
    %c0_14 = arith.constant 0 : index
    %c0_15 = arith.constant 0 : index
    %18 = vector.load %arg5[%c0_13, %c0_14, %c0_15] : memref<1x48x192xf32, #tpu.memory_space<vmem>>, vector<1x48x192xf32>
    %19 = vector.shape_cast %18 : vector<1x48x192xf32> to vector<48x192xf32>
    %cst_16 = arith.constant dense<0.000000e+00> : vector<2x192xf32>
    %20 = tpu.matmul %17, %19, %cst_16 {dimension_numbers = #tpu.dot_dimension_numbers<[1], [0], [0], [1], [0, 0, 1, 1], [], []>} : vector<2x48xf32>, vector<48x192xf32>, vector<2x192xf32> -> vector<2x192xf32>
    %c0_17 = arith.constant 0 : index
    %c0_18 = arith.constant 0 : index
    %c0_19 = arith.constant 0 : index
    %21 = vector.load %arg6[%c0_17, %c0_18, %c0_19] : memref<1x1x192xf32, #tpu.memory_space<vmem>>, vector<1x1x192xf32>
    %22 = vector.shape_cast %21 : vector<1x1x192xf32> to vector<1x192xf32>
    %23 = vector.broadcast %22 : vector<1x192xf32> to vector<2x192xf32>
    %24 = arith.addf %20, %23 : vector<2x192xf32>
    %cst_20 = arith.constant 1.000000e+02 : f32
    %25 = vector.broadcast %cst_20 : f32 to vector<2x192xf32>
    %26 = arith.mulf %24, %25 : vector<2x192xf32>
    %c0_21 = arith.constant 0 : index
    %c0_22 = arith.constant 0 : index
    %c0_23 = arith.constant 0 : index
    %27 = vector.load %arg9[%c0_21, %c0_22, %c0_23] : memref<1x2x192xf32, #tpu.memory_space<vmem>>, vector<1x2x192xf32>
    %28 = vector.shape_cast %27 : vector<1x2x192xf32> to vector<2x192xf32>
    %29 = vector.shape_cast %26 : vector<2x192xf32> to vector<1x2x192xf32>
    tpu.vector_store %arg9[%c0_21, %c0_22, %c0_23], %29 {strides = array<i32>} : memref<1x2x192xf32, #tpu.memory_space<vmem>>, vector<1x2x192xf32>,
    %c0_24 = arith.constant 0 : index
    %c0_25 = arith.constant 0 : index
    %c0_26 = arith.constant 0 : index
    %30 = vector.load %arg7[%c0_24, %c0_25, %c0_26] : memref<1x48x63xf32, #tpu.memory_space<vmem>>, vector<1x48x63xf32>
    %31 = vector.shape_cast %30 : vector<1x48x63xf32> to vector<48x63xf32>
    %cst_27 = arith.constant dense<0.000000e+00> : vector<2x63xf32>
    %32 = tpu.matmul %17, %31, %cst_27 {dimension_numbers = #tpu.dot_dimension_numbers<[1], [0], [0], [1], [0, 0, 1, 1], [], []>} : vector<2x48xf32>, vector<48x63xf32>, vector<2x63xf32> -> vector<2x63xf32>
    %c0_28 = arith.constant 0 : index
    %c0_29 = arith.constant 0 : index
    %c0_30 = arith.constant 0 : index
    %33 = vector.load %arg8[%c0_28, %c0_29, %c0_30] : memref<1x1x63xf32, #tpu.memory_space<vmem>>, vector<1x1x63xf32>
    %34 = vector.shape_cast %33 : vector<1x1x63xf32> to vector<1x63xf32>
    %35 = vector.broadcast %34 : vector<1x63xf32> to vector<2x63xf32>
    %36 = arith.addf %32, %35 : vector<2x63xf32>
    %cst_31 = arith.constant 1.000000e+02 : f32
    %37 = vector.broadcast %cst_31 : f32 to vector<2x63xf32>
    %38 = arith.mulf %36, %37 : vector<2x63xf32>
    %c0_32 = arith.constant 0 : index
    %c0_33 = arith.constant 0 : index
    %c0_34 = arith.constant 0 : index
    %39 = vector.load %arg10[%c0_32, %c0_33, %c0_34] : memref<1x2x63xf32, #tpu.memory_space<vmem>>, vector<1x2x63xf32>
    %40 = vector.shape_cast %39 : vector<1x2x63xf32> to vector<2x63xf32>
    %41 = vector.shape_cast %38 : vector<2x63xf32> to vector<1x2x63xf32>
    tpu.vector_store %arg10[%c0_32, %c0_33, %c0_34], %41 {strides = array<i32>} : memref<1x2x63xf32, #tpu.memory_space<vmem>>, vector<1x2x63xf32>,
    return
  }
  func.func @transform_0(%arg0: i32) -> (i32, i32, i32) {
    %c0_i32 = arith.constant 0 : i32
    %c0_i32_0 = arith.constant 0 : i32
    %c0_i32_1 = arith.constant 0 : i32
    return %arg0, %c0_i32, %c0_i32_0 : i32, i32, i32
  }
  func.func @transform_1(%arg0: i32) -> (i32, i32, i32) {
    %c0_i32 = arith.constant 0 : i32
    %c0_i32_0 = arith.constant 0 : i32
    %c0_i32_1 = arith.constant 0 : i32
    return %arg0, %c0_i32, %c0_i32_0 : i32, i32, i32
  }
  func.func @transform_2(%arg0: i32) -> (i32, i32, i32) {
    %c0_i32 = arith.constant 0 : i32
    %c0_i32_0 = arith.constant 0 : i32
    %c0_i32_1 = arith.constant 0 : i32
    return %arg0, %c0_i32, %c0_i32_0 : i32, i32, i32
  }
  func.func @transform_3(%arg0: i32) -> (i32, i32, i32) {
    %c0_i32 = arith.constant 0 : i32
    %c0_i32_0 = arith.constant 0 : i32
    %c0_i32_1 = arith.constant 0 : i32
    return %arg0, %c0_i32, %c0_i32_0 : i32, i32, i32
  }
  func.func @transform_4(%arg0: i32) -> (i32, i32, i32) {
    %c0_i32 = arith.constant 0 : i32
    %c0_i32_0 = arith.constant 0 : i32
    %c0_i32_1 = arith.constant 0 : i32
    return %arg0, %c0_i32, %c0_i32_0 : i32, i32, i32
  }
  func.func @transform_5(%arg0: i32) -> (i32, i32, i32) {
    %c0_i32 = arith.constant 0 : i32
    %c0_i32_0 = arith.constant 0 : i32
    %c0_i32_1 = arith.constant 0 : i32
    return %arg0, %c0_i32, %c0_i32_0 : i32, i32, i32
  }
  func.func @transform_6(%arg0: i32) -> (i32, i32, i32) {
    %c0_i32 = arith.constant 0 : i32
    %c0_i32_0 = arith.constant 0 : i32
    %c0_i32_1 = arith.constant 0 : i32
    return %arg0, %c0_i32, %c0_i32_0 : i32, i32, i32
  }
  func.func @transform_7(%arg0: i32) -> (i32, i32, i32) {
    %c0_i32 = arith.constant 0 : i32
    %c0_i32_0 = arith.constant 0 : i32
    %c0_i32_1 = arith.constant 0 : i32
    return %arg0, %c0_i32, %c0_i32_0 : i32, i32, i32
  }
  func.func @transform_8(%arg0: i32) -> (i32, i32, i32) {
    %c0_i32 = arith.constant 0 : i32
    %c0_i32_0 = arith.constant 0 : i32
    %c0_i32_1 = arith.constant 0 : i32
    return %arg0, %c0_i32, %c0_i32_0 : i32, i32, i32
  }
  func.func @transform_9(%arg0: i32) -> (i32, i32, i32) {
    %c0_i32 = arith.constant 0 : i32
    %c0_i32_0 = arith.constant 0 : i32
    %c0_i32_1 = arith.constant 0 : i32
    return %arg0, %c0_i32, %c0_i32_0 : i32, i32, i32
  }
}

module attributes {stable_mosaic.version = 11 : i64} {
  func.func @_contact_kernel(%arg0: i32, %arg1: memref<1x3x3xf32, #tpu.memory_space<vmem>>, %arg2: memref<1x1x3xf32, #tpu.memory_space<vmem>>, %arg3: memref<3x64xf32, #tpu.memory_space<vmem>>, %arg4: memref<1x2x64x3xf32, #tpu.memory_space<vmem>>, %arg5: memref<1x3x64xf32, #tpu.memory_space<vmem>>, %arg6: memref<1x2x64x1xf32, #tpu.memory_space<vmem>>, %arg7: memref<1x1x64xf32, #tpu.memory_space<vmem>>) attributes {dimension_semantics = [#tpu.dimension_semantics<parallel>], iteration_bounds = array<i64: 2>, scalar_prefetch = 0 : i64, scratch_operands = 0 : i64, tpu.core_type = #tpu.core_type<tc>, window_params = [{transform_indices = @transform_0, window_bounds = array<i64: 1, 3, 3>}, {transform_indices = @transform_1, window_bounds = array<i64: 1, 1, 3>}, {pipeline_mode = #tpu.pipeline_mode<synchronous>, transform_indices = @transform_2, window_bounds = array<i64: 3, 64>}, {transform_indices = @transform_3, window_bounds = array<i64: 1, 2, 64, 3>}, {transform_indices = @transform_4, window_bounds = array<i64: 1, 3, 64>}, {transform_indices = @transform_5, window_bounds = array<i64: 1, 2, 64, 1>}, {transform_indices = @transform_6, window_bounds = array<i64: 1, 1, 64>}]} {
    %c0 = arith.constant 0 : index
    %c0_0 = arith.constant 0 : index
    %c0_1 = arith.constant 0 : index
    %0 = vector.load %arg1[%c0, %c0_0, %c0_1] : memref<1x3x3xf32, #tpu.memory_space<vmem>>, vector<1x3x3xf32>
    %1 = vector.shape_cast %0 : vector<1x3x3xf32> to vector<3x3xf32>
    %c0_2 = arith.constant 0 : index
    %c0_3 = arith.constant 0 : index
    %c0_4 = arith.constant 0 : index
    %2 = vector.load %arg2[%c0_2, %c0_3, %c0_4] : memref<1x1x3xf32, #tpu.memory_space<vmem>>, vector<1x1x3xf32>
    %3 = vector.shape_cast %2 : vector<1x1x3xf32> to vector<1x3xf32>
    %c0_5 = arith.constant 0 : index
    %c0_6 = arith.constant 0 : index
    %4 = vector.load %arg3[%c0_5, %c0_6] : memref<3x64xf32, #tpu.memory_space<vmem>>, vector<3x64xf32>
    %cst = arith.constant 1.000000e+03 : f32
    %5 = vector.broadcast %cst : f32 to vector<3x64xf32>
    %6 = arith.mulf %4, %5 : vector<3x64xf32>
    %c0_7 = arith.constant 0 : index
    %c0_8 = arith.constant 0 : index
    %c0_9 = arith.constant 0 : index
    %c0_10 = arith.constant 0 : index
    %7 = vector.load %arg4[%c0_7, %c0_8, %c0_9, %c0_10] : memref<1x2x64x3xf32, #tpu.memory_space<vmem>>, vector<1x2x64x3xf32>
    %8 = vector.shape_cast %7 : vector<1x2x64x3xf32> to vector<2x64x3xf32>
    %9 = vector.extract_strided_slice %3 {offsets = [0, 0], sizes = [1, 1], strides = [1, 1]} : vector<1x3xf32> to vector<1x1xf32>
    %10 = vector.extract_strided_slice %1 {offsets = [0, 0], sizes = [1, 1], strides = [1, 1]} : vector<3x3xf32> to vector<1x1xf32>
    %11 = vector.extract_strided_slice %6 {offsets = [0, 0], sizes = [1, 64], strides = [1, 1]} : vector<3x64xf32> to vector<1x64xf32>
    %12 = vector.broadcast %10 : vector<1x1xf32> to vector<1x64xf32>
    %13 = arith.mulf %12, %11 : vector<1x64xf32>
    %14 = vector.extract_strided_slice %1 {offsets = [0, 1], sizes = [1, 1], strides = [1, 1]} : vector<3x3xf32> to vector<1x1xf32>
    %15 = vector.extract_strided_slice %6 {offsets = [1, 0], sizes = [1, 64], strides = [1, 1]} : vector<3x64xf32> to vector<1x64xf32>
    %16 = vector.broadcast %14 : vector<1x1xf32> to vector<1x64xf32>
    %17 = arith.mulf %16, %15 : vector<1x64xf32>
    %18 = arith.addf %13, %17 : vector<1x64xf32>
    %19 = vector.extract_strided_slice %1 {offsets = [0, 2], sizes = [1, 1], strides = [1, 1]} : vector<3x3xf32> to vector<1x1xf32>
    %20 = vector.extract_strided_slice %6 {offsets = [2, 0], sizes = [1, 64], strides = [1, 1]} : vector<3x64xf32> to vector<1x64xf32>
    %21 = vector.broadcast %19 : vector<1x1xf32> to vector<1x64xf32>
    %22 = arith.mulf %21, %20 : vector<1x64xf32>
    %23 = arith.addf %18, %22 : vector<1x64xf32>
    %24 = vector.broadcast %9 : vector<1x1xf32> to vector<1x64xf32>
    %25 = arith.addf %24, %23 : vector<1x64xf32>
    %26 = vector.extract_strided_slice %3 {offsets = [0, 1], sizes = [1, 1], strides = [1, 1]} : vector<1x3xf32> to vector<1x1xf32>
    %27 = vector.extract_strided_slice %1 {offsets = [1, 0], sizes = [1, 1], strides = [1, 1]} : vector<3x3xf32> to vector<1x1xf32>
    %28 = vector.extract_strided_slice %6 {offsets = [0, 0], sizes = [1, 64], strides = [1, 1]} : vector<3x64xf32> to vector<1x64xf32>
    %29 = vector.broadcast %27 : vector<1x1xf32> to vector<1x64xf32>
    %30 = arith.mulf %29, %28 : vector<1x64xf32>
    %31 = vector.extract_strided_slice %1 {offsets = [1, 1], sizes = [1, 1], strides = [1, 1]} : vector<3x3xf32> to vector<1x1xf32>
    %32 = vector.extract_strided_slice %6 {offsets = [1, 0], sizes = [1, 64], strides = [1, 1]} : vector<3x64xf32> to vector<1x64xf32>
    %33 = vector.broadcast %31 : vector<1x1xf32> to vector<1x64xf32>
    %34 = arith.mulf %33, %32 : vector<1x64xf32>
    %35 = arith.addf %30, %34 : vector<1x64xf32>
    %36 = vector.extract_strided_slice %1 {offsets = [1, 2], sizes = [1, 1], strides = [1, 1]} : vector<3x3xf32> to vector<1x1xf32>
    %37 = vector.extract_strided_slice %6 {offsets = [2, 0], sizes = [1, 64], strides = [1, 1]} : vector<3x64xf32> to vector<1x64xf32>
    %38 = vector.broadcast %36 : vector<1x1xf32> to vector<1x64xf32>
    %39 = arith.mulf %38, %37 : vector<1x64xf32>
    %40 = arith.addf %35, %39 : vector<1x64xf32>
    %41 = vector.broadcast %26 : vector<1x1xf32> to vector<1x64xf32>
    %42 = arith.addf %41, %40 : vector<1x64xf32>
    %43 = vector.extract_strided_slice %3 {offsets = [0, 2], sizes = [1, 1], strides = [1, 1]} : vector<1x3xf32> to vector<1x1xf32>
    %44 = vector.extract_strided_slice %1 {offsets = [2, 0], sizes = [1, 1], strides = [1, 1]} : vector<3x3xf32> to vector<1x1xf32>
    %45 = vector.extract_strided_slice %6 {offsets = [0, 0], sizes = [1, 64], strides = [1, 1]} : vector<3x64xf32> to vector<1x64xf32>
    %46 = vector.broadcast %44 : vector<1x1xf32> to vector<1x64xf32>
    %47 = arith.mulf %46, %45 : vector<1x64xf32>
    %48 = vector.extract_strided_slice %1 {offsets = [2, 1], sizes = [1, 1], strides = [1, 1]} : vector<3x3xf32> to vector<1x1xf32>
    %49 = vector.extract_strided_slice %6 {offsets = [1, 0], sizes = [1, 64], strides = [1, 1]} : vector<3x64xf32> to vector<1x64xf32>
    %50 = vector.broadcast %48 : vector<1x1xf32> to vector<1x64xf32>
    %51 = arith.mulf %50, %49 : vector<1x64xf32>
    %52 = arith.addf %47, %51 : vector<1x64xf32>
    %53 = vector.extract_strided_slice %1 {offsets = [2, 2], sizes = [1, 1], strides = [1, 1]} : vector<3x3xf32> to vector<1x1xf32>
    %54 = vector.extract_strided_slice %6 {offsets = [2, 0], sizes = [1, 64], strides = [1, 1]} : vector<3x64xf32> to vector<1x64xf32>
    %55 = vector.broadcast %53 : vector<1x1xf32> to vector<1x64xf32>
    %56 = arith.mulf %55, %54 : vector<1x64xf32>
    %57 = arith.addf %52, %56 : vector<1x64xf32>
    %58 = vector.broadcast %43 : vector<1x1xf32> to vector<1x64xf32>
    %59 = arith.addf %58, %57 : vector<1x64xf32>
    %60 = tpu.concatenate %25, %42, %59 in 0 : vector<1x64xf32>, vector<1x64xf32>, vector<1x64xf32> -> vector<3x64xf32>
    %c0_11 = arith.constant 0 : index
    %c0_12 = arith.constant 0 : index
    %c0_13 = arith.constant 0 : index
    %61 = vector.load %arg5[%c0_11, %c0_12, %c0_13] : memref<1x3x64xf32, #tpu.memory_space<vmem>>, vector<1x3x64xf32>
    %62 = vector.shape_cast %61 : vector<1x3x64xf32> to vector<3x64xf32>
    %63 = vector.shape_cast %60 : vector<3x64xf32> to vector<1x3x64xf32>
    tpu.vector_store %arg5[%c0_11, %c0_12, %c0_13], %63 {strides = array<i32>} : memref<1x3x64xf32, #tpu.memory_space<vmem>>, vector<1x3x64xf32>,
    %64 = vector.extract_strided_slice %8 {offsets = [0, 0, 0], sizes = [1, 64, 1], strides = [1, 1, 1]} : vector<2x64x3xf32> to vector<1x64x1xf32>
    %65 = vector.shape_cast %64 : vector<1x64x1xf32> to vector<64x1xf32>
    %66 = vector.broadcast %65 : vector<64x1xf32> to vector<64x64xf32>
    %67 = vector.broadcast %25 : vector<1x64xf32> to vector<64x64xf32>
    %68 = arith.subf %66, %67 : vector<64x64xf32>
    %69 = arith.mulf %68, %68 : vector<64x64xf32>
    %70 = vector.extract_strided_slice %8 {offsets = [0, 0, 1], sizes = [1, 64, 1], strides = [1, 1, 1]} : vector<2x64x3xf32> to vector<1x64x1xf32>
    %71 = vector.shape_cast %70 : vector<1x64x1xf32> to vector<64x1xf32>
    %72 = vector.broadcast %71 : vector<64x1xf32> to vector<64x64xf32>
    %73 = vector.broadcast %42 : vector<1x64xf32> to vector<64x64xf32>
    %74 = arith.subf %72, %73 : vector<64x64xf32>
    %75 = arith.mulf %74, %74 : vector<64x64xf32>
    %76 = arith.addf %69, %75 : vector<64x64xf32>
    %77 = vector.extract_strided_slice %8 {offsets = [0, 0, 2], sizes = [1, 64, 1], strides = [1, 1, 1]} : vector<2x64x3xf32> to vector<1x64x1xf32>
    %78 = vector.shape_cast %77 : vector<1x64x1xf32> to vector<64x1xf32>
    %79 = vector.broadcast %78 : vector<64x1xf32> to vector<64x64xf32>
    %80 = vector.broadcast %59 : vector<1x64xf32> to vector<64x64xf32>
    %81 = arith.subf %79, %80 : vector<64x64xf32>
    %82 = arith.mulf %81, %81 : vector<64x64xf32>
    %83 = arith.addf %76, %82 : vector<64x64xf32>
    %cst_14 = arith.constant dense<0x7F800000> : vector<64xf32>
    %84 = vector.multi_reduction <minimumf>, %83, %cst_14 [1] : vector<64x64xf32> to vector<64xf32>
    %85 = vector.shape_cast %84 : vector<64xf32> to vector<64x1xf32>
    %cst_15 = arith.constant 0.000000e+00 : f32
    %86 = vector.broadcast %cst_15 : f32 to vector<64x1xf32>
    %87 = arith.maximumf %85, %86 : vector<64x1xf32>
    %88 = math.sqrt %87 : vector<64x1xf32>
    %cst_16 = arith.constant 1.000000e+02 : f32
    %89 = vector.broadcast %cst_16 : f32 to vector<64x1xf32>
    %90 = arith.mulf %88, %89 : vector<64x1xf32>
    %cst_17 = arith.constant 2.000000e+00 : f32
    %91 = vector.broadcast %cst_17 : f32 to vector<64x1xf32>
    %92 = arith.mulf %91, %90 : vector<64x1xf32>
    %93 = arith.negf %92 : vector<64x1xf32>
    %94 = math.exp %93 : vector<64x1xf32>
    %cst_18 = arith.constant 1.000000e+00 : f32
    %95 = vector.broadcast %cst_18 : f32 to vector<64x1xf32>
    %96 = arith.addf %95, %94 : vector<64x1xf32>
    %97 = arith.divf %95, %96 : vector<64x1xf32>
    %cst_19 = arith.constant 5.000000e-01 : f32
    %98 = vector.broadcast %cst_19 : f32 to vector<64x1xf32>
    %99 = arith.subf %97, %98 : vector<64x1xf32>
    %cst_20 = arith.constant 2.000000e+00 : f32
    %100 = vector.broadcast %cst_20 : f32 to vector<64x1xf32>
    %101 = arith.mulf %100, %99 : vector<64x1xf32>
    %cst_21 = arith.constant 1.000000e+00 : f32
    %102 = vector.broadcast %cst_21 : f32 to vector<64x1xf32>
    %103 = arith.subf %102, %101 : vector<64x1xf32>
    %cst_22 = arith.constant dense<0x7F800000> : vector<64xf32>
    %104 = vector.multi_reduction <minimumf>, %83, %cst_22 [0] : vector<64x64xf32> to vector<64xf32>
    %105 = vector.shape_cast %104 : vector<64xf32> to vector<1x64xf32>
    %106 = vector.extract_strided_slice %8 {offsets = [1, 0, 0], sizes = [1, 64, 1], strides = [1, 1, 1]} : vector<2x64x3xf32> to vector<1x64x1xf32>
    %107 = vector.shape_cast %106 : vector<1x64x1xf32> to vector<64x1xf32>
    %108 = vector.broadcast %107 : vector<64x1xf32> to vector<64x64xf32>
    %109 = vector.broadcast %25 : vector<1x64xf32> to vector<64x64xf32>
    %110 = arith.subf %108, %109 : vector<64x64xf32>
    %111 = arith.mulf %110, %110 : vector<64x64xf32>
    %112 = vector.extract_strided_slice %8 {offsets = [1, 0, 1], sizes = [1, 64, 1], strides = [1, 1, 1]} : vector<2x64x3xf32> to vector<1x64x1xf32>
    %113 = vector.shape_cast %112 : vector<1x64x1xf32> to vector<64x1xf32>
    %114 = vector.broadcast %113 : vector<64x1xf32> to vector<64x64xf32>
    %115 = vector.broadcast %42 : vector<1x64xf32> to vector<64x64xf32>
    %116 = arith.subf %114, %115 : vector<64x64xf32>
    %117 = arith.mulf %116, %116 : vector<64x64xf32>
    %118 = arith.addf %111, %117 : vector<64x64xf32>
    %119 = vector.extract_strided_slice %8 {offsets = [1, 0, 2], sizes = [1, 64, 1], strides = [1, 1, 1]} : vector<2x64x3xf32> to vector<1x64x1xf32>
    %120 = vector.shape_cast %119 : vector<1x64x1xf32> to vector<64x1xf32>
    %121 = vector.broadcast %120 : vector<64x1xf32> to vector<64x64xf32>
    %122 = vector.broadcast %59 : vector<1x64xf32> to vector<64x64xf32>
    %123 = arith.subf %121, %122 : vector<64x64xf32>
    %124 = arith.mulf %123, %123 : vector<64x64xf32>
    %125 = arith.addf %118, %124 : vector<64x64xf32>
    %cst_23 = arith.constant dense<0x7F800000> : vector<64xf32>
    %126 = vector.multi_reduction <minimumf>, %125, %cst_23 [1] : vector<64x64xf32> to vector<64xf32>
    %127 = vector.shape_cast %126 : vector<64xf32> to vector<64x1xf32>
    %cst_24 = arith.constant 0.000000e+00 : f32
    %128 = vector.broadcast %cst_24 : f32 to vector<64x1xf32>
    %129 = arith.maximumf %127, %128 : vector<64x1xf32>
    %130 = math.sqrt %129 : vector<64x1xf32>
    %cst_25 = arith.constant 1.000000e+02 : f32
    %131 = vector.broadcast %cst_25 : f32 to vector<64x1xf32>
    %132 = arith.mulf %130, %131 : vector<64x1xf32>
    %cst_26 = arith.constant 2.000000e+00 : f32
    %133 = vector.broadcast %cst_26 : f32 to vector<64x1xf32>
    %134 = arith.mulf %133, %132 : vector<64x1xf32>
    %135 = arith.negf %134 : vector<64x1xf32>
    %136 = math.exp %135 : vector<64x1xf32>
    %cst_27 = arith.constant 1.000000e+00 : f32
    %137 = vector.broadcast %cst_27 : f32 to vector<64x1xf32>
    %138 = arith.addf %137, %136 : vector<64x1xf32>
    %139 = arith.divf %137, %138 : vector<64x1xf32>
    %cst_28 = arith.constant 5.000000e-01 : f32
    %140 = vector.broadcast %cst_28 : f32 to vector<64x1xf32>
    %141 = arith.subf %139, %140 : vector<64x1xf32>
    %cst_29 = arith.constant 2.000000e+00 : f32
    %142 = vector.broadcast %cst_29 : f32 to vector<64x1xf32>
    %143 = arith.mulf %142, %141 : vector<64x1xf32>
    %cst_30 = arith.constant 1.000000e+00 : f32
    %144 = vector.broadcast %cst_30 : f32 to vector<64x1xf32>
    %145 = arith.subf %144, %143 : vector<64x1xf32>
    %cst_31 = arith.constant dense<0x7F800000> : vector<64xf32>
    %146 = vector.multi_reduction <minimumf>, %125, %cst_31 [0] : vector<64x64xf32> to vector<64xf32>
    %147 = vector.shape_cast %146 : vector<64xf32> to vector<1x64xf32>
    %148 = arith.minimumf %105, %147 : vector<1x64xf32>
    %149 = vector.shape_cast %103 : vector<64x1xf32> to vector<1x64x1xf32>
    %150 = vector.shape_cast %145 : vector<64x1xf32> to vector<1x64x1xf32>
    %151 = tpu.concatenate %149, %150 in 0 : vector<1x64x1xf32>, vector<1x64x1xf32> -> vector<2x64x1xf32>
    %c0_32 = arith.constant 0 : index
    %c0_33 = arith.constant 0 : index
    %c0_34 = arith.constant 0 : index
    %c0_35 = arith.constant 0 : index
    %152 = vector.load %arg6[%c0_32, %c0_33, %c0_34, %c0_35] : memref<1x2x64x1xf32, #tpu.memory_space<vmem>>, vector<1x2x64x1xf32>
    %153 = vector.shape_cast %152 : vector<1x2x64x1xf32> to vector<2x64x1xf32>
    %154 = vector.shape_cast %151 : vector<2x64x1xf32> to vector<1x2x64x1xf32>
    tpu.vector_store %arg6[%c0_32, %c0_33, %c0_34, %c0_35], %154 {strides = array<i32>} : memref<1x2x64x1xf32, #tpu.memory_space<vmem>>, vector<1x2x64x1xf32>,
    %cst_36 = arith.constant 0.000000e+00 : f32
    %155 = vector.broadcast %cst_36 : f32 to vector<1x64xf32>
    %156 = arith.maximumf %148, %155 : vector<1x64xf32>
    %157 = math.sqrt %156 : vector<1x64xf32>
    %cst_37 = arith.constant 1.000000e+02 : f32
    %158 = vector.broadcast %cst_37 : f32 to vector<1x64xf32>
    %159 = arith.mulf %157, %158 : vector<1x64xf32>
    %cst_38 = arith.constant 2.000000e+00 : f32
    %160 = vector.broadcast %cst_38 : f32 to vector<1x64xf32>
    %161 = arith.mulf %160, %159 : vector<1x64xf32>
    %162 = arith.negf %161 : vector<1x64xf32>
    %163 = math.exp %162 : vector<1x64xf32>
    %cst_39 = arith.constant 1.000000e+00 : f32
    %164 = vector.broadcast %cst_39 : f32 to vector<1x64xf32>
    %165 = arith.addf %164, %163 : vector<1x64xf32>
    %166 = arith.divf %164, %165 : vector<1x64xf32>
    %cst_40 = arith.constant 5.000000e-01 : f32
    %167 = vector.broadcast %cst_40 : f32 to vector<1x64xf32>
    %168 = arith.subf %166, %167 : vector<1x64xf32>
    %cst_41 = arith.constant 2.000000e+00 : f32
    %169 = vector.broadcast %cst_41 : f32 to vector<1x64xf32>
    %170 = arith.mulf %169, %168 : vector<1x64xf32>
    %cst_42 = arith.constant 1.000000e+00 : f32
    %171 = vector.broadcast %cst_42 : f32 to vector<1x64xf32>
    %172 = arith.subf %171, %170 : vector<1x64xf32>
    %c0_43 = arith.constant 0 : index
    %c0_44 = arith.constant 0 : index
    %c0_45 = arith.constant 0 : index
    %173 = vector.load %arg7[%c0_43, %c0_44, %c0_45] : memref<1x1x64xf32, #tpu.memory_space<vmem>>, vector<1x1x64xf32>
    %174 = vector.shape_cast %173 : vector<1x1x64xf32> to vector<1x64xf32>
    %175 = vector.shape_cast %172 : vector<1x64xf32> to vector<1x1x64xf32>
    tpu.vector_store %arg7[%c0_43, %c0_44, %c0_45], %175 {strides = array<i32>} : memref<1x1x64xf32, #tpu.memory_space<vmem>>, vector<1x1x64xf32>,
    return
  }
  func.func @transform_0(%arg0: i32) -> (i32, i32, i32) {
    %c0_i32 = arith.constant 0 : i32
    %c0_i32_0 = arith.constant 0 : i32
    %c0_i32_1 = arith.constant 0 : i32
    return %arg0, %c0_i32, %c0_i32_0 : i32, i32, i32
  }
  func.func @transform_1(%arg0: i32) -> (i32, i32, i32) {
    %c0_i32 = arith.constant 0 : i32
    %c0_i32_0 = arith.constant 0 : i32
    %c0_i32_1 = arith.constant 0 : i32
    return %arg0, %c0_i32, %c0_i32_0 : i32, i32, i32
  }
  func.func @transform_2(%arg0: i32) -> (i32, i32) {
    %c0_i32 = arith.constant 0 : i32
    %c0_i32_0 = arith.constant 0 : i32
    %c0_i32_1 = arith.constant 0 : i32
    return %c0_i32, %c0_i32_0 : i32, i32
  }
  func.func @transform_3(%arg0: i32) -> (i32, i32, i32, i32) {
    %c0_i32 = arith.constant 0 : i32
    %c0_i32_0 = arith.constant 0 : i32
    %c0_i32_1 = arith.constant 0 : i32
    %c0_i32_2 = arith.constant 0 : i32
    return %arg0, %c0_i32, %c0_i32_0, %c0_i32_1 : i32, i32, i32, i32
  }
  func.func @transform_4(%arg0: i32) -> (i32, i32, i32) {
    %c0_i32 = arith.constant 0 : i32
    %c0_i32_0 = arith.constant 0 : i32
    %c0_i32_1 = arith.constant 0 : i32
    return %arg0, %c0_i32, %c0_i32_0 : i32, i32, i32
  }
  func.func @transform_5(%arg0: i32) -> (i32, i32, i32, i32) {
    %c0_i32 = arith.constant 0 : i32
    %c0_i32_0 = arith.constant 0 : i32
    %c0_i32_1 = arith.constant 0 : i32
    %c0_i32_2 = arith.constant 0 : i32
    return %arg0, %c0_i32, %c0_i32_0, %c0_i32_1 : i32, i32, i32, i32
  }
  func.func @transform_6(%arg0: i32) -> (i32, i32, i32) {
    %c0_i32 = arith.constant 0 : i32
    %c0_i32_0 = arith.constant 0 : i32
    %c0_i32_1 = arith.constant 0 : i32
    return %arg0, %c0_i32, %c0_i32_0 : i32, i32, i32
  }
}

module attributes {stable_mosaic.version = 11 : i64} {
  func.func @_ia_kernel(%arg0: memref<2x772xf32, #tpu.memory_space<vmem>>, %arg1: memref<772x32xf32, #tpu.memory_space<vmem>>, %arg2: memref<1x32xf32, #tpu.memory_space<vmem>>, %arg3: memref<32x6xf32, #tpu.memory_space<vmem>>, %arg4: memref<1x6xf32, #tpu.memory_space<vmem>>, %arg5: memref<1x6xf32, #tpu.memory_space<vmem>>) attributes {dimension_semantics = [], scalar_prefetch = 0 : i64, scratch_operands = 0 : i64, tpu.core_type = #tpu.core_type<tc>} {
    %c0 = arith.constant 0 : index
    %c0_0 = arith.constant 0 : index
    %0 = vector.load %arg0[%c0, %c0_0] : memref<2x772xf32, #tpu.memory_space<vmem>>, vector<2x772xf32>
    %c0_1 = arith.constant 0 : index
    %c0_2 = arith.constant 0 : index
    %1 = vector.load %arg1[%c0_1, %c0_2] : memref<772x32xf32, #tpu.memory_space<vmem>>, vector<772x32xf32>
    %cst = arith.constant dense<0.000000e+00> : vector<2x32xf32>
    %2 = tpu.matmul %0, %1, %cst {dimension_numbers = #tpu.dot_dimension_numbers<[1], [0], [0], [1], [0, 0, 1, 1], [], []>} : vector<2x772xf32>, vector<772x32xf32>, vector<2x32xf32> -> vector<2x32xf32>
    %c0_3 = arith.constant 0 : index
    %c0_4 = arith.constant 0 : index
    %3 = vector.load %arg2[%c0_3, %c0_4] : memref<1x32xf32, #tpu.memory_space<vmem>>, vector<1x32xf32>
    %4 = vector.broadcast %3 : vector<1x32xf32> to vector<2x32xf32>
    %5 = arith.addf %2, %4 : vector<2x32xf32>
    %6 = math.tanh %5 : vector<2x32xf32>
    %c0_5 = arith.constant 0 : index
    %c0_6 = arith.constant 0 : index
    %7 = vector.load %arg3[%c0_5, %c0_6] : memref<32x6xf32, #tpu.memory_space<vmem>>, vector<32x6xf32>
    %cst_7 = arith.constant dense<0.000000e+00> : vector<2x6xf32>
    %8 = tpu.matmul %6, %7, %cst_7 {dimension_numbers = #tpu.dot_dimension_numbers<[1], [0], [0], [1], [0, 0, 1, 1], [], []>} : vector<2x32xf32>, vector<32x6xf32>, vector<2x6xf32> -> vector<2x6xf32>
    %c0_8 = arith.constant 0 : index
    %c0_9 = arith.constant 0 : index
    %9 = vector.load %arg4[%c0_8, %c0_9] : memref<1x6xf32, #tpu.memory_space<vmem>>, vector<1x6xf32>
    %10 = vector.broadcast %9 : vector<1x6xf32> to vector<2x6xf32>
    %11 = arith.addf %8, %10 : vector<2x6xf32>
    %cst_10 = arith.constant dense<0.000000e+00> : vector<6xf32>
    %12 = vector.multi_reduction <add>, %11, %cst_10 [0] : vector<2x6xf32> to vector<6xf32>
    %13 = vector.shape_cast %12 : vector<6xf32> to vector<1x6xf32>
    %cst_11 = arith.constant 2.000000e+00 : f32
    %14 = vector.broadcast %cst_11 : f32 to vector<1x6xf32>
    %15 = arith.divf %13, %14 : vector<1x6xf32>
    %c0_12 = arith.constant 0 : index
    %c0_13 = arith.constant 0 : index
    %16 = vector.load %arg5[%c0_12, %c0_13] : memref<1x6xf32, #tpu.memory_space<vmem>>, vector<1x6xf32>
    tpu.vector_store %arg5[%c0_12, %c0_13], %15 {strides = array<i32>} : memref<1x6xf32, #tpu.memory_space<vmem>>, vector<1x6xf32>,
    return
  }
}

</mosaic_0001>

<bundles_post_ra>
// kernel: custom-call.58
= control target key start
LH: loop header
LB: loop body
LE: loop exit
PB: predicated region body
PF: predicated region fallthrough
CT: control target
= control target key end

     0   :  { %s6_s0 = inlined_call_operand.hbm [shape: pred[2], index: 0, kind: output, shape index: {}]  }

// kernel: h2otr_forward.5
= control target key start
LH: loop header
LB: loop body
LE: loop exit
PB: predicated region body
PF: predicated region fallthrough
CT: control target
= control target key end

     0   :  { %v1270_v43 = vmov 1983009808   ;;  %v131_v45 = vlaneseq  ;;  %vm1273_vm0 = vmmov 0   ;;  %vm454_vm1 = vcmask 261120   ;;  %s1759_s1 = inlined_call_operand.vmem [shape: f32[768,32], index: 1, kind: input, shape index: {}]   ;;  %s1760_s0 = inlined_call_operand.vmem [shape: f32[2,768], index: 0, kind: input, shape index: {}]   ;;  %s1761_s3 = inlined_call_operand.vmem [shape: f32[32,1152], index: 3, kind: input, shape index: {}]   ;;  %s1762_s2 = inlined_call_operand.vmem [shape: f32[1,32], index: 2, kind: input, shape index: {}]   ;;  %s1763_s4 = inlined_call_operand.vmem [shape: f32[1,1152], index: 4, kind: input, shape index: {}]   ;;  %s1764_s5 = inlined_call_operand.vmem [shape: f32[2,1152], index: 5, kind: output, shape index: {}]  }
   0x1   :  { %v38_v0 = vld [vmem:[%s1759_s1 + $0x80] sm:$0xff]  ;;  %v39_v1 = vld [vmem:[%s1759_s1 + $0x88] sm:$0xff]  ;;  %v40_v11 = vld [vmem:[%s1759_s1 + $0x90] sm:$0xff]  ;;  %v129_v44 = vunpack.c.l.s4 %v1270_v43 }
   0x2   :  { %v22_v2 = vld [vmem:[%s1759_s1] sm:$0xff]  ;;  %v1093_v3 = vpack.c.bf16 %v39_v1, %v38_v0  ;;  %v23_v4 = vld [vmem:[%s1759_s1 + $0x8] sm:$0xff]  ;;  %v41_v13 = vld [vmem:[%s1759_s1 + $0x98] sm:$0xff]  ;;  %v1422_v60 = vshrl.u32 %v131_v45, 7 }
   0x3   :  { %v70_v5 = vld [vmem:[%s1759_s1 + $0x180] sm:$0xff]  ;;  %v71_v6 = vld [vmem:[%s1759_s1 + $0x188] sm:$0xff]  ;;  %v1095_v7 = vpack.c.bf16 %v23_v4, %v22_v2  ;;  %v24_v14 = vld [vmem:[%s1759_s1 + $0x10] sm:$0xff]  ;;  %v1097_v16 = vpack.c.bf16 %v41_v13, %v40_v11  ;;  %v130_v59 = vunpack.c.0.s8 %v129_v44 }
   0x4   :  { %v1125_v8 = vpack.c.bf16 %v71_v6, %v70_v5  ;;  %v54_v9 = vld [vmem:[%s1759_s1 + $0x100] sm:$0xff]  ;;  %v55_v10 = vld [vmem:[%s1759_s1 + $0x108] sm:$0xff]  ;;  %1094 = vmatprep.subr.bf16.mxu0 %v1093_v3  ;;  %v25_v15 = vld [vmem:[%s1759_s1 + $0x18] sm:$0xff] }
   0x5   :  { %v1127_v12 = vpack.c.bf16 %v55_v10, %v54_v9  ;;  %1096 = vmatpush3.bf16.msra.mxu0 %v1095_v7  ;;  %v1099_v17 = vpack.c.bf16 %v25_v15, %v24_v14  ;;  %v72_v18 = vld [vmem:[%s1759_s1 + $0x190] sm:$0xff]  ;;  %v73_v19 = vld [vmem:[%s1759_s1 + $0x198] sm:$0xff]  ;;  %v42_v23 = vld [vmem:[%s1759_s1 + $0xa0] sm:$0xff]  ;;  %v1452_v10 = vsub.s32 %v130_v59, %v1422_v60 }
   0x6   :  { %1126 = vmatprep.subr.bf16.mxu1 %v1125_v8  ;;  %v56_v20 = vld [vmem:[%s1759_s1 + $0x110] sm:$0xff]  ;;  %v1129_v21 = vpack.c.bf16 %v73_v19, %v72_v18  ;;  %v57_v22 = vld [vmem:[%s1759_s1 + $0x118] sm:$0xff]  ;;  %v43_v24 = vld [vmem:[%s1759_s1 + $0xa8] sm:$0xff]  ;;  %1098 = vmatprep.subr.bf16.mxu0 %v1097_v16 }
   0x7   :  { %1128 = vmatpush3.bf16.msra.mxu1 %v1127_v12  ;;  %v1131_v25 = vpack.c.bf16 %v57_v22, %v56_v20  ;;  %v1101_v26 = vpack.c.bf16 %v43_v24, %v42_v23  ;;  %v26_v27 = vld [vmem:[%s1759_s1 + $0x20] sm:$0xff]  ;;  %v27_v28 = vld [vmem:[%s1759_s1 + $0x28] sm:$0xff]  ;;  %v44_v35 = vld [vmem:[%s1759_s1 + $0xb0] sm:$0xff] }
   0x8   :  { %v74_v29 = vld [vmem:[%s1759_s1 + $0x1a0] sm:$0xff]  ;;  %1130 = vmatprep.subr.bf16.mxu1 %v1129_v21  ;;  %v75_v30 = vld [vmem:[%s1759_s1 + $0x1a8] sm:$0xff]  ;;  %v1103_v33 = vpack.c.bf16 %v27_v28, %v26_v27  ;;  %v45_v36 = vld [vmem:[%s1759_s1 + $0xb8] sm:$0xff] }
   0x9   :  { %v58_v31 = vld [vmem:[%s1759_s1 + $0x120] sm:$0xff]  ;;  %v59_v32 = vld [vmem:[%s1759_s1 + $0x128] sm:$0xff]  ;;  %1100 = vmatpush3.bf16.msra.mxu0 %v1099_v17  ;;  %v1133_v34 = vpack.c.bf16 %v75_v30, %v74_v29  ;;  %v28_v37 = vld [vmem:[%s1759_s1 + $0x30] sm:$0xff]  ;;  %v1105_v39 = vpack.c.bf16 %v45_v36, %v44_v35 }
   0xa   :  { %1102 = vmatprep.subr.bf16.mxu0 %v1101_v26  ;;  %v1135_v38 = vpack.c.bf16 %v59_v32, %v58_v31  ;;  %v29_v40 = vld [vmem:[%s1759_s1 + $0x38] sm:$0xff]  ;;  %v76_v41 = vld [vmem:[%s1759_s1 + $0x1b0] sm:$0xff]  ;;  %v46_v49 = vld [vmem:[%s1759_s1 + $0xc0] sm:$0xff] }
   0xb   :  { %1132 = vmatpush3.bf16.msra.mxu1 %v1131_v25  ;;  %v77_v42 = vld [vmem:[%s1759_s1 + $0x1b8] sm:$0xff]  ;;  %v60_v47 = vld [vmem:[%s1759_s1 + $0x130] sm:$0xff]  ;;  %v47_v50 = vld [vmem:[%s1759_s1 + $0xc8] sm:$0xff]  ;;  %v1107_v51 = vpack.c.bf16 %v29_v40, %v28_v37 }
   0xc   :  { %1134 = vmatprep.subr.bf16.mxu1 %v1133_v34  ;;  %v1137_v46 = vpack.c.bf16 %v77_v42, %v76_v41  ;;  %v61_v48 = vld [vmem:[%s1759_s1 + $0x138] sm:$0xff]  ;;  %v78_v52 = vld [vmem:[%s1759_s1 + $0x1c0] sm:$0xff]  ;;  %v79_v53 = vld [vmem:[%s1759_s1 + $0x1c8] sm:$0xff]  ;;  %v1109_v55 = vpack.c.bf16 %v47_v50, %v46_v49 }
   0xd   :  { %1104 = vmatpush3.bf16.msra.mxu0 %v1103_v33  ;;  %v1139_v54 = vpack.c.bf16 %v61_v48, %v60_v47  ;;  %v30_v56 = vld [vmem:[%s1759_s1 + $0x40] sm:$0xff]  ;;  %v31_v57 = vld [vmem:[%s1759_s1 + $0x48] sm:$0xff]  ;;  %v1141_v61 = vpack.c.bf16 %v79_v53, %v78_v52  ;;  %v48_v63 = vld [vmem:[%s1759_s1 + $0xd0] sm:$0xff] }
   0xe   :  { %1106 = vmatprep.subr.bf16.mxu0 %v1105_v39  ;;  %v62_v58 = vld [vmem:[%s1759_s1 + $0x140] sm:$0xff]  ;;  %v63_v62 = vld [vmem:[%s1759_s1 + $0x148] sm:$0xff]  ;;  %v49_v0 = vld [vmem:[%s1759_s1 + $0xd8] sm:$0xff]  ;;  %v1111_v3 = vpack.c.bf16 %v31_v57, %v30_v56 }
   0xf   :  { %1136 = vmatpush3.bf16.msra.mxu1 %v1135_v38  ;;  %v80_v1 = vld [vmem:[%s1759_s1 + $0x1d0] sm:$0xff]  ;;  %v81_v2 = vld [vmem:[%s1759_s1 + $0x1d8] sm:$0xff]  ;;  %v1143_v5 = vpack.c.bf16 %v63_v62, %v62_v58  ;;  %v1113_v6 = vpack.c.bf16 %v49_v0, %v48_v63  ;;  %v50_v12 = vld [vmem:[%s1759_s1 + $0xe0] sm:$0xff] }
  0x10   :  { %1138 = vmatprep.subr.bf16.mxu1 %v1137_v46  ;;  %v32_v4 = vld [vmem:[%s1759_s1 + $0x50] sm:$0xff]  ;;  %v33_v7 = vld [vmem:[%s1759_s1 + $0x58] sm:$0xff]  ;;  %v1145_v11 = vpack.c.bf16 %v81_v2, %v80_v1  ;;  %v51_v13 = vld [vmem:[%s1759_s1 + $0xe8] sm:$0xff] }
  0x11   :  { %1108 = vmatpush3.bf16.msra.mxu0 %v1107_v51  ;;  %v64_v8 = vld [vmem:[%s1759_s1 + $0x150] sm:$0xff]  ;;  %v65_v9 = vld [vmem:[%s1759_s1 + $0x158] sm:$0xff]  ;;  %v82_v14 = vld [vmem:[%s1759_s1 + $0x1e0] sm:$0xff]  ;;  %v1115_v16 = vpack.c.bf16 %v33_v7, %v32_v4  ;;  %v1117_v19 = vpack.c.bf16 %v51_v13, %v50_v12 }
  0x12   :  { %1110 = vmatprep.subr.bf16.mxu0 %v1109_v55  ;;  %v83_v15 = vld [vmem:[%s1759_s1 + $0x1e8] sm:$0xff]  ;;  %v1147_v17 = vpack.c.bf16 %v65_v9, %v64_v8  ;;  %v20_v18 = vld [vmem:[%s1760_s0] sm:$0xff]  ;;  %v52_v27 = vld [vmem:[%s1759_s1 + $0xf0] sm:$0xff] }
  0x13   :  { %1140 = vmatpush3.bf16.msra.mxu1 %v1139_v54  ;;  %v34_v20 = vld [vmem:[%s1759_s1 + $0x60] sm:$0xff]  ;;  %v35_v21 = vld [vmem:[%s1759_s1 + $0x68] sm:$0xff]  ;;  %v134_v23 = vrot.slane %v20_v18, %v1452_v10  ;;  %v127_v24 = vcombine.high %v20_v18, %v20_v18  ;;  %v1149_v25 = vpack.c.bf16 %v83_v15, %v82_v14  ;;  %v53_v28 = vld [vmem:[%s1759_s1 + $0xf8] sm:$0xff] }
  0x14   :  { %1142 = vmatprep.subr.bf16.mxu1 %v1141_v61  ;;  %v66_v22 = vld [vmem:[%s1759_s1 + $0x160] sm:$0xff]  ;;  %v67_v26 = vld [vmem:[%s1759_s1 + $0x168] sm:$0xff]  ;;  %v84_v29 = vld [vmem:[%s1759_s1 + $0x1f0] sm:$0xff]  ;;  %v1119_v33 = vpack.c.bf16 %v35_v21, %v34_v20  ;;  %v1121_v35 = vpack.c.bf16 %v53_v28, %v52_v27 }
  0x15   :  { %1112 = vmatpush3.bf16.msra.mxu0 %v1111_v3  ;;  %v85_v30 = vld [vmem:[%s1759_s1 + $0x1f8] sm:$0xff]  ;;  %v142_v31 = vcombine.high %v134_v23, %v134_v23  ;;  %v141_v32 = vrot.slane %v127_v24, %v1452_v10  ;;  %v1151_v34 = vpack.c.bf16 %v67_v26, %v66_v22  ;;  %v36_v36 = vld [vmem:[%s1759_s1 + $0x70] sm:$0xff]  ;;  %v102_v42 = vld [vmem:[%s1759_s1 + $0x280] sm:$0xff] }
  0x16   :  { %1114 = vmatprep.subr.bf16.mxu0 %v1113_v6  ;;  %v37_v37 = vld [vmem:[%s1759_s1 + $0x78] sm:$0xff]  ;;  %v68_v38 = vld [vmem:[%s1759_s1 + $0x170] sm:$0xff]  ;;  %v1153_v40 = vpack.c.bf16 %v85_v30, %v84_v29  ;;  %v103_v43 = vld [vmem:[%s1759_s1 + $0x288] sm:$0xff] }
  0x17   :  { %1144 = vmatpush3.bf16.msra.mxu1 %v1143_v5  ;;  %v143_v39 = vcombine.high %v141_v32, %v141_v32  ;;  %222 = vmatprep.mubr.f32.mxu0 %v142_v31  ;;  %v69_v41 = vld [vmem:[%s1759_s1 + $0x178] sm:$0xff]  ;;  %v1123_v44 = vpack.c.bf16 %v37_v37, %v36_v36  ;;  %v1157_v47 = vpack.c.bf16 %v103_v43, %v102_v42  ;;  %v86_v48 = vld [vmem:[%s1759_s1 + $0x200] sm:$0xff]  ;;  %v87_v49 = vld [vmem:[%s1759_s1 + $0x208] sm:$0xff] }
  0x18   :  { %1146 = vmatprep.subr.bf16.mxu1 %v1145_v11  ;;  %v1155_v46 = vpack.c.bf16 %v69_v41, %v68_v38  ;;  %v104_v50 = vld [vmem:[%s1759_s1 + $0x290] sm:$0xff]  ;;  %v105_v51 = vld [vmem:[%s1759_s1 + $0x298] sm:$0xff]  ;;  %v1159_v52 = vpack.c.bf16 %v87_v49, %v86_v48  ;;  %v955_v53 = vld.sshfl [vmem:[%s1760_s0 + $0x8] sm:$0x33 pattern:$0x76325410] }
  0x19   :  { %1116 = vmatpush3.bf16.msra.mxu0 %v1115_v16  ;;  %292 = vmatprep.mubr.f32.mxu1 %v143_v39  ;;  %v1161_v54 = vpack.c.bf16 %v105_v51, %v104_v50  ;;  %v88_v55 = vld [vmem:[%s1759_s1 + $0x210] sm:$0xff]  ;;  %v89_v56 = vld [vmem:[%s1759_s1 + $0x218] sm:$0xff]  ;;  %v151_v57 = vcombine.high %v955_v53, %v955_v53  ;;  %v106_v58 = vld [vmem:[%s1759_s1 + $0x2a0] sm:$0xff] }
  0x1a   :  { %1118 = vmatprep.subr.bf16.mxu0 %v1117_v19  ;;  %v107_v59 = vld [vmem:[%s1759_s1 + $0x2a8] sm:$0xff]  ;;  %v1163_v61 = vpack.c.bf16 %v89_v56, %v88_v55  ;;  %v90_v63 = vld [vmem:[%s1759_s1 + $0x220] sm:$0xff]  ;;  %v108_v1 = vld [vmem:[%s1759_s1 + $0x2b0] sm:$0xff] }
  0x1b   :  { %1148 = vmatpush3.bf16.msra.mxu1 %v1147_v17  ;;  %v1165_v62 = vpack.c.bf16 %v107_v59, %v106_v58  ;;  %v91_v0 = vld [vmem:[%s1759_s1 + $0x228] sm:$0xff]  ;;  %v109_v2 = vld [vmem:[%s1759_s1 + $0x2b8] sm:$0xff]  ;;  %v92_v5 = vld [vmem:[%s1759_s1 + $0x230] sm:$0xff] }
  0x1c   :  { %1150 = vmatprep.subr.bf16.mxu1 %v1149_v25  ;;  %v1167_v3 = vpack.c.bf16 %v91_v0, %v90_v63  ;;  %v1169_v4 = vpack.c.bf16 %v109_v2, %v108_v1  ;;  %v93_v6 = vld [vmem:[%s1759_s1 + $0x238] sm:$0xff]  ;;  %v110_v7 = vld [vmem:[%s1759_s1 + $0x2c0] sm:$0xff]  ;;  %v111_v8 = vld [vmem:[%s1759_s1 + $0x2c8] sm:$0xff] }
  0x1d   :  { %1120 = vmatpush3.bf16.msra.mxu0 %v1119_v33  ;;  %v1171_v9 = vpack.c.bf16 %v93_v6, %v92_v5  ;;  %v1173_v11 = vpack.c.bf16 %v111_v8, %v110_v7  ;;  %v94_v12 = vld [vmem:[%s1759_s1 + $0x240] sm:$0xff]  ;;  %v95_v13 = vld [vmem:[%s1759_s1 + $0x248] sm:$0xff]  ;;  %v112_v14 = vld [vmem:[%s1759_s1 + $0x2d0] sm:$0xff] }
  0x1e   :  { %1122 = vmatprep.subr.bf16.mxu0 %v1121_v35  ;;  %v113_v15 = vld [vmem:[%s1759_s1 + $0x2d8] sm:$0xff]  ;;  %v1175_v16 = vpack.c.bf16 %v95_v13, %v94_v12  ;;  %v96_v18 = vld [vmem:[%s1759_s1 + $0x250] sm:$0xff]  ;;  %v114_v20 = vld [vmem:[%s1759_s1 + $0x2e0] sm:$0xff] }
  0x1f   :  { %1152 = vmatpush3.bf16.msra.mxu1 %v1151_v34  ;;  %v1177_v17 = vpack.c.bf16 %v113_v15, %v112_v14  ;;  %v97_v19 = vld [vmem:[%s1759_s1 + $0x258] sm:$0xff]  ;;  %v115_v21 = vld [vmem:[%s1759_s1 + $0x2e8] sm:$0xff]  ;;  %v98_v24 = vld [vmem:[%s1759_s1 + $0x260] sm:$0xff] }
  0x20   :  { %1154 = vmatprep.subr.bf16.mxu1 %v1153_v40  ;;  %v1179_v22 = vpack.c.bf16 %v97_v19, %v96_v18  ;;  %v99_v25 = vld [vmem:[%s1759_s1 + $0x268] sm:$0xff]  ;;  %v116_v26 = vld [vmem:[%s1759_s1 + $0x2f0] sm:$0xff]  ;;  %v117_v27 = vld [vmem:[%s1759_s1 + $0x2f8] sm:$0xff]  ;;  %v1271_v40 = vmov 0.0|0.0  }
  0x21   :  { %1124 = vmatpush3.bf16.msra.mxu0 %v1123_v44  ;;  %v1183_v28 = vpack.c.bf16 %v99_v25, %v98_v24  ;;  %v1185_v29 = vpack.c.bf16 %v117_v27, %v116_v26  ;;  %v100_v30 = vld [vmem:[%s1759_s1 + $0x270] sm:$0xff]  ;;  %v101_v31 = vld [vmem:[%s1759_s1 + $0x278] sm:$0xff]  ;;  %v370_v33 = vld [vmem:[%s1761_s3 + $0x8] sm:$0xff]  ;;  %v1272_v44 = vmov 0.0  }
  0x22   :  { %1158 = vmatprep.subr.bf16.mxu0 %v1157_v47  ;;  %v379_v34 = vld [vmem:[%s1761_s3 + $0x50] sm:$0xff]  ;;  %v369_v36 = vld [vmem:[%s1761_s3] sm:$0xff]  ;;  %v378_v37 = vld [vmem:[%s1761_s3 + $0x48] sm:$0xff] }
  0x23   :  { %1156 = vmatpush3.bf16.msra.mxu1 %v1155_v46  ;;  %v1189_v35 = vpack.c.bf16 %v379_v34, %v370_v33  ;;  %v377_v38 = vld [vmem:[%s1761_s3 + $0x40] sm:$0xff]  ;;  %v1191_v39 = vpack.c.bf16 %v378_v37, %v369_v36  ;;  %v386_v41 = vld [vmem:[%s1761_s3 + $0x88] sm:$0xff]  ;;  %v388_v42 = vld [vmem:[%s1761_s3 + $0x98] sm:$0xff] }
  0x24   :  { %223 = vmatmul.mubr.f32.vlgmr.msra.gmra.mrb[0].mxu0 %v134_v23  ;;  %v1181_v23 = vpack.c.bf16 %v115_v21, %v114_v20  ;;  %v397_v43 = vld [vmem:[%s1761_s3 + $0xe0] sm:$0xff]  ;;  %v1222_v46 = vpack.c.bf16 %v386_v41, %v377_v38  ;;  %v387_v48 = vld [vmem:[%s1761_s3 + $0x90] sm:$0xff]  ;;  %v396_v49 = vld [vmem:[%s1761_s3 + $0xd8] sm:$0xff] }
  0x25   :  { %1160 = vmatpush3.bf16.msra.mxu0 %v1159_v52  ;;  %362 = vmatprep.mubr.f32.mxu0 %v151_v57  ;;  %v1193_v47 = vpack.c.bf16 %v397_v43, %v388_v42  ;;  %v395_v50 = vld [vmem:[%s1761_s3 + $0xd0] sm:$0xff]  ;;  %v1195_v51 = vpack.c.bf16 %v396_v49, %v387_v48  ;;  %v404_v52 = vld [vmem:[%s1761_s3 + $0x118] sm:$0xff]  ;;  %v954_v58 = vld [vmem:[%s1762_s2] ss:$0 sm:$0xff]  ;;  %v411_v42 = vsub.s32 0, %v1422_v60 }
  0x26   :  { %293 = vmatmul.mubr.f32.vlgmr.msra.gmra.mrb[0].mxu1 %v141_v32  ;;  %1162 = vmatprep.subr.bf16.mxu0 %v1161_v54  ;;  %v1187_v32 = vpack.c.bf16 %v101_v31, %v100_v30  ;;  %v381_v54 = vld [vmem:[%s1761_s3 + $0x60] sm:$0xff]  ;;  %v1225_v55 = vpack.c.bf16 %v404_v52, %v395_v50  ;;  %v371_v7 = vld [vmem:[%s1761_s3 + $0x10] sm:$0xff]  ;;  %v380_v8 = vld [vmem:[%s1761_s3 + $0x58] sm:$0xff] }
  0x27   :  { %522 = vmatprep.mubr.f32.mxu1 %v1272_v44  ;;  %1190 = vmatprep.subr.bf16.mxu1 %v1189_v35  ;;  %v1199_v12 = vpack.c.bf16 %v380_v8, %v371_v7  ;;  %v389_v14 = vld [vmem:[%s1761_s3 + $0xa0] sm:$0xff]  ;;  %v398_v15 = vld [vmem:[%s1761_s3 + $0xe8] sm:$0xff]  ;;  %v383_v18 = vld [vmem:[%s1761_s3 + $0x70] sm:$0xff] }
  0x28   :  { %1192 = vmatpush1.bf16.msra.mxu1 %v1191_v39  ;;  %v1203_v19 = vpack.c.bf16 %v398_v15, %v389_v14  ;;  %v373_v21 = vld [vmem:[%s1761_s3 + $0x20] sm:$0xff]  ;;  %v391_v27 = vld [vmem:[%s1761_s3 + $0xb0] sm:$0xff]  ;;  %v384_v34 = vld [vmem:[%s1761_s3 + $0x78] sm:$0xff] }
  0x29   :  { %1164 = vmatpush3.bf16.msra.mxu0 %v1163_v61  ;;  %1194 = vmatprep.subr.bf16.mxu1 %v1193_v47  ;;  %v401_v24 = vld [vmem:[%s1761_s3 + $0x100] sm:$0xff]  ;;  %v375_v33 = vld [vmem:[%s1761_s3 + $0x30] sm:$0xff]  ;;  %v394_v35 = vld [vmem:[%s1761_s3 + $0xc8] sm:$0xff] }
  0x2a   :  { %1166 = vmatprep.subr.bf16.mxu0 %v1165_v62  ;;  %v385_v30 = vld [vmem:[%s1761_s3 + $0x80] sm:$0xff]  ;;  %v403_v36 = vld [vmem:[%s1761_s3 + $0x110] sm:$0xff]  ;;  %v1215_v37 = vpack.c.bf16 %v384_v34, %v375_v33  ;;  %v956_v48 = vld [vmem:[%s1763_s4 + $0x8] ss:$0 sm:$0xff] }
  0x2b   :  { %v1217_v38 = vpack.c.bf16 %v403_v36, %v394_v35  ;;  %v393_v39 = vld [vmem:[%s1761_s3 + $0xc0] sm:$0xff] }
  0x2c   :  { %1196 = vmatpush1.bf16.msra.mxu1 %v1195_v51  ;;  %v405_v43 = vld [vmem:[%s1763_s4] sm:$0xff] }
  0x2d   :  { %1168 = vmatpush3.bf16.msra.mxu0 %v1167_v3  ;;  %v412_v47 = vrot.slane %v405_v43, %v411_v42 }
  0x2e   :  { %1170 = vmatprep.subr.bf16.mxu0 %v1169_v4 }
  0x31   :  { %1172 = vmatpush3.bf16.msra.mxu0 %v1171_v9  ;;  %v390_v9 = vld [vmem:[%s1761_s3 + $0xa8] sm:$0xff] }
  0x32   :  { %1174 = vmatprep.subr.bf16.mxu0 %v1173_v11  ;;  %v399_v11 = vld [vmem:[%s1761_s3 + $0xf0] sm:$0xff] }
  0x33   :  { %v1201_v13 = vpack.c.bf16 %v399_v11, %v390_v9 }
  0x35   :  { %1176 = vmatpush3.bf16.msra.mxu0 %v1175_v16 }
  0x36   :  { %1178 = vmatprep.subr.bf16.mxu0 %v1177_v17  ;;  %v374_v17 = vld [vmem:[%s1761_s3 + $0x28] sm:$0xff] }
  0x37   :  { %v1205_v20 = vpack.c.bf16 %v383_v18, %v374_v17 }
  0x39   :  { %1180 = vmatpush3.bf16.msra.mxu0 %v1179_v22  ;;  %v382_v22 = vld [vmem:[%s1761_s3 + $0x68] sm:$0xff] }
  0x3a   :  { %1182 = vmatprep.subr.bf16.mxu0 %v1181_v23  ;;  %v392_v23 = vld [vmem:[%s1761_s3 + $0xb8] sm:$0xff]  ;;  %v1207_v25 = vpack.c.bf16 %v382_v22, %v373_v21  ;;  %v439_v22 = vsub.s32 7, %v1422_v60 }
  0x3b   :  { %v1209_v26 = vpack.c.bf16 %v401_v24, %v392_v23 }
  0x3d   :  { %1184 = vmatpush3.bf16.msra.mxu0 %v1183_v28  ;;  %v400_v28 = vld [vmem:[%s1761_s3 + $0xf8] sm:$0xff] }
  0x3e   :  { %1186 = vmatprep.subr.bf16.mxu0 %v1185_v29  ;;  %v376_v29 = vld [vmem:[%s1761_s3 + $0x38] sm:$0xff]  ;;  %v1211_v31 = vpack.c.bf16 %v400_v28, %v391_v27  ;;  %v440_v27 = vrot.slane %v405_v43, %v439_v22 }
  0x41   :  { %1188 = vmatpush3.bf16.msra.mxu0 %v1187_v32  ;;  %v1213_v32 = vpack.c.bf16 %v385_v30, %v376_v29 }
  0x42   :  { %1221 = vmatprep.subr.bf16.mxu0 %v1271_v40 }
  0x44   :  { %363 = vmatmul.mubr.f32.vlgmr.msra.gmra.mrb[2].mxu0 %v955_v53  ;;  %v372_v53 = vld [vmem:[%s1761_s3 + $0x18] sm:$0xff] }
  0x45   :  { %1090 = vmatprep.mubr.msk.f32.mxu0 %vm1273_vm0, %v1272_v44  ;;  %1223 = vmatpush3.bf16.msra.mxu0 %v1222_v46  ;;  %v1197_v56 = vpack.c.bf16 %v381_v54, %v372_v53  ;;  %v415_v46 = vsub.s32 1, %v1422_v60 }
  0x46   :  { %1224 = vmatprep.subr.bf16.mxu0 %v1271_v40  ;;  %v402_v40 = vld [vmem:[%s1761_s3 + $0x108] sm:$0xff] }
  0x47   :  { %1198 = vmatprep.subr.bf16.mxu1 %v1197_v56  ;;  %v1219_v41 = vpack.c.bf16 %v402_v40, %v393_v39  ;;  %v416_v49 = vrot.slane %v405_v43, %v415_v46 }
  0x49   :  { %1226 = vmatpush3.bf16.msra.mxu0 %v1225_v55  ;;  %v419_v55 = vsub.s32 2, %v1422_v60 }
  0xf7   :  { %v1004_v57 = vpop.f32.mrb[0].mxu0 }
  0xf8   :  { %v1005_v59 = vpop.f32.mrb[1].mxu0 }
  0xf9   :  { %v1039_v61 = vpop.f32.mrb[0].mxu1  ;;  %v1006_v62 = vadd.f32 %v1005_v59, %v1004_v57  ;;  %v423_v57 = vsub.s32 3, %v1422_v60 }
  0xfa   :  { %v1040_v63 = vpop.f32.mrb[1].mxu1 }
  0xfb   :  { %v1041_v0 = vadd.f32 %v1040_v63, %v1039_v61  ;;  %v225_v1 = vadd.f32 %v1006_v62, %v954_v58  ;;  %v420_v62 = vrot.slane %v405_v43, %v419_v55  ;;  %v424_v63 = vrot.slane %v405_v43, %v423_v57 }
  0xfd   :  { %v295_v2 = vadd.f32 %v1041_v0, %v225_v1 }
 0x117   :  { %v1074_v3 = vpop.f32.mrb[2].mxu0 }
 0x118   :  { %v1075_v4 = vpop.f32.mrb[3].mxu0 }
 0x119   :  { %v1076_v5 = vadd.f32 %v1075_v4, %v1074_v3  ;;  %v427_v3 = vsub.s32 4, %v1422_v60 }
 0x11b   :  { %v365_v6 = vadd.f32 %v1076_v5, %v295_v2  ;;  %v431_v5 = vsub.s32 5, %v1422_v60  ;;  %v428_v8 = vrot.slane %v405_v43, %v427_v3 }
 0x11d   :  { %1232 = vtanh.f32 %v365_v6  ;;  %v432_v9 = vrot.slane %v405_v43, %v431_v5 }
 0x127   :  { %v1233_v16 = vpop.eup %1232 }
 0x128   :  { %957 = vmatmul.mubr.msk.f32.vlgmr.msra.gmra.mrb[2].mxu1 %vm454_vm1, %v1233_v16  ;;  %1091 = vmatmul.mubr.msk.f32.vlgmr.msra.gmra.mrb[4].mxu0 %vm454_vm1, %v1233_v16 }
 0x129   :  { %1200 = vmatpush1.bf16.msra.mxu1 %v1199_v12  ;;  %593 = vmatprep.mubr.f32.mxu1 %v1272_v44 }
 0x12a   :  { %1202 = vmatprep.subr.bf16.mxu1 %v1201_v13 }
 0x12d   :  { %1204 = vmatpush1.bf16.msra.mxu1 %v1203_v19  ;;  %v435_v19 = vsub.s32 6, %v1422_v60 }
 0x12e   :  { %1206 = vmatprep.subr.bf16.mxu1 %v1205_v20 }
 0x130   :  { %958 = vmatmul.mubr.msk.f32.vlgmr.msra.gmra.mrb[4].mxu1 %vm454_vm1, %v1233_v16 }
 0x131   :  { %1208 = vmatpush1.bf16.msra.mxu1 %v1207_v25  ;;  %664 = vmatprep.mubr.f32.mxu1 %v1272_v44  ;;  %v436_v25 = vrot.slane %v405_v43, %v435_v19 }
 0x132   :  { %1210 = vmatprep.subr.bf16.mxu1 %v1209_v26  ;;  %v813_v26 = vand.u32 127, %v131_v45 }
 0x134   :  { %vm822_vm2 = vcmp.lt.s32.totalorder %v813_v26, 56 }
 0x135   :  { %1212 = vmatpush1.bf16.msra.mxu1 %v1211_v31 }
 0x136   :  { %1214 = vmatprep.subr.bf16.mxu1 %v1213_v32 }
 0x138   :  { %959 = vmatmul.mubr.msk.f32.vlgmr.msra.gmra.mrb[6].mxu1 %vm454_vm1, %v1233_v16 }
 0x139   :  { %1216 = vmatpush1.bf16.msra.mxu1 %v1215_v37  ;;  %735 = vmatprep.mubr.f32.mxu1 %v1272_v44 }
 0x13a   :  { %1218 = vmatprep.subr.bf16.mxu1 %v1217_v38 }
 0x13d   :  { %1220 = vmatpush1.bf16.msra.mxu1 %v1219_v41 }
 0x140   :  { %960 = vmatmul.mubr.msk.f32.vlgmr.msra.gmra.mrb[8].mxu1 %vm454_vm1, %v1233_v16 }
 0x1fb   :  { %v524_v50 = vpop.f32.mrb[2].mxu1  ;;  %v808_v44 = vpop.f32.mrb[4].mxu0 }
 0x1fc   :  { %v1735_v51 = vadd.f32 %v524_v50, %v412_v47  ;;  %v809_v52 = vadd.f32 %v956_v48, %v808_v44  ;;  %v526_v53 = vpop.f32.mrb[3].mxu1  ;;  %v1092_v54 = vpop.f32.mrb[5].mxu0 }
 0x1fd   :  { %v527_v56 = vadd.f32 %v526_v53, %v416_v49 }
 0x1fe   :  { %v962_v58 = vmul.f32 -1.442695, %v1735_v51  ;;  %v970_v59 = vmul.f32 -1.442695, %v809_v52 }
 0x1ff   :  { %v963_v61 = vmul.f32 -1.442695, %v527_v56 }
 0x200   :  { %1234 = vpow2.f32 %v962_v58 }
 0x201   :  { %1236 = vpow2.f32 %v970_v59 }
 0x202   :  { %1238 = vpow2.f32 %v963_v61 }
 0x203   :  { %v595_v0 = vpop.f32.mrb[4].mxu1 }
 0x204   :  { %v596_v1 = vadd.f32 %v595_v0, %v420_v62  ;;  %v597_v2 = vpop.f32.mrb[5].mxu1 }
 0x205   :  { %v598_v4 = vadd.f32 %v597_v2, %v424_v63 }
 0x206   :  { %v964_v6 = vmul.f32 -1.442695, %v596_v1 }
 0x207   :  { %v965_v7 = vmul.f32 -1.442695, %v598_v4 }
 0x208   :  { %1240 = vpow2.f32 %v964_v6 }
 0x209   :  { %1242 = vpow2.f32 %v965_v7 }
 0x20a   :  { %v1235_v11 = vpop.eup %1234 }
 0x20b   :  { %v1237_v12 = vpop.eup %1236  ;;  %v858_v13 = vadd.f32 1.0, %v1235_v11  ;;  %v666_v14 = vpop.f32.mrb[6].mxu1 }
 0x20c   :  { %v1239_v15 = vpop.eup %1238  ;;  %v866_v16 = vadd.f32 1.0, %v1237_v12  ;;  %v667_v17 = vadd.f32 %v666_v14, %v428_v8  ;;  %v668_v18 = vpop.f32.mrb[7].mxu1 }
 0x20d   :  { %1244 = vrcp.f32 %v858_v13  ;;  %v859_v20 = vadd.f32 1.0, %v1239_v15  ;;  %v669_v21 = vadd.f32 %v668_v18, %v432_v9 }
 0x20e   :  { %1246 = vrcp.f32 %v866_v16  ;;  %v966_v23 = vmul.f32 -1.442695, %v667_v17 }
 0x20f   :  { %1248 = vrcp.f32 %v859_v20  ;;  %v967_v24 = vmul.f32 -1.442695, %v669_v21 }
 0x210   :  { %1250 = vpow2.f32 %v966_v23 }
 0x211   :  { %1252 = vpow2.f32 %v967_v24 }
 0x212   :  { %v1241_v28 = vpop.eup %1240 }
 0x213   :  { %v1243_v29 = vpop.eup %1242  ;;  %v860_v30 = vadd.f32 1.0, %v1241_v28  ;;  %v737_v31 = vpop.f32.mrb[8].mxu1 }
 0x214   :  { %v861_v32 = vadd.f32 1.0, %v1243_v29  ;;  %v738_v33 = vadd.f32 %v737_v31, %v436_v25  ;;  %v739_v34 = vpop.f32.mrb[9].mxu1 }
 0x215   :  { %1254 = vrcp.f32 %v860_v30  ;;  %v740_v60 = vadd.f32 %v739_v34, %v440_v27 }
 0x216   :  { %1256 = vrcp.f32 %v861_v32  ;;  %v968_v35 = vmul.f32 -1.442695, %v738_v33 }
 0x217   :  { %v1245_v36 = vpop.eup %1244  ;;  %v969_v37 = vmul.f32 -1.442695, %v740_v60 }
 0x218   :  { %v1247_v38 = vpop.eup %1246  ;;  %v885_v39 = vsel %vm822_vm2, %v1735_v51, %v1245_v36  ;;  %1258 = vpow2.f32 %v968_v35 }
 0x219   :  { %v1249_v45 = vpop.eup %1248  ;;  %971 = vst.sshfl [vmem:[%s1764_s5 + $0x10] sm:$0x3 pattern:$0x76325410] %v1247_v38  ;;  %1260 = vpow2.f32 %v969_v37 }
 0x21a   :  { %v1251_v40 = vpop.eup %1250  ;;  %v903_v41 = vcombine.low %v885_v39, %v1249_v45 }
 0x21b   :  { %v1253_v42 = vpop.eup %1252  ;;  %v862_v43 = vadd.f32 1.0, %v1251_v40 }
 0x21c   :  { %v863_v46 = vadd.f32 1.0, %v1253_v42  ;;  %v911_v51 = vrot.slane %v903_v41, %v1452_v10 }
 0x21d   :  { %1262 = vrcp.f32 %v862_v43 }
 0x21e   :  { %1264 = vrcp.f32 %v863_v46 }
 0x21f   :  { %v1255_v47 = vpop.eup %1254 }
 0x220   :  { %v1257_v48 = vpop.eup %1256 }
 0x221   :  { %v904_v49 = vcombine.low %v1255_v47, %v1257_v48 }
 0x222   :  { %v1259_v50 = vpop.eup %1258 }
 0x223   :  { %v1261_v44 = vpop.eup %1260  ;;  %v918_v52 = vrot.slane %v904_v49, %v1452_v10  ;;  %v864_v53 = vadd.f32 1.0, %v1259_v50 }
 0x224   :  { %v865_v54 = vadd.f32 1.0, %v1261_v44 }
 0x225   :  { %v919_v55 = vcombine.low %v911_v51, %v918_v52  ;;  %1266 = vrcp.f32 %v864_v53 }
 0x226   :  { %1268 = vrcp.f32 %v865_v54 }
 0x227   :  { %v1263_v56 = vpop.eup %1262  ;;  %947 = vst [vmem:[%s1764_s5] sm:$0xff] %v919_v55 }
 0x228   :  { %v1265_v57 = vpop.eup %1264 }
 0x229   :  { %v920_v58 = vcombine.low %v1263_v56, %v1265_v57 }
 0x22b   :  { %v928_v63 = vrot.slane %v920_v58, %v1452_v10 }
 0x22f   :  { %v1267_v59 = vpop.eup %1266 }
 0x230   :  { %v1269_v61 = vpop.eup %1268 }
 0x231   :  { %v921_v62 = vcombine.low %v1267_v59, %v1269_v61 }
 0x233   :  { %v935_v0 = vrot.slane %v921_v62, %v1452_v10 }
 0x235   :  { %v936_v1 = vcombine.low %v928_v63, %v935_v0 }
 0x237   :  { %948 = vst [vmem:[%s1764_s5 + $0x8] sm:$0xff] %v936_v1 }

// kernel: custom-call.65
= control target key start
LH: loop header
LB: loop body
LE: loop exit
PB: predicated region body
PF: predicated region fallthrough
CT: control target
= control target key end

     0   :  { %s645_s9 = smov 0   ;;  %s647_s10 = smov 0   ;;  %s795_s0 = inlined_call_operand.vmem [shape: f32[2,6,3], index: 0, kind: input, shape index: {}]   ;;  %s796_s1 = inlined_call_operand.vmem [shape: f32[2,6,3], index: 1, kind: output, shape index: {0}]   ;;  %s797_s2 = inlined_call_operand.vmem [shape: f32[2,3], index: 2, kind: output, shape index: {1}]  }
   0x1   :  { %s649_s11 = smov 0   ;;  %s651_s12 = smov 0  }
   0x2   :  { %s653_s13 = smov 0  }
   0x3 LB: > { %s28_s14 = sadd.s32 1, %s618_s12  ;;  %s500_s15 = sadd.s32 4294967295, %s622_s13   ;;  %s622_s13 = sphi %s653_s13, %s9_s13   ;;  %s618_s12 = sphi %s651_s12, %s804_s12   ;;  %s614_s11 = sphi %s649_s11, %s803_s11   ;;  %s610_s10 = sphi %s647_s10, %s802_s10   ;;  %s606_s9 = sphi %s645_s9, %s801_s9  }
   0x4   : > { %p30_p0 = scmp.ge.s32.totalorder %s28_s14, 2  ;;  %s33_s16 = ssub.s32 0, %s618_s12 }
   0x5   : > { %s502_s17 = smin.u32 %s618_s12, %s33_s16  ;;  %p57_p1 = scmp.ne.s32.totalorder %s610_s10, %s606_s9 }
   0x6   : > { %s806_s14 = smov (%p30_p0, %s28_s14), 0  ;;  %s35_s18 = sshrl.u32 %s502_s17, 3 }
   0x7   : > { %s39_s19 = ssub.s32 0, %s806_s14  ;;  %p58_p2 = scmp.eq.s32.totalorder %s500_s15, 1 }
   0x8   : > { %s503_s20 = smin.u32 %s39_s19, %s806_s14  ;;  %s47_s24 = sadd.s32 1, %s610_s10 }
   0x9   : > { %s41_s21 = sshrl.u32 %s503_s20, 3  ;;  %p680_p3 = por %p58_p2, %p57_p1 }
   0xa   : > { %s44_s23 = ssub.s32 %s35_s18, %s41_s21  ;;  %p505_p5 = scmp.ge.s32.totalorder %s622_s13, 2 }
   0xb   : > { %p45_p4 = scmp.eq.s32.totalorder %s44_s23, 0  ;;  %s82_s26 = sand.u32 (!%p505_p5), 1, %s622_s13  }
   0xc   : > { %80 = sbr.rel (%p505_p5) target bundleno = 19 (0x13), region = 16  ;;  %s507_s27 = sshll.u32 (!%p505_p5), %s618_s12, 3 }
   0xd   : > { %s686_s25 = scalar_select %p45_p4, %s610_s10, %s47_s24  }
   0xe   : > { %s506_s28 = sshll.u32 (!%p505_p5), %s82_s26, 3  ;;  %s88_s3 = scalar_lea.vmem (!%p505_p5), %s795_s0, %s507_s27 }
   0xf   : > { %v116_v0 = vld [vmem:[%s88_s3] sm:$0xff] (!%p505_p5)  ;;  %s84_s4 = scalar_lea.vmem (!%p505_p5), [#allocation0], %s506_s28 }
  0x10   : > { %117 = vst [vmem:[%s84_s4] sm:$0xff] (!%p505_p5), %v116_v0 }
  0x13 PF: > { %p508_p6 = scmp.ge.s32.totalorder %s622_s13, 1  ;;  %p122_p7 = scmp.lt.s32.totalorder %s622_s13, 3 }
  0x15   : > { %p123_p8 = pnand %p508_p6, %p122_p7 }
  0x17   : > { %126 = sbr.rel (%p123_p8) target bundleno = 330 (0x14a), region = 54 }
  0x1e   : > { %s129_s5 = sand.u32 1, %s500_s15   ;;  %s143_s6 = sand.u32 1, %s606_s9   ;;  %v628_v2 = vmov 0.0  }
  0x1f   : > { %s509_s7 = sshll.u32 %s129_s5, 3  ;;  %s697_s8 = sshll.u32 %s143_s6, 1 }
  0x20   : > { %s152_s16 = sand.u32 7, %s614_s11   ;;  %s131_s17 = scalar_lea.vmem [#allocation0], %s509_s7 }
  0x21   : > { %v154_v1 = vld [vmem:[%s131_s17] sm:$0xff]  ;;  %s700_s18 = scalar_lea.vmem [#allocation1], %s509_s7  ;;  %s703_s19 = scalar_lea.vmem [#allocation2], %s152_s16 }
  0x22   : > { %155 = vst [vmem:[%s700_s18] sm:$0xff] %v154_v1  ;;  %156 = vst [vmem:[%s703_s19] sm:$0x1] %v628_v2  ;;  %s145_s15 = scalar_lea.vmem [#allocation3], %s697_s8  ;;  %s707_s20 = smov 0  }
  0x23 LB: >> { %v164_v3 = vlaneseq  ;;  %v716_v5 = vstv %s626_s20  ;;  %s191_s9 = scalar_lea.vmem %s700_s18, %s626_s20 [#allocation1]  ;;  %s249_s21 = scalar_lea.vmem [#allocation4], %s626_s20  ;;  %v629_v59 = vmov 1.0   ;;  %s626_s20 = sphi %s707_s20, %s162_s20  }
  0x24   : >> { %s266_s23 = smov [#allocation4] }
  0x25   : >> { %v713_v4 = vshrl.u32 %v164_v3, 7  ;;  %v243_v48 = vand.u32 127, %v164_v3 }
  0x27   : >> { %vm168_vm0 = vcmp.gt.s32.totalorder %v713_v4, %v716_v5  ;;  %vm169_vm1 = vcmp.lt.s32.totalorder %v713_v4, 6  ;;  %v230_v4 = vmov %v713_v4  ;;  %vm734_vm12 = vcmp.eq.s32.totalorder %v243_v48, %v716_v5 }
  0x28   : >> { %vm170_vm2 = vmand %vm168_vm0, %vm169_vm1  ;;  %vm234_vm9 = vcmp.gt.s32.totalorder %v230_v4, %v716_v5  ;;  %vm235_vm10 = vcmp.lt.s32.totalorder %v230_v4, 6  ;;  %v269_v4 = vmov %v713_v4  ;;  %vm295_vm15 = vcmp.gt.s32.totalorder %v243_v48, %v716_v5 }
  0x29   : >> { %v163_v6 = vld [vmem:[%s700_s18] sm:$0xff]  ;;  %v192_v15 = vld [vmem:[%s191_s9] ss:$0 sm:$0xff]  ;;  %s227_s18 = smov %s700_s18  ;;  %vm236_vm11 = vmand %vm234_vm9, %vm235_vm10  ;;  %vm274_vm13 = vcmp.lt.s32.totalorder %v269_v4, 6  ;;  %v286_v4 = vmov %v713_v4 }
  0x2a   : >> { %v171_v7 = vsel %vm170_vm2, %v163_v6, 0.0  ;;  %v193_v16 = vand.u32 2147483647, %v192_v15  ;;  %vm218_vm8 = vcmp.lt.f32.partialorder %v192_v15, 0.0  ;;  %v231_v45 = vld [vmem:[%s227_s18] sm:$0xff]  ;;  %s265_s18 = smov %s700_s18  ;;  %vm303_vm14 = vcmp.ge.s32.totalorder %v286_v4, %v716_v5 }
  0x2b   : >> { %v172_v8 = vmul.f32 %v171_v7, %v171_v7  ;;  %v237_v49 = vsel %vm236_vm11, %v231_v45, 0.0  ;;  %v262_v60 = vld [vmem:[%s703_s19] ss:$0 sm:$0xff]  ;;  %vm304_vm0 = vmand %vm734_vm12, %vm303_vm14 }
  0x2c   : >> { %v194_v21 = vmax.f32 %v193_v16, 0.0  ;;  %v272_v63 = vld [vmem:[%s265_s18] sm:$0xff]  ;;  %s282_s18 = smov %s265_s18 }
  0x2d   : >> { %v173_v9 = vrot.slane %v172_v8, 4  ;;  %s307_s24 = scalar_lea.vmem %s282_s18, %s626_s20  ;;  %s162_s20 = sadd.s32 1, %s626_s20  }
  0x2e   : >> { %p159_p9 = scmp.ge.s32.totalorder %s162_s20, 3  }
  0x2f   : >> { %v174_v10 = vadd.f32 %v173_v9, %v172_v8  ;;  %s515_s26 = sshll.u32 (%p159_p9), %s614_s11, 3 }
  0x30   : > { %s332_s29 = scalar_lea.vmem (%p159_p9), %s796_s1, %s515_s26 }
  0x31   : >> { %v175_v11 = vrot.slane %v174_v10, 2 }
  0x33   : >> { %v176_v12 = vadd.f32 %v175_v11, %v174_v10 }
  0x35   : >> { %v177_v13 = vrot.slane %v176_v12, 1 }
  0x37   : >> { %v178_v14 = vadd.f32 %v177_v13, %v176_v12  ;;  %v293_v13 = vld [vmem:[%s282_s18] sm:$0xff] }
  0x39   : >> { %570 = vrsqrt.f32 %v178_v14  ;;  %vm181_vm3 = vcmp.eq.f32.partialorder %v178_v14, inf  ;;  %v184_v18 = vand.u32 2147483648, %v178_v14  ;;  %vm183_vm4 = vcmp.eq.f32.partialorder %v178_v14, 0.0 }
  0x43   : >> { %v571_v17 = vpop.eup %570 }
  0x44   : >> { %v180_v19 = vmul.f32 %v571_v17, %v178_v14 }
  0x46   : >> { %v182_v20 = vsel %vm181_vm3, %v178_v14, %v180_v19 }
  0x47   : >> { %v185_v22 = vsel %vm183_vm4, %v184_v18, %v182_v20 }
  0x48   : >> { %v195_v23 = vand.u32 2147483647, %v185_v22 }
  0x4a   : >> { %v196_v24 = vmax.f32 %v194_v21, %v195_v23 }
  0x4c   : >> { %572 = vrcp.f32 %v196_v24  ;;  %vm208_vm7 = vcmp.eq.f32.partialorder %v196_v24, 0.0 }
  0x56   : >> { %v573_v25 = vpop.eup %572 }
  0x57   : >> { %v198_v26 = vmul.f32 %v573_v25, %v193_v16  ;;  %v201_v27 = vmul.f32 0.0, %v573_v25  ;;  %v205_v28 = vmul.f32 %v573_v25, %v195_v23 }
  0x59   : >> { %v199_v29 = vmul.f32 %v198_v26, %v198_v26  ;;  %v202_v30 = vmul.f32 %v201_v27, %v201_v27  ;;  %v206_v31 = vmul.f32 %v205_v28, %v205_v28 }
  0x5b   : >> { %v203_v32 = vadd.f32 %v202_v30, %v199_v29 }
  0x5d   : >> { %v207_v33 = vadd.f32 %v206_v31, %v203_v32 }
  0x5f   : >> { %574 = vrsqrt.f32 %v207_v33  ;;  %vm211_vm5 = vcmp.eq.f32.partialorder %v207_v33, inf  ;;  %v214_v35 = vand.u32 2147483648, %v207_v33  ;;  %vm213_vm6 = vcmp.eq.f32.partialorder %v207_v33, 0.0 }
  0x69   : >> { %v575_v34 = vpop.eup %574 }
  0x6a   : >> { %v210_v36 = vmul.f32 %v575_v34, %v207_v33 }
  0x6c   : >> { %v212_v37 = vsel %vm211_vm5, %v207_v33, %v210_v36 }
  0x6d   : >> { %v215_v38 = vsel %vm213_vm6, %v214_v35, %v212_v37 }
  0x6e   : >> { %v216_v39 = vmul.f32 %v215_v38, %v196_v24 }
  0x70   : >> { %v217_v40 = vsel %vm208_vm7, 0.0, %v216_v39 }
  0x71   : >> { %v219_v41 = vxor.u32 2147483648, %v217_v40 }
  0x73   : >> { %v220_v42 = vsel %vm218_vm8, %v217_v40, %v219_v41 }
  0x74   : >> { %v726_v43 = vsel %vm183_vm4, %v192_v15, %v220_v42  ;;  %576 = vrcp.f32 %v220_v42  ;;  %v221_v46 = vsub.f32 %v220_v42, %v192_v15 }
  0x75   : >> { %v226_v44 = vsub.f32 %v192_v15, %v726_v43 }
  0x77   : >> { %578 = vrcp.f32 %v226_v44 }
  0x7e   : >> { %v577_v47 = vpop.eup %576 }
  0x7f   : >> { %v223_v50 = vmul.f32 %v577_v47, %v221_v46 }
  0x81   : >> { %v579_v51 = vpop.eup %578  ;;  %v225_v55 = vsel %vm183_vm4, 0.0, %v223_v50 }
  0x82   : >> { %v239_v52 = vmul.f32 %v579_v51, %v237_v49  ;;  %v255_v57 = vsel %vm734_vm12, %v225_v55, 0.0 }
  0x84   : >> { %v240_v54 = vsel %vm183_vm4, 0.0, %v239_v52 }
  0x85   : >> { %v245_v56 = vsel %vm734_vm12, %v240_v54, 0.0 }
  0x86   : >> { %246 = vadd.xlane.f32.xlu0 %v245_v56 }
  0x8a   : >> { %256 = vadd.xlane.f32.xlu0 %v255_v57 }
 0x113   : >> { %v247_v58 = vpop.xlane.xlu0 %246 }
 0x114   : >> { %248 = vst [vmem:[#allocation4] sm:$0xff] %v247_v58 }
 0x115   : >> { %250 = vst [vmem:[%s249_s21] sm:$0x1] %v629_v59 }
 0x117   : >> { %v257_v61 = vpop.xlane.xlu0 %256 }
 0x118   : >> { %v263_v62 = vsel %vm734_vm12, %v257_v61, %v262_v60 }
 0x119   : >> { %264 = vst [vmem:[%s703_s19] sm:$0x1] %v263_v62 }
 0x11c   : >> { %v271_v0 = vld [vmem:[%s266_s23] sm:$0xff]  ;;  %s283_s23 = smov %s266_s23 }
 0x11d   : >> { %v273_v1 = vmul.f32 %v272_v63, %v271_v0  ;;  %v291_v12 = vld [vmem:[%s283_s23] sm:$0xff] }
 0x11f   : >> { %v275_v2 = vsel %vm274_vm13, %v273_v1, 0.0 }
 0x120   : >> { %v276_v3 = vrot.slane %v275_v2, 4  ;;  %v318_v4 = vld [vmem:[#allocation2] sm:$0x3] (%p159_p9) }
 0x121   : > { %320 = vst [vmem:[%s145_s15] sm:$0x3] (%p159_p9), %v318_v4 }
 0x122   : >> { %v277_v6 = vadd.f32 %v276_v3, %v275_v2 }
 0x124   : >> { %v278_v7 = vrot.slane %v277_v6, 2 }
 0x126   : >> { %v279_v8 = vadd.f32 %v278_v7, %v277_v6 }
 0x128   : >> { %v280_v9 = vrot.slane %v279_v8, 1 }
 0x12a   : >> { %v281_v10 = vadd.f32 %v280_v9, %v279_v8 }
 0x12c   : >> { %v287_v11 = vmul.f32 %v281_v10, %v257_v61 }
 0x12e   : >> { %v292_v14 = vmul.f32 %v291_v12, %v287_v11 }
 0x130   : >> { %v296_v15 = vsub.f32 %v293_v13, %v292_v14 }
 0x132   : >> { %v297_v16 = vsel %vm295_vm15, %v296_v15, %v293_v13 }
 0x133   : >> { %v305_v17 = vsel %vm304_vm0, %v291_v12, %v297_v16 }
 0x134   : >> { %306 = vst [vmem:[%s282_s18] sm:$0xff] %v305_v17 }
 0x137   : > { %161 = sbr.rel (!%p159_p9) target bundleno = 35 (0x23), region = 175 }
 0x13b   : >> { %v308_v18 = vld [vmem:[%s307_s24] ss:$0 sm:$0xff] }
 0x13c   : >> { %v313_v19 = vsel %vm734_vm12, %v726_v43, %v308_v18 }
 0x13d   : >> { %314 = vst [vmem:[%s307_s24] sm:$0x1] %v313_v19 }
 0x13e   : > { %p368_p10 = scmp.lt.s32.totalorder (%p680_p3), %s614_s11, 0  ;;  %s369_s30 = ssub.s32 (%p680_p3), 0, %s614_s11  ;;  %v391_v20 = vld [vmem:[%s145_s15] sm:$0x3] (%p680_p3) }
 0x13f   : > { %367 = sbr.rel (!%p680_p3) target bundleno = 330 (0x14a), region = 99  ;;  %s516_s3 = smin.u32 (%p680_p3), %s614_s11, %s369_s30 }
 0x140   : > { %s371_s4 = sshrl.u32 (%p680_p3), %s516_s3, 3 }
 0x141   : > { %s372_s5 = ssub.s32 (%p680_p3), 0, %s371_s4 }
 0x144   : > { %v360_v5 = vld [vmem:[%s700_s18] sm:$0xff] }
 0x145   : > { %361 = vst [vmem:[%s332_s29] sm:$0xff] %v360_v5 }
 0x146   : > { %s808_s5 = smov (!%p368_p10, %s372_s5), %s371_s4 }
 0x147   : > { %s517_s6 = sshll.u32 %s808_s5, 1 }
 0x148   : > { %s375_s17 = scalar_lea.vmem %s797_s2, %s517_s6 }
 0x149   : > { %392 = vst [vmem:[%s375_s17] sm:$0x3] %v391_v20 }
 0x14a PF: > { %s9_s13 = sadd.s32 1, %s622_s13   ;;  %s801_s9 = smov %s610_s10 }
 0x14b   : > { %p6_p11 = scmp.ge.s32.totalorder %s9_s13, 4   ;;  %s802_s10 = smov %s686_s25 }
 0x14c   : > { %s803_s11 = smov %s618_s12  ;;  %s804_s12 = smov %s806_s14 }
 0x14d   :  { %8 = sbr.rel (!%p6_p11) target bundleno = 3 (0x3), region = 186 }

// kernel: custom-call.66
= control target key start
LH: loop header
LB: loop body
LE: loop exit
PB: predicated region body
PF: predicated region fallthrough
CT: control target
= control target key end

     0   :  { %s236_s6 = smov 0   ;;  %s263_s0 = inlined_call_operand.vmem [shape: f32[2,3,3], index: 0, kind: input, shape index: {}]   ;;  %s264_s1 = inlined_call_operand.vmem [shape: f32[2,3,3], index: 1, kind: output, shape index: {}]  }
   0x1 LB: > { %s198_s7 = sadd.s32 4294967295, %s224_s6   ;;  %p200_p0 = scmp.ge.s32.totalorder %s224_s6, 2  ;;  %s224_s6 = sphi %s236_s6, %s7_s6  }
   0x2   : > { %s23_s8 = sand.u32 (!%p200_p0), 1, %s224_s6   ;;  %s202_s9 = sshll.u32 (!%p200_p0), %s224_s6, 2 }
   0x3   : > { %21 = sbr.rel (%p200_p0) target bundleno = 10 (0xa), region = 16  ;;  %s201_s10 = sshll.u32 (!%p200_p0), %s23_s8, 2 }
   0x4   : > { %s27_s13 = scalar_lea.vmem (!%p200_p0), %s263_s0, %s202_s9  ;;  %s25_s14 = scalar_lea.vmem (!%p200_p0), [#allocation1], %s201_s10 }
   0x5   : > { %v43_v0 = vld [vmem:[%s27_s13] sm:$0xf] (!%p200_p0) }
   0x6   : > { %44 = vst [vmem:[%s25_s14] sm:$0xf] (!%p200_p0), %v43_v0 }
   0xa PF: > { %p203_p1 = scmp.ge.s32.totalorder %s224_s6, 1  ;;  %p60_p2 = scmp.lt.s32.totalorder %s224_s6, 3 }
   0xc   : > { %p61_p3 = pnand %p203_p1, %p60_p2 }
   0xd   : > { %s252_s15 = sand.u32 (!%p61_p3), 1, %s198_s7   ;;  %v82_v1 = vlaneseq (!%p61_p3)  ;;  %vm96_vm1 = vcmask (!%p61_p3), 23552   ;;  %s207_s19 = sshll.u32 (!%p61_p3), %s198_s7, 2 }
   0xe   : > { %64 = sbr.rel (%p61_p3) target bundleno = 334 (0x14e), region = 50  ;;  %s204_s16 = sshll.u32 (!%p61_p3), %s252_s15, 2 }
   0xf   : > { %s73_s17 = scalar_lea.vmem (!%p61_p3), [#allocation1], %s204_s16  ;;  %v83_v3 = vand.u32 (!%p61_p3), 127, %v82_v1  ;;  %v85_v4 = vshrl.u32 (!%p61_p3), %v82_v1, 7  ;;  %s77_s18 = scalar_lea.vmem (!%p61_p3), [#allocation3], %s204_s16 }
  0x10   : > { %v80_v2 = vld [vmem:[%s73_s17] sm:$0xf] (!%p61_p3)  ;;  %s128_s22 = scalar_lea.vmem (!%p61_p3), %s264_s1, %s207_s19 }
  0x11   : > { %81 = vst [vmem:[#allocation0] sm:$0xf] (!%p61_p3), %v80_v2  ;;  %vm91_vm0 = vcmp.eq.s32.totalorder (!%p61_p3), %v83_v3, 0  ;;  %vm87_vm2 = vcmp.eq.s32.totalorder (!%p61_p3), %v83_v3, %v85_v4  ;;  %vm100_vm3 = vcmp.eq.s32.totalorder (!%p61_p3), %v83_v3, 1  ;;  %vm111_vm4 = vcmp.eq.s32.totalorder (!%p61_p3), %v83_v3, 2 }
  0x18   : > { %v88_v5 = vld [vmem:[#allocation0] sm:$0xff] }
  0x19   : > { %v95_v6 = vld [vmem:[#allocation0 + $0x1] ss:$0 sm:$0xff]  ;;  %v92_v7 = vsel %vm91_vm0, %v88_v5, 1.0  ;;  %v106_v11 = vld [vmem:[#allocation0 + $0x2] ss:$0 sm:$0xff] }
  0x1a   : > { %v97_v8 = vsel %vm96_vm1, %v95_v6, 0.0  ;;  %v93_v9 = vsel %vm87_vm2, %v92_v7, 0.0  ;;  %v108_v12 = vsel %vm96_vm1, %v106_v11, 0.0 }
  0x1b   : > { %v101_v10 = vmul.f32 %v97_v8, %v93_v9 }
  0x1d   : > { %102 = vadd.xlane.f32.xlu0 %v101_v10 }
  0xaa   : > { %v103_v13 = vpop.xlane.xlu0 %102 }
  0xab   : > { %v104_v14 = vsel %vm100_vm3, %v103_v13, %v93_v9 }
  0xac   : > { %v112_v15 = vmul.f32 %v108_v12, %v104_v14 }
  0xae   : > { %113 = vadd.xlane.f32.xlu0 %v112_v15 }
 0x13b   : > { %v114_v16 = vpop.xlane.xlu0 %113 }
 0x13c   : > { %v115_v17 = vsel %vm111_vm4, %v114_v16, %v104_v14 }
 0x13d   : > { %116 = vst [vmem:[#allocation2] sm:$0xff] %v115_v17 }
 0x144   : > { %v120_v18 = vld [vmem:[#allocation2] sm:$0xf] }
 0x145   : > { %122 = vst [vmem:[%s77_s18] sm:$0xf] %v120_v18 }
 0x14c   : > { %v144_v19 = vld [vmem:[%s77_s18] sm:$0xf] }
 0x14d   : > { %145 = vst [vmem:[%s128_s22] sm:$0xf] %v144_v19 }
 0x14e PF: > { %s7_s6 = sadd.s32 1, %s224_s6  }
 0x14f   : > { %p4_p4 = scmp.ge.s32.totalorder %s7_s6, 4  }
 0x151   :  { %6 = sbr.rel (!%p4_p4) target bundleno = 1 (0x1), region = 112 }

// kernel: h2otr_forward.7
= control target key start
LH: loop header
LB: loop body
LE: loop exit
PB: predicated region body
PF: predicated region fallthrough
CT: control target
= control target key end

     0   :  { %vm19_vm0 = vcmask 165888   ;;  %s284_s0 = inlined_call_operand.vmem [shape: f32[1,3,21], index: 0, kind: input, shape index: {}]   ;;  %s285_s1 = inlined_call_operand.vmem [shape: f32[2,3,21], index: 1, kind: input, shape index: {}]   ;;  %s286_s2 = inlined_call_operand.vmem [shape: f32[3,2,3], index: 2, kind: output, shape index: {0}]   ;;  %s287_s3 = inlined_call_operand.vmem [shape: f32[3,1], index: 3, kind: output, shape index: {1}]   ;;  %s288_s4 = inlined_call_operand.vmem [shape: f32[2,3,1], index: 4, kind: output, shape index: {2}]   ;;  %s289_s5 = inlined_call_operand.hbm [shape: f32[1,1], index: 5, kind: output, shape index: {3}]  }
   0x1   :  { %v16_v0 = vld [vmem:[%s284_s0] sm:$0x7]  ;;  %v18_v1 = vld [vmem:[%s285_s1 + $0x4] sm:$0x7] }
   0x2   :  { %v20_v2 = vsel %vm19_vm0, %v16_v0, 0.0  ;;  %v28_v3 = vsel %vm19_vm0, %v18_v1, 0.0  ;;  %v17_v4 = vld [vmem:[%s285_s1] sm:$0x7] }
   0x3   :  { %11 = vsyncpa [#allocation3], 0  ;;  %21 = vadd.xlane.f32.xlu0 %v20_v2  ;;  %29 = vadd.xlane.f32.xlu1 %v28_v3  ;;  %v25_v5 = vsel %vm19_vm0, %v17_v4, 0.0  ;;  %v36_v6 = vlaneseq  ;;  %vm123_vm1 = vcmask 2048   ;;  %vm132_vm2 = vcmask 1042432   ;;  %s195_s28 = smov [#allocation2]  }
   0x4   :  { %vm62_vm3 = vcmask 1041409   ;;  %vm65_vm4 = vcmask 17408   ;;  %s154_s29 = sshll.u32 %s195_s28, 4  ;;  %vm140_vm5 = vcmask 0   ;;  %s155_s29 = int_to_ptr.vmem [resolvable:$true] %s154_s29 }
   0x5   :  { %v37_v7 = vshrl.u32 %v36_v6, 7  ;;  %v53_v37 = vand.u32 127, %v36_v6  ;;  %s171_s7 = scalar_lea.vmem %s155_s29, 16  ;;  %s175_s8 = scalar_lea.vmem %s155_s29, 32 }
   0x6   :  { %p172_p0 = scmp.ne.s32.totalorder %s155_s29, %s171_s7  ;;  %p176_p1 = scmp.lt.s32.totalorder %s155_s29, %s155_s29 }
   0x7   :  { %26 = vadd.xlane.f32.xlu0 %v25_v5  ;;  %v38_v12 = vsub.s32 0, %v37_v7  ;;  %v69_v15 = vsub.s32 1, %v37_v7  ;;  %v97_v20 = vsub.s32 2, %v37_v7  ;;  %v56_v41 = vsub.s32 %v53_v37, %v37_v7  ;;  %p177_p2 = scmp.lt.s32.totalorder %s175_s8, %s171_s7 }
   0x9   :  { %p178_p3 = por %p177_p2, %p176_p1 }
   0xb   :  { %p179_p4 = pnand %p178_p3, %p172_p0 }
  0x90   :  { %v22_v8 = vpop.xlane.xlu0 %21  ;;  %v30_v9 = vpop.xlane.xlu1 %29 }
  0x91   :  { %v24_v10 = vmul.f32 0.04761905, %v22_v8  ;;  %v32_v11 = vmul.f32 0.04761905, %v30_v9 }
  0x93   :  { %v33_v13 = vsub.f32 %v16_v0, %v24_v10  ;;  %124 = vst.msk [vmem:[%s287_s3] sm:$0x7] %vm123_vm1, %v24_v10  ;;  %v35_v14 = vsub.f32 %v18_v1, %v32_v11  ;;  %126 = vst.msk [vmem:[%s288_s4 + $0x4] sm:$0x7] %vm123_vm1, %v32_v11 }
  0x94   :  { %v27_v16 = vpop.xlane.xlu0 %26 }
  0x95   :  { %v31_v17 = vmul.f32 0.04761905, %v27_v16  ;;  %v127_v18 = vmul.f32 %v33_v13, %v33_v13  ;;  %v39_v19 = vrot.slane %v33_v13, %v38_v12  ;;  %v70_v24 = vrot.slane %v33_v13, %v69_v15 }
  0x96   :  { %v98_v26 = vrot.slane %v33_v13, %v97_v20 }
  0x97   :  { %v34_v21 = vsub.f32 %v17_v4, %v31_v17  ;;  %125 = vst.msk [vmem:[%s288_s4] sm:$0x7] %vm123_vm1, %v31_v17  ;;  %v128_v22 = vsel %vm19_vm0, %v127_v18, 0.0  ;;  %v41_v23 = vmul.f32 %v39_v19, %v35_v14  ;;  %v72_v29 = vmul.f32 %v70_v24, %v35_v14 }
  0x98   :  { %129 = vadd.xlane.f32.xlu1 %v128_v22  ;;  %v100_v33 = vmul.f32 %v98_v26, %v35_v14 }
  0x99   :  { %v40_v25 = vmul.f32 %v39_v19, %v34_v21  ;;  %v45_v27 = vsel %vm19_vm0, %v41_v23, 0.0  ;;  %v71_v30 = vmul.f32 %v70_v24, %v34_v21  ;;  %v76_v31 = vsel %vm19_vm0, %v72_v29, 0.0 }
  0x9a   :  { %v99_v34 = vmul.f32 %v98_v26, %v34_v21  ;;  %v104_v35 = vsel %vm19_vm0, %v100_v33, 0.0 }
  0x9b   :  { %v42_v28 = vsel %vm19_vm0, %v40_v25, 0.0  ;;  %v73_v32 = vsel %vm19_vm0, %v71_v30, 0.0 }
  0x9c   :  { %46 = vadd.xlane.f32.xlu1 %v45_v27  ;;  %43 = vadd.xlane.f32.xlu0 %v42_v28  ;;  %v101_v36 = vsel %vm19_vm0, %v99_v34, 0.0 }
  0xa0   :  { %77 = vadd.xlane.f32.xlu1 %v76_v31  ;;  %74 = vadd.xlane.f32.xlu0 %v73_v32 }
  0xa4   :  { %105 = vadd.xlane.f32.xlu1 %v104_v35  ;;  %102 = vadd.xlane.f32.xlu0 %v101_v36 }
 0x125   :  { %v130_v38 = vpop.xlane.xlu1 %129 }
 0x126   :  { %v131_v39 = vmul.f32 0.04761905, %v130_v38 }
 0x128   :  { %v133_v40 = vsel %vm132_vm2, %v131_v39, 0.0 }
 0x129   :  { %v134_v42 = vrot.slane %v133_v40, 4  ;;  %v47_v43 = vpop.xlane.xlu1 %46  ;;  %v44_v44 = vpop.xlane.xlu0 %43 }
 0x12a   :  { %v49_v45 = vmul.f32 0.04761905, %v47_v43  ;;  %v48_v46 = vmul.f32 0.04761905, %v44_v44 }
 0x12b   :  { %v135_v47 = vadd.f32 %v134_v42, %v133_v40 }
 0x12c   :  { %v61_v48 = vrot.slane %v49_v45, %v56_v41  ;;  %v57_v49 = vrot.slane %v48_v46, %v56_v41 }
 0x12d   :  { %v136_v50 = vrot.slane %v135_v47, 2  ;;  %v78_v51 = vpop.xlane.xlu1 %77  ;;  %v75_v52 = vpop.xlane.xlu0 %74 }
 0x12e   :  { %v63_v53 = vsel %vm62_vm3, %v61_v48, %v57_v49  ;;  %v80_v54 = vmul.f32 0.04761905, %v78_v51  ;;  %v79_v55 = vmul.f32 0.04761905, %v75_v52 }
 0x12f   :  { %v137_v56 = vadd.f32 %v136_v50, %v135_v47  ;;  %66 = vst.msk [vmem:[%s286_s2] sm:$0x3] %vm65_vm4, %v63_v53 }
 0x130   :  { %v90_v57 = vrot.slane %v80_v54, %v56_v41  ;;  %v86_v58 = vrot.slane %v79_v55, %v56_v41 }
 0x131   :  { %v106_v59 = vpop.xlane.xlu1 %105  ;;  %v103_v60 = vpop.xlane.xlu0 %102  ;;  %v138_v61 = vrot.slane %v137_v56, 1 }
 0x132   :  { %v91_v62 = vsel %vm62_vm3, %v90_v57, %v86_v58  ;;  %v108_v63 = vmul.f32 0.04761905, %v106_v59  ;;  %v107_v0 = vmul.f32 0.04761905, %v103_v60 }
 0x133   :  { %168 = vst.msk [vmem:[%s286_s2 + $0x2] sm:$0x3] %vm65_vm4, %v91_v62  ;;  %v139_v1 = vadd.f32 %v138_v61, %v137_v56 }
 0x134   :  { %v118_v2 = vrot.slane %v108_v63, %v56_v41  ;;  %v114_v3 = vrot.slane %v107_v0, %v56_v41 }
 0x135   :  { %141 = vst.msk [vmem:[#allocation2] sm:$0x1] %vm140_vm5, %v139_v1 }
 0x136   :  { %v119_v4 = vsel %vm62_vm3, %v118_v2, %v114_v3 }
 0x137   :  { %182 = shalt.err (!%p179_p4)
}
 0x138   :  { %s183_s11 = scalar_lea.hbm %s289_s5, 16 }
 0x139   :  { %p184_p5 = scmp.ne.s32.totalorder %s289_s5, %s183_s11  ;;  %p187_p6 = scmp.lt.u32.totalorder %s183_s11, %s289_s5 }
 0x13b   :  { %p189_p7 = pnand %p187_p6, %p184_p5 }
 0x13d   :  { %192 = shalt.err (!%p189_p7)
}
 0x13e   :  { %157 = dma.vmem_to_hbm [thread:$0]  %s155_s29, 16, %s289_s5, [#allocation3]   ;;  %169 = vst.msk [vmem:[%s286_s2 + $0x4] sm:$0x3] %vm65_vm4, %v119_v4 }
 0x13f   :  { %193 = dma.done.wait [#allocation3], 16  }
 0x140   :  { %194 = vsyncadd [#allocation3], 4294967280 }
 0x141   :  { %167 = vsyncpa [#allocation3], 1 }

// kernel: custom-call.63
= control target key start
LH: loop header
LB: loop body
LE: loop exit
PB: predicated region body
PF: predicated region fallthrough
CT: control target
= control target key end

     0   :  { %s343_s6 = smov 0   ;;  %s345_s7 = smov 0   ;;  %s390_s0 = inlined_call_operand.vmem [shape: f32[2,3,3], index: 0, kind: input, shape index: {}]   ;;  %s391_s1 = inlined_call_operand.vmem [shape: f32[2,3,3], index: 1, kind: output, shape index: {}]  }
   0x1   :  { %s347_s8 = smov 0  }
   0x2 LB: > { %s265_s9 = sadd.s32 4294967295, %s330_s8   ;;  %s26_s10 = sadd.s32 1, %s326_s7  ;;  %s330_s8 = sphi %s347_s8, %s7_s8   ;;  %s326_s7 = sphi %s345_s7, %s393_s7   ;;  %s322_s6 = sphi %s343_s6, %s392_s6  }
   0x3   : > { %p28_p0 = scmp.ge.s32.totalorder %s26_s10, 2  ;;  %p267_p1 = scmp.ge.s32.totalorder %s330_s8, 2 }
   0x4   : > { %s42_s11 = sand.u32 (!%p267_p1), 1, %s330_s8   ;;  %s269_s12 = sshll.u32 (!%p267_p1), %s326_s7, 2 }
   0x5   : > { %s395_s10 = smov (%p28_p0, %s26_s10), 0  ;;  %40 = sbr.rel (%p267_p1) target bundleno = 12 (0xc), region = 16 }
   0x6   : > { %s268_s13 = sshll.u32 (!%p267_p1), %s42_s11, 2  ;;  %s48_s16 = scalar_lea.vmem (!%p267_p1), %s390_s0, %s269_s12 }
   0x7   : > { %v64_v0 = vld [vmem:[%s48_s16] sm:$0xf] (!%p267_p1)  ;;  %s44_s17 = scalar_lea.vmem (!%p267_p1), [#allocation1], %s268_s13 }
   0x8   : > { %65 = vst [vmem:[%s44_s17] sm:$0xf] (!%p267_p1), %v64_v0 }
   0xc PF: > { %p270_p2 = scmp.ge.s32.totalorder %s330_s8, 1  ;;  %p81_p3 = scmp.lt.s32.totalorder %s330_s8, 3 }
   0xe   : > { %p82_p4 = pnand %p270_p2, %p81_p3 }
   0xf   : > { %v332_v1 = vmov (!%p82_p4), 0.0   ;;  %s370_s18 = sand.u32 (!%p82_p4), 1, %s265_s9   ;;  %vm104_vm0 = vcmask (!%p82_p4), 7168   ;;  %vm122_vm1 = vcmask (!%p82_p4), 15368   ;;  %vm139_vm2 = vcmask (!%p82_p4), 1047553   ;;  %s274_s22 = sshll.u32 (!%p82_p4), %s322_s6, 2 }
  0x10   : > { %85 = sbr.rel (%p82_p4) target bundleno = 541 (0x21d), region = 50  ;;  %103 = vst [vmem:[#allocation2] sm:$0xff] (!%p82_p4), %v332_v1  ;;  %s271_s19 = sshll.u32 (!%p82_p4), %s370_s18, 2  ;;  %vm140_vm3 = vmand (!%p82_p4), %vm122_vm1, %vm139_vm2  ;;  %vm144_vm4 = vcmask (!%p82_p4), 23568   ;;  %vm161_vm5 = vcmask (!%p82_p4), 1047554  }
  0x11   : > { %s94_s20 = scalar_lea.vmem (!%p82_p4), [#allocation1], %s271_s19  ;;  %vm162_vm6 = vmand (!%p82_p4), %vm144_vm4, %vm161_vm5  ;;  %s98_s21 = scalar_lea.vmem (!%p82_p4), [#allocation3], %s271_s19 }
  0x12   : > { %v101_v5 = vld [vmem:[%s94_s20] sm:$0xf] (!%p82_p4)  ;;  %s179_s25 = scalar_lea.vmem (!%p82_p4), %s391_s1, %s274_s22 }
  0x13   : > { %102 = vst [vmem:[#allocation0] sm:$0xf] (!%p82_p4), %v101_v5 }
  0x17   : > { %v105_v2 = vld [vmem:[#allocation2] ss:$0 sm:$0xff] }
  0x18   : > { %v107_v3 = vmul.f32 %v105_v2, %v105_v2  ;;  %v114_v4 = vmul.f32 0.0, %v105_v2 }
  0x1a   : > { %108 = vadd.xlane.f32.xlu0 %v107_v3  ;;  %v106_v6 = vld [vmem:[#allocation0] ss:$0 sm:$0xff]  ;;  %v126_v18 = vld [vmem:[#allocation0 + $0x1] ss:$0 sm:$0xff]  ;;  %v148_v30 = vld [vmem:[#allocation0 + $0x2] ss:$0 sm:$0xff] }
  0x1b   : > { %v112_v10 = vld [vmem:[#allocation0] sm:$0xff] }
  0x1e   : > { %115 = vadd.xlane.f32.xlu0 %v114_v4 }
  0xa7   : > { %v109_v7 = vpop.xlane.xlu0 %108 }
  0xa8   : > { %v110_v8 = vsub.f32 %v106_v6, %v109_v7 }
  0xaa   : > { %302 = vrsqrt.f32 %v110_v8 }
  0xab   : > { %v116_v9 = vpop.xlane.xlu0 %115 }
  0xac   : > { %v117_v11 = vsub.f32 %v112_v10, %v116_v9 }
  0xb4   : > { %v303_v12 = vpop.eup %302 }
  0xb5   : > { %v118_v13 = vmul.f32 %v303_v12, %v117_v11 }
  0xb7   : > { %v119_v14 = vsel %vm104_vm0, %v118_v13, 0.0 }
  0xb8   : > { %121 = vst [vmem:[#allocation2] sm:$0xff] %v119_v14 }
  0xbf   : > { %v124_v15 = vld [vmem:[#allocation2 + $0x1] ss:$0 sm:$0xff] }
  0xc0   : > { %v127_v16 = vmul.f32 %v124_v15, %v124_v15  ;;  %v134_v17 = vmul.f32 %v124_v15, %v119_v14 }
  0xc2   : > { %128 = vadd.xlane.f32.xlu1 %v127_v16 }
  0xc6   : > { %135 = vadd.xlane.f32.xlu1 %v134_v17 }
 0x14f   : > { %v129_v19 = vpop.xlane.xlu1 %128 }
 0x150   : > { %v130_v20 = vsub.f32 %v126_v18, %v129_v19 }
 0x152   : > { %304 = vrsqrt.f32 %v130_v20 }
 0x153   : > { %v136_v21 = vpop.xlane.xlu1 %135 }
 0x154   : > { %v137_v22 = vsub.f32 %v112_v10, %v136_v21 }
 0x15c   : > { %v305_v23 = vpop.eup %304 }
 0x15d   : > { %v138_v24 = vmul.f32 %v305_v23, %v137_v22 }
 0x15f   : > { %v141_v25 = vsel %vm140_vm3, %v138_v24, 0.0 }
 0x160   : > { %v142_v26 = vadd.f32 %v141_v25, %v119_v14 }
 0x162   : > { %143 = vst [vmem:[#allocation2] sm:$0xff] %v142_v26 }
 0x169   : > { %v146_v27 = vld [vmem:[#allocation2 + $0x2] ss:$0 sm:$0xff] }
 0x16a   : > { %v156_v28 = vmul.f32 %v146_v27, %v142_v26  ;;  %v149_v29 = vmul.f32 %v146_v27, %v146_v27 }
 0x16c   : > { %157 = vadd.xlane.f32.xlu1 %v156_v28  ;;  %150 = vadd.xlane.f32.xlu0 %v149_v29 }
 0x1f9   : > { %v151_v31 = vpop.xlane.xlu0 %150  ;;  %v158_v33 = vpop.xlane.xlu1 %157 }
 0x1fa   : > { %v152_v32 = vsub.f32 %v148_v30, %v151_v31  ;;  %v159_v34 = vsub.f32 %v112_v10, %v158_v33 }
 0x1fc   : > { %306 = vrsqrt.f32 %v152_v32 }
 0x206   : > { %v307_v35 = vpop.eup %306 }
 0x207   : > { %v160_v36 = vmul.f32 %v307_v35, %v159_v34 }
 0x209   : > { %v163_v37 = vsel %vm162_vm6, %v160_v36, 0.0 }
 0x20a   : > { %v164_v38 = vadd.f32 %v163_v37, %v142_v26 }
 0x20c   : > { %165 = vst [vmem:[#allocation2] sm:$0xff] %v164_v38 }
 0x213   : > { %v169_v39 = vld [vmem:[#allocation2] sm:$0xf] }
 0x214   : > { %171 = vst [vmem:[%s98_s21] sm:$0xf] %v169_v39 }
 0x21b   : > { %v195_v40 = vld [vmem:[%s98_s21] sm:$0xf] }
 0x21c   : > { %196 = vst [vmem:[%s179_s25] sm:$0xf] %v195_v40 }
 0x21d PF: > { %s7_s8 = sadd.s32 1, %s330_s8   ;;  %s392_s6 = smov %s326_s7 }
 0x21e   : > { %p4_p5 = scmp.ge.s32.totalorder %s7_s8, 4   ;;  %s393_s7 = smov %s395_s10 }
 0x220   :  { %6 = sbr.rel (!%p4_p5) target bundleno = 2 (0x2), region = 114 }

// kernel: custom-call.64
= control target key start
LH: loop header
LB: loop body
LE: loop exit
PB: predicated region body
PF: predicated region fallthrough
CT: control target
= control target key end

     0   :  { %s343_s6 = smov 0   ;;  %s345_s7 = smov 0   ;;  %s390_s0 = inlined_call_operand.vmem [shape: f32[2,1,3,3], index: 0, kind: input, shape index: {}]   ;;  %s391_s1 = inlined_call_operand.vmem [shape: f32[2,1,3,3], index: 1, kind: output, shape index: {}]  }
   0x1   :  { %s347_s8 = smov 0  }
   0x2 LB: > { %s269_s9 = sadd.s32 4294967295, %s330_s8   ;;  %s33_s10 = sadd.s32 1, %s326_s7  ;;  %s330_s8 = sphi %s347_s8, %s7_s8   ;;  %s326_s7 = sphi %s345_s7, %s393_s7   ;;  %s322_s6 = sphi %s343_s6, %s392_s6  }
   0x3   : > { %p35_p0 = scmp.ge.s32.totalorder %s33_s10, 2  ;;  %p271_p1 = scmp.ge.s32.totalorder %s330_s8, 2 }
   0x4   : > { %s49_s11 = sand.u32 (!%p271_p1), 1, %s330_s8   ;;  %s273_s12 = sshll.u32 (!%p271_p1), %s326_s7, 2 }
   0x5   : > { %s395_s10 = smov (%p35_p0, %s33_s10), 0  ;;  %47 = sbr.rel (%p271_p1) target bundleno = 12 (0xc), region = 16 }
   0x6   : > { %s272_s13 = sshll.u32 (!%p271_p1), %s49_s11, 2  ;;  %s56_s16 = scalar_lea.vmem (!%p271_p1), %s390_s0, %s273_s12 }
   0x7   : > { %v72_v0 = vld [vmem:[%s56_s16] sm:$0xf] (!%p271_p1)  ;;  %s51_s17 = scalar_lea.vmem (!%p271_p1), [#allocation1], %s272_s13 }
   0x8   : > { %73 = vst [vmem:[%s51_s17] sm:$0xf] (!%p271_p1), %v72_v0 }
   0xc PF: > { %p274_p2 = scmp.ge.s32.totalorder %s330_s8, 1  ;;  %p89_p3 = scmp.lt.s32.totalorder %s330_s8, 3 }
   0xe   : > { %p90_p4 = pnand %p274_p2, %p89_p3 }
  0x10   : > { %93 = sbr.rel (%p90_p4) target bundleno = 511 (0x1ff), region = 50 }
  0x17   : > { %s370_s18 = sand.u32 1, %s269_s9   ;;  %v111_v1 = vlaneseq  ;;  %v332_v11 = vmov -1.0   ;;  %s278_s22 = sshll.u32 %s322_s6, 2 }
  0x18   : > { %s275_s19 = sshll.u32 %s370_s18, 2  ;;  %s178_s25 = scalar_lea.vmem %s391_s1, %s278_s22 }
  0x19   : > { %s102_s20 = scalar_lea.vmem [#allocation1], %s275_s19  ;;  %v112_v3 = vand.u32 127, %v111_v1  ;;  %v115_v4 = vshrl.u32 %v111_v1, 7  ;;  %s106_s21 = scalar_lea.vmem [#allocation3], %s275_s19 }
  0x1a   : > { %v109_v2 = vld [vmem:[%s102_s20] sm:$0xf] }
  0x1b   : > { %110 = vst [vmem:[#allocation0] sm:$0xf] %v109_v2  ;;  %vm113_vm0 = vcmp.lt.s32.totalorder %v112_v3, 3  ;;  %vm122_vm1 = vcmp.ge.s32.totalorder %v115_v4, %v112_v3  ;;  %vm117_vm2 = vcmp.eq.s32.totalorder %v115_v4, %v112_v3  ;;  %vm136_vm4 = vcmp.eq.s32.totalorder %v112_v3, 0 }
  0x1c   : > { %vm123_vm3 = vmand %vm122_vm1, %vm113_vm0  ;;  %vm133_vm5 = vcmp.eq.s32.totalorder %v112_v3, %v115_v4  ;;  %v137_v12 = vsel %vm136_vm4, 1.0, %v332_v11  ;;  %vm144_vm6 = vcmp.eq.s32.totalorder %v112_v3, 1  ;;  %vm154_vm7 = vcmp.eq.s32.totalorder %v112_v3, 2 }
  0x1d   : > { %v138_v13 = vsel %vm133_vm5, %v137_v12, 0.0 }
  0x22   : > { %v118_v5 = vld [vmem:[#allocation0] sm:$0xff] }
  0x23   : > { %v119_v6 = vsel %vm117_vm2, %v118_v5, 0.0  ;;  %v124_v7 = vsel %vm123_vm3, %v118_v5, 0.0 }
  0x24   : > { %120 = vadd.xlane.f32.xlu0 %v119_v6 }
  0xb1   : > { %v121_v8 = vpop.xlane.xlu0 %120 }
  0xb2   : > { %306 = vrcp.f32 %v121_v8  ;;  %vm161_vm8 = vweird.f32 %v121_v8 }
  0xbc   : > { %v307_v9 = vpop.eup %306 }
  0xbd   : > { %v126_v10 = vmul.f32 %v307_v9, %v124_v7 }
  0xbf   : > { %127 = vst [vmem:[#allocation4] sm:$0xff] %v126_v10 }
  0xc6   : > { %v140_v14 = vld [vmem:[#allocation4 + $0x1] ss:$0 sm:$0xff]  ;;  %v150_v17 = vld [vmem:[#allocation4 + $0x2] ss:$0 sm:$0xff] }
  0xc7   : > { %v141_v15 = vxor.u32 2147483648, %v140_v14  ;;  %v151_v19 = vxor.u32 2147483648, %v150_v17 }
  0xc9   : > { %v145_v16 = vmul.f32 %v141_v15, %v138_v13 }
  0xcb   : > { %146 = vadd.xlane.f32.xlu0 %v145_v16 }
 0x158   : > { %v147_v18 = vpop.xlane.xlu0 %146 }
 0x159   : > { %v148_v20 = vsel %vm144_vm6, %v147_v18, %v138_v13 }
 0x15a   : > { %v155_v21 = vmul.f32 %v151_v19, %v148_v20 }
 0x15c   : > { %156 = vadd.xlane.f32.xlu1 %v155_v21 }
 0x1e9   : > { %v157_v22 = vpop.xlane.xlu1 %156 }
 0x1ea   : > { %v158_v23 = vsel %vm154_vm7, %v157_v22, %v148_v20 }
 0x1eb   : > { %v160_v24 = vmul.f32 %v307_v9, %v158_v23 }
 0x1ed   : > { %v162_v25 = vsel %vm161_vm8, %v158_v23, %v160_v24 }
 0x1ee   : > { %163 = vst [vmem:[#allocation2] sm:$0xff] %v162_v25 }
 0x1f5   : > { %v167_v26 = vld [vmem:[#allocation2] sm:$0xf] }
 0x1f6   : > { %169 = vst [vmem:[%s106_s21] sm:$0xf] %v167_v26 }
 0x1fd   : > { %v194_v27 = vld [vmem:[%s106_s21] sm:$0xf] }
 0x1fe   : > { %195 = vst [vmem:[%s178_s25] sm:$0xf] %v194_v27 }
 0x1ff PF: > { %s7_s8 = sadd.s32 1, %s330_s8   ;;  %s392_s6 = smov %s326_s7 }
 0x200   : > { %p4_p5 = scmp.ge.s32.totalorder %s7_s8, 4   ;;  %s393_s7 = smov %s395_s10 }
 0x202   :  { %6 = sbr.rel (!%p4_p5) target bundleno = 2 (0x2), region = 112 }

// kernel: custom-call.22
= control target key start
LH: loop header
LB: loop body
LE: loop exit
PB: predicated region body
PF: predicated region fallthrough
CT: control target
= control target key end

     0   :  { %s1704_s30 = smov 0   ;;  %s1706_s10 = smov 0   ;;  %s2030_s0 = inlined_call_operand.vmem [shape: f32[2,2,2], index: 0, kind: input, shape index: {}]   ;;  %s2031_s1 = inlined_call_operand.vmem [shape: f32[2,2,2], index: 1, kind: input, shape index: {}]   ;;  %s2032_s2 = inlined_call_operand.vmem [shape: f32[2,2,2], index: 2, kind: input, shape index: {}]   ;;  %s2033_s3 = inlined_call_operand.vmem [shape: f32[2,2,2], index: 3, kind: input, shape index: {}]   ;;  %s2034_s4 = inlined_call_operand.vmem [shape: f32[2,2], index: 4, kind: output, shape index: {0}]   ;;  %s2035_s5 = inlined_call_operand.vmem [shape: f32[2,2], index: 5, kind: output, shape index: {1}]   ;;  %s2036_s6 = inlined_call_operand.vmem [shape: f32[2,2,2], index: 6, kind: output, shape index: {2}]   ;;  %s2037_s7 = inlined_call_operand.vmem [shape: f32[2,2,2], index: 7, kind: output, shape index: {3}]   ;;  %s2038_s8 = inlined_call_operand.vmem [shape: f32[2,2,2], index: 8, kind: output, shape index: {4}]   ;;  %s2039_s9 = inlined_call_operand.vmem [shape: f32[2,2,2], index: 9, kind: output, shape index: {5}]  }
   0x1   :  { %s1708_s11 = smov 0  }
   0x2 LB: > { %s1720_s12 = sadd.s32 4294967295, %s1641_s11   ;;  %s1723_s13 = sadd.s32 1, %s1641_s11   ;;  %s1641_s11 = sphi %s1708_s11, %s2058_s11   ;;  %s1637_s10 = sphi %s1706_s10, %s2057_s10   ;;  %s1633_s30 = sphi %s1704_s30, %s2056_s30  }
   0x3   : > { %s20_s14 = sshrl.u32 %s1641_s11, 3  ;;  %s21_s15 = sshrl.u32 %s1723_s13, 3 }
   0x4   : > { %s22_s16 = ssub.s32 %s20_s14, %s21_s15  ;;  %s25_s17 = sadd.s32 1, %s1637_s10 }
   0x5   : > { %p23_p0 = scmp.eq.s32.totalorder %s22_s16, 0  ;;  %p35_p1 = scmp.ne.s32.totalorder %s1637_s10, %s1633_s30 }
   0x6   : > { %p36_p2 = scmp.eq.s32.totalorder %s1720_s12, 1  ;;  %p1502_p4 = scmp.ge.s32.totalorder %s1641_s11, 2 }
   0x7   : > { %s1732_s18 = scalar_select %p23_p0, %s1637_s10, %s25_s17  }
   0x8   : > { %p1734_p3 = por %p36_p2, %p35_p1  ;;  %86 = sbr.rel (%p1502_p4) target bundleno = 17 (0x11), region = 16 }
   0x9   : > { %2040 = sst [smem:[#allocation33_spill]] %s1732_s18  ;;  %s88_s20 = sand.u32 (!%p1502_p4), 1, %s1641_s11  }
   0xa   : > { %s1504_s21 = sshll.u32 (!%p1502_p4), %s1641_s11, 1  ;;  %s1503_s22 = sshll.u32 (!%p1502_p4), %s88_s20, 1 }
   0xb   : > { %s92_s25 = scalar_lea.vmem (!%p1502_p4), %s2030_s0, %s1504_s21  ;;  %s90_s26 = scalar_lea.vmem (!%p1502_p4), [#allocation1], %s1503_s22 }
   0xc   : > { %v108_v0 = vld [vmem:[%s92_s25] sm:$0x3] (!%p1502_p4)  ;;  %s129_s29 = scalar_lea.vmem (!%p1502_p4), %s2031_s1, %s1504_s21  ;;  %s166_s16 = scalar_lea.vmem (!%p1502_p4), %s2032_s2, %s1504_s21 }
   0xd   : > { %109 = vst [vmem:[%s90_s26] sm:$0x3] (!%p1502_p4), %v108_v0  ;;  %v145_v1 = vld [vmem:[%s129_s29] sm:$0x3] (!%p1502_p4)  ;;  %s127_s17 = scalar_lea.vmem (!%p1502_p4), [#allocation3], %s1503_s22  ;;  %s203_s23 = scalar_lea.vmem (!%p1502_p4), %s2033_s3, %s1504_s21 }
   0xe   : > { %146 = vst [vmem:[%s127_s17] sm:$0x3] (!%p1502_p4), %v145_v1  ;;  %v182_v2 = vld [vmem:[%s166_s16] sm:$0x3] (!%p1502_p4)  ;;  %s164_s24 = scalar_lea.vmem (!%p1502_p4), [#allocation5], %s1503_s22  ;;  %s201_s25 = scalar_lea.vmem (!%p1502_p4), [#allocation7], %s1503_s22 }
   0xf   : > { %183 = vst [vmem:[%s164_s24] sm:$0x3] %v182_v2  ;;  %v219_v3 = vld [vmem:[%s203_s23] sm:$0x3] }
  0x10   : > { %220 = vst [vmem:[%s201_s25] sm:$0x3] %v219_v3 }
  0x11 PF: > { %p1511_p5 = scmp.ge.s32.totalorder %s1641_s11, 1  ;;  %p236_p6 = scmp.lt.s32.totalorder %s1641_s11, 3 }
  0x13   : > { %p237_p7 = pnand %p1511_p5, %p236_p6 }
  0x15   : > { %240 = sbr.rel (%p237_p7) target bundleno = 999 (0x3e7), region = 140 }
  0x1c   : > { %s259_s26 = sand.u32 1, %s1720_s12   ;;  %s277_s27 = sand.u32 1, %s1633_s30   ;;  %v337_v4 = vlaneseq  ;;  %v1651_v5 = vmov 0.0  }
  0x1d   : > { %s1757_s28 = sshll.u32 %s259_s26, 1  ;;  %s1759_s18 = sshll.u32 %s277_s27, 1  ;;  %332 = vst [vmem:[#allocation12] sm:$0xff] %v1651_v5  ;;  %333 = vst [vmem:[#allocation14] sm:$0xff] %v1651_v5 }
  0x1e   : > { %334 = vst [vmem:[#allocation16] sm:$0xff] %v1651_v5  ;;  %335 = vst [vmem:[#allocation18] sm:$0xff] %v1651_v5  ;;  %v1761_v6 = vand.u32 127, %v337_v4  ;;  %v1763_v7 = vshrl.u32 %v337_v4, 7  ;;  %s261_s11 = scalar_lea.vmem [#allocation1], %s1757_s28  ;;  %s265_s30 = scalar_lea.vmem [#allocation3], %s1757_s28 }
  0x1f   : > { %v304_v8 = vld [vmem:[%s261_s11] sm:$0x3]  ;;  %v308_v9 = vld [vmem:[%s265_s30] sm:$0x3]  ;;  %s269_s21 = scalar_lea.vmem [#allocation5], %s1757_s28  ;;  %s273_s22 = scalar_lea.vmem [#allocation7], %s1757_s28 }
  0x20   : > { %305 = vst [vmem:[#allocation0] sm:$0x3] %v304_v8  ;;  %309 = vst [vmem:[#allocation2] sm:$0x3] %v308_v9  ;;  %v312_v10 = vld [vmem:[%s269_s21] sm:$0x3]  ;;  %v339_v6 = vmov %v1761_v6  ;;  %v342_v7 = vmov %v1763_v7 }
  0x21   : > { %v316_v11 = vld [vmem:[%s273_s22] sm:$0x3]  ;;  %313 = vst [vmem:[#allocation4] sm:$0x3] %v312_v10  ;;  %v352_v6 = vmov %v1761_v6  ;;  %v355_v7 = vmov %v1763_v7  ;;  %s320_s29 = smov [#allocation20]  ;;  %s323_s14 = smov [#allocation21]  ;;  %vm346_vm0 = vcmp.eq.s32.totalorder %v342_v7, %v339_v6 }
  0x22   : > { %317 = vst [vmem:[#allocation6] sm:$0x3] %v316_v11  ;;  %vm359_vm1 = vcmp.eq.s32.totalorder %v355_v7, %v352_v6  ;;  %s336_s15 = smov [#allocation12]  ;;  %s349_s16 = smov [#allocation18]  ;;  %vm1391_vm2 = vcmp.lt.s32.totalorder %v1761_v6, 2  ;;  %v1383_v6 = vmov %v1761_v6  ;;  %v1386_v7 = vmov %v1763_v7 }
  0x23   : > { %s326_s17 = smov [#allocation22]  ;;  %s329_s20 = smov [#allocation23]  ;;  %vm1396_vm3 = vcmp.eq.s32.totalorder %v1386_v7, %v1383_v6  ;;  %v1434_v6 = vmov %v1761_v6  ;;  %v1403_v7 = vmov %v1763_v7 }
  0x24   : > { %v343_v12 = vld [vmem:[%s336_s15] sm:$0x3]  ;;  %s1387_s30 = smov [#allocation20]  ;;  %s1404_s21 = smov [#allocation21]  ;;  %v1400_v6 = vmov %v1761_v6  ;;  %v1437_v7 = vmov %v1763_v7 }
  0x25   : > { %v356_v13 = vld [vmem:[%s349_s16] sm:$0x3]  ;;  %v347_v16 = vsel %vm346_vm0, 1.0, %v343_v12  ;;  %s1421_s22 = smov [#allocation22]  ;;  %v1417_v6 = vmov %v1761_v6  ;;  %v1420_v7 = vmov %v1763_v7  ;;  %vm1447_vm4 = vcmp.eq.s32.totalorder %v1437_v7, %v1434_v6 }
  0x26   : > { %v360_v17 = vsel %vm359_vm1, 1.0, %v356_v13  ;;  %348 = vst [vmem:[%s336_s15] sm:$0x3] %v347_v16 }
  0x27   : > { %v321_v14 = vld [vmem:[#allocation0] sm:$0xff]  ;;  %v324_v15 = vld [vmem:[#allocation2] sm:$0xff]  ;;  %361 = vst [vmem:[%s349_s16] sm:$0x3] %v360_v17 }
  0x28   : > { %322 = vst [vmem:[%s320_s29] sm:$0xff] %v321_v14  ;;  %325 = vst [vmem:[%s323_s14] sm:$0xff] %v324_v15  ;;  %v327_v18 = vld [vmem:[#allocation4] sm:$0xff]  ;;  %s1438_s29 = smov [#allocation23] }
  0x29   : > { %v330_v19 = vld [vmem:[#allocation6] sm:$0xff]  ;;  %328 = vst [vmem:[%s326_s17] sm:$0xff] %v327_v18 }
  0x2a   : > { %331 = vst [vmem:[%s329_s20] sm:$0xff] %v330_v19 }
  0x2f   : > { %v1393_v20 = vld [vmem:[%s1387_s30] sm:$0x3] }
  0x30   : > { %v1410_v21 = vld [vmem:[%s1404_s21] sm:$0x3]  ;;  %v1394_v22 = vsel %vm1391_vm2, %v1393_v20, 0.0 }
  0x31   : > { %v1411_v23 = vsel %vm1391_vm2, %v1410_v21, 0.0  ;;  %v1427_v24 = vld [vmem:[%s1421_s22] sm:$0x3]  ;;  %v1395_v26 = vmul.f32 %v1394_v22, %v1394_v22 }
  0x32   : > { %v1444_v25 = vld [vmem:[%s1438_s29] sm:$0x3]  ;;  %v1412_v27 = vmul.f32 %v1411_v23, %v1411_v23  ;;  %v1428_v28 = vsel %vm1391_vm2, %v1427_v24, 0.0 }
  0x33   : > { %v1445_v29 = vsel %vm1391_vm2, %v1444_v25, 0.0  ;;  %v1429_v30 = vmul.f32 %v1428_v28, %v1428_v28  ;;  %v1397_v33 = vsel %vm1396_vm3, 0.0, %v1395_v26 }
  0x34   : > { %v1414_v31 = vadd.f32 %v1412_v27, %v1395_v26  ;;  %v1446_v32 = vmul.f32 %v1445_v29, %v1445_v29  ;;  %v1413_v34 = vadd.f32 %v1412_v27, %v1397_v33 }
  0x36   : > { %v1431_v35 = vadd.f32 %v1429_v30, %v1414_v31  ;;  %v1430_v36 = vadd.f32 %v1429_v30, %v1413_v34  ;;  %v1448_v37 = vsel %vm1447_vm4, 0.0, %v1446_v32 }
  0x38   : > { %v1450_v38 = vadd.f32 %v1446_v32, %v1431_v35  ;;  %v1449_v39 = vadd.f32 %v1448_v37, %v1430_v36 }
  0x3a   : > { %1451 = vadd.xlane.f32.xlu0 %v1450_v38 }
  0x3e   : > { %1459 = vadd.xlane.f32.xlu0 %v1449_v39 }
  0xc7   : > { %v1452_v40 = vpop.xlane.xlu0 %1451 }
  0xc8   : > { %v1453_v41 = vrot.slane %v1452_v40, 4 }
  0xca   : > { %v1454_v42 = vadd.f32 %v1453_v41, %v1452_v40 }
  0xcb   : > { %v1460_v43 = vpop.xlane.xlu0 %1459 }
  0xcc   : > { %v1455_v44 = vrot.slane %v1454_v42, 2  ;;  %v1461_v45 = vrot.slane %v1460_v43, 4 }
  0xce   : > { %v1462_v46 = vadd.f32 %v1461_v45, %v1460_v43  ;;  %v1456_v47 = vadd.f32 %v1455_v44, %v1454_v42 }
  0xd0   : > { %v1463_v48 = vrot.slane %v1462_v46, 2  ;;  %v1457_v50 = vrot.slane %v1456_v47, 1 }
  0xd2   : > { %v1464_v49 = vadd.f32 %v1463_v48, %v1462_v46  ;;  %v1458_v53 = vadd.f32 %v1457_v50, %v1456_v47 }
  0xd4   : > { %v1465_v51 = vrot.slane %v1464_v49, 1 }
  0xd6   : > { %v1466_v52 = vadd.f32 %v1465_v51, %v1464_v49 }
  0xd8   : > { %1552 = vpush %v1466_v52 }
  0xd9   : > { %1554 = vpush %v1458_v53 }
 0x109   : > { %s1553_s14 = spop %1552 }
 0x10a   : > { %s1555_s15 = spop %1554 }
 0x10b   : > { %s1469_s16 = smul.f32 1e-10, %s1555_s15 }
 0x10d   : > { %p1470_p8 = scmp.le.f32.partialorder %s1553_s14, %s1469_s16 }
 0x10e   : > { %s1797_s17 = smov (!%p1470_p8), 0  }
 0x10f   : > { %1473 = sbr.rel (%p1470_p8) target bundleno = 953 (0x3b9), region = 467 }
 0x116 LB: >> { %s1802_s20 = smov 0   ;;  %s1645_s17 = sphi %s1797_s17, %s2042_s17  }
 0x117 LB: >>> { %s466_s30 = smov [#allocation20]  ;;  %v470_v6 = vmov %v1761_v6  ;;  %v473_v7 = vmov %v1763_v7  ;;  %s486_s21 = smov [#allocation21]  ;;  %vm789_vm14 = vcmp.eq.s32.totalorder %v1763_v7, 0  ;;  %vm801_vm15 = vcmp.eq.s32.totalorder %v1763_v7, 1  ;;  %s1649_s20 = sphi %s1802_s20, %s465_s20  }
 0x118   : >>> { %v490_v6 = vmov %v1761_v6  ;;  %v493_v7 = vmov %v1763_v7  ;;  %v474_v54 = vld [vmem:[%s466_s30] sm:$0x3]  ;;  %vm477_vm5 = vcmp.eq.s32.totalorder %v473_v7, %v470_v6  ;;  %s506_s22 = smov [#allocation23]  ;;  %s467_s29 = smov [#allocation24] }
 0x119   : >>> { %vm497_vm6 = vcmp.eq.s32.totalorder %v493_v7, %v490_v6  ;;  %v510_v6 = vmov %v1761_v6  ;;  %v513_v7 = vmov %v1763_v7  ;;  %v478_v55 = vsel %vm477_vm5, %v474_v54, 0.0  ;;  %v494_v56 = vld [vmem:[%s486_s21] sm:$0x3]  ;;  %s487_s14 = smov [#allocation25]  ;;  %s507_s15 = smov [#allocation26] }
 0x11a   : >>> { %vm517_vm7 = vcmp.eq.s32.totalorder %v513_v7, %v510_v6  ;;  %v479_v57 = vrot.slane %v478_v55, 4  ;;  %v498_v58 = vsel %vm497_vm6, %v494_v56, 0.0  ;;  %v514_v59 = vld [vmem:[%s506_s22] sm:$0x3]  ;;  %s530_s16 = smov [#allocation25]  ;;  %s528_s30 = smov [#allocation24]  ;;  %v579_v6 = vmov %v1761_v6 }
 0x11b   : >>> { %v499_v60 = vrot.slane %v498_v58, 4  ;;  %v518_v61 = vsel %vm517_vm7, %v514_v59, 0.0  ;;  %s532_s21 = smov [#allocation26]  ;;  %s567_s22 = smov [#allocation27]  ;;  %v582_v7 = vmov %v1763_v7  ;;  %v594_v6 = vmov %v1761_v6 }
 0x11c   : >>> { %v480_v62 = vadd.f32 %v479_v57, %v478_v55  ;;  %v519_v63 = vrot.slane %v518_v61, 4  ;;  %v597_v7 = vmov %v1763_v7  ;;  %vm584_vm12 = vcmp.eq.s32.totalorder %v582_v7, %v579_v6  ;;  %s1821_s24 = smov [#allocation22]  ;;  %s1827_s23 = smov [#allocation14] }
 0x11d   : >>> { %v500_v0 = vadd.f32 %v499_v60, %v498_v58  ;;  %vm599_vm13 = vcmp.eq.s32.totalorder %v597_v7, %v594_v6  ;;  %s829_s11 = smov [#allocation31]  ;;  %s1833_s27 = smov [#allocation18]  ;;  %v615_v55 = vld [vmem:[%s1821_s24] sm:$0x3]  ;;  %v692_v6 = vmov %v1761_v6  ;;  %v695_v7 = vmov %v1763_v7 }
 0x11e   : >>> { %v481_v1 = vrot.slane %v480_v62, 2  ;;  %v520_v2 = vadd.f32 %v519_v63, %v518_v61  ;;  %v838_v58 = vld [vmem:[%s1827_s23] sm:$0x3]  ;;  %s607_s26 = smov [#allocation32]  ;;  %s831_s25 = smov [#allocation32]  ;;  %v706_v6 = vmov %v1761_v6  ;;  %v709_v7 = vmov %v1763_v7 }
 0x11f   : >>> { %v501_v3 = vrot.slane %v500_v0, 2  ;;  %v840_v61 = vld [vmem:[%s1833_s27] sm:$0x3]  ;;  %vm699_vm0 = vcmp.eq.s32.totalorder %v695_v7, %v692_v6  ;;  %v665_v6 = vmov %v1761_v6  ;;  %v668_v7 = vmov %v1763_v7  ;;  %s465_s20 = sadd.s32 1, %s1649_s20  }
 0x120   : >>> { %v482_v4 = vadd.f32 %v481_v1, %v480_v62  ;;  %v521_v5 = vrot.slane %v520_v2, 2  ;;  %v679_v6 = vmov %v1761_v6  ;;  %v682_v7 = vmov %v1763_v7  ;;  %p462_p9 = scmp.ge.s32.totalorder %s465_s20, 3  }
 0x121   : >>> { %v502_v8 = vadd.f32 %v501_v3, %v500_v0  ;;  %vm714_vm1 = vcmp.eq.s32.totalorder %v709_v7, %v706_v6  ;;  %vm673_vm3 = vcmp.eq.s32.totalorder %v668_v7, %v665_v6  ;;  %vm686_vm4 = vcmp.eq.s32.totalorder %v682_v7, %v679_v6 }
 0x122   : >>> { %v483_v9 = vrot.slane %v482_v4, 1  ;;  %v522_v10 = vadd.f32 %v521_v5, %v520_v2  ;;  %vm728_vm5 = vcmp.eq.s32.totalorder %v1761_v6, 0  ;;  %vm732_vm6 = vcmp.eq.s32.totalorder %v1761_v6, 1 }
 0x123   : >>> { %v503_v11 = vrot.slane %v502_v8, 1  ;;  %v366_v6 = vmov (%p462_p9), %v1761_v6  ;;  %v369_v7 = vmov (%p462_p9), %v1763_v7 }
 0x124   : >>> { %v484_v12 = vadd.f32 %v483_v9, %v482_v4  ;;  %v523_v13 = vrot.slane %v522_v10, 1  ;;  %v419_v6 = vmov (%p462_p9), %v1761_v6  ;;  %vm381_vm7 = vcmp.eq.s32.totalorder (%p462_p9), %v369_v7, %v366_v6 }
 0x125   : >>> { %v504_v14 = vadd.f32 %v503_v11, %v502_v8  ;;  %v422_v7 = vmov (%p462_p9), %v1763_v7  ;;  %v385_v6 = vmov (%p462_p9), %v1761_v6 }
 0x126   : >>> { %485 = vst [vmem:[%s467_s29] sm:$0x1] %v484_v12  ;;  %v524_v15 = vadd.f32 %v523_v13, %v522_v10  ;;  %s569_s29 = smov [#allocation28]  ;;  %v388_v7 = vmov (%p462_p9), %v1763_v7  ;;  %v402_v6 = vmov (%p462_p9), %v1761_v6 }
 0x127   : >>> { %505 = vst [vmem:[%s487_s14] sm:$0x1] %v504_v14  ;;  %s526_s14 = smov [#allocation29]  ;;  %v405_v7 = vmov (%p462_p9), %v1763_v7 }
 0x128   : >>> { %525 = vst [vmem:[%s507_s15] sm:$0x1] %v524_v15  ;;  %s527_s15 = smov [#allocation30]  ;;  %s571_s14 = smov %s526_s14 }
 0x129   : >>> { %s573_s15 = smov %s527_s15 }
 0x12d   : >>> { %v529_v18 = vld [vmem:[%s528_s30] sm:$0xff]  ;;  %s590_s30 = smov [#allocation30] }
 0x12e   : >>> { %v531_v16 = vld [vmem:[%s530_s16] sm:$0xff]  ;;  %v552_v31 = vand.u32 2147483647, %v529_v18  ;;  %s575_s16 = smov [#allocation29] }
 0x12f   : >>> { %v535_v17 = vmul.f32 2.0, %v531_v16  ;;  %v533_v19 = vld [vmem:[%s532_s21] sm:$0xff]  ;;  %v553_v36 = vand.u32 2147483647, %v531_v16  ;;  %s588_s21 = smov [#allocation31] }
 0x130   : >>> { %v534_v20 = vsub.f32 %v533_v19, %v529_v18  ;;  %v554_v32 = vand.u32 2147483647, %v533_v19 }
 0x131   : >>> { %1603 = vrcp.f32 %v535_v17 }
 0x132   : >>> { %v555_v35 = vmin.f32 %v552_v31, %v554_v32 }
 0x134   : >>> { %v556_v37 = vmul.f32 1.1920929e-08, %v555_v35 }
 0x136   : >>> { %vm557_vm11 = vcmp.le.f32.partialorder %v553_v36, %v556_v37 }
 0x13b   : >>> { %v1604_v21 = vpop.eup %1603 }
 0x13c   : >>> { %v537_v22 = vmul.f32 %v1604_v21, %v534_v20 }
 0x13e   : >>> { %v539_v23 = vmul.f32 %v537_v22, %v537_v22  ;;  %vm538_vm10 = vcmp.ge.f32.partialorder %v537_v22, 0.0 }
 0x140   : >>> { %v540_v24 = vadd.f32 1.0, %v539_v23 }
 0x142   : >>> { %1605 = vrsqrt.f32 %v540_v24  ;;  %vm543_vm8 = vcmp.eq.f32.partialorder %v540_v24, inf  ;;  %v546_v26 = vand.u32 2147483648, %v540_v24  ;;  %vm545_vm9 = vcmp.eq.f32.partialorder %v540_v24, 0.0 }
 0x14c   : >>> { %v1606_v25 = vpop.eup %1605 }
 0x14d   : >>> { %v542_v27 = vmul.f32 %v1606_v25, %v540_v24 }
 0x14f   : >>> { %v544_v28 = vsel %vm543_vm8, %v540_v24, %v542_v27  ;;  %vm434_vm8 = vcmp.eq.s32.totalorder (%p462_p9), %v422_v7, %v419_v6 }
 0x150   : >>> { %v547_v29 = vsel %vm545_vm9, %v546_v26, %v544_v28 }
 0x151   : >>> { %v548_v30 = vxor.u32 2147483648, %v547_v29 }
 0x153   : >>> { %v549_v33 = vsel %vm538_vm10, %v547_v29, %v548_v30 }
 0x154   : >>> { %v550_v34 = vadd.f32 %v549_v33, %v537_v22 }
 0x156   : >>> { %1607 = vrcp.f32 %v550_v34 }
 0x160   : >>> { %v1608_v38 = vpop.eup %1607 }
 0x161   : >>> { %v558_v39 = vsel %vm557_vm11, 0.0, %v1608_v38 }
 0x162   : >>> { %v559_v40 = vmul.f32 %v558_v39, %v558_v39  ;;  %v563_v41 = vmul.f32 %v558_v39, %v531_v16 }
 0x164   : >>> { %v560_v42 = vadd.f32 1.0, %v559_v40  ;;  %v564_v43 = vsub.f32 %v529_v18, %v563_v41  ;;  %v566_v44 = vadd.f32 %v563_v41, %v533_v19 }
 0x166   : >>> { %1609 = vrsqrt.f32 %v560_v42  ;;  %568 = vst [vmem:[%s567_s22] sm:$0xff] %v564_v43  ;;  %570 = vst [vmem:[%s569_s29] sm:$0xff] %v566_v44  ;;  %s605_s22 = smov [#allocation31]  ;;  %s1817_s29 = smov [#allocation20] }
 0x167   : >>> { %v613_v53 = vld [vmem:[%s1817_s29] sm:$0x3] }
 0x170   : >>> { %v1610_v45 = vpop.eup %1609 }
 0x171   : >>> { %572 = vst [vmem:[%s571_s14] sm:$0xff] %v1610_v45  ;;  %v562_v46 = vmul.f32 %v1610_v45, %v558_v39  ;;  %s603_s14 = smov [#allocation32] }
 0x173   : >>> { %574 = vst [vmem:[%s573_s15] sm:$0xff] %v562_v46  ;;  %s1819_s15 = smov [#allocation21] }
 0x174   : >>> { %v614_v54 = vld [vmem:[%s1819_s15] sm:$0x3] }
 0x178   : >>> { %v576_v47 = vld [vmem:[%s575_s16] ss:$0 sm:$0xff]  ;;  %s1823_s16 = smov [#allocation23] }
 0x179   : >>> { %v585_v48 = vsel %vm584_vm12, %v576_v47, 0.0  ;;  %v616_v56 = vld [vmem:[%s1823_s16] sm:$0x3] }
 0x17a   : >>> { %586 = vadd.xlane.f32.xlu0 %v585_v48  ;;  %v591_v49 = vld [vmem:[%s590_s30] ss:$0 sm:$0xff]  ;;  %s1825_s30 = smov [#allocation12] }
 0x17b   : >>> { %v600_v50 = vsel %vm599_vm13, %v591_v49, 0.0  ;;  %v837_v57 = vld [vmem:[%s1825_s30] sm:$0x3] }
 0x17e   : >>> { %601 = vadd.xlane.f32.xlu0 %v600_v50 }
 0x207   : >>> { %v587_v51 = vpop.xlane.xlu0 %586 }
 0x208   : >>> { %589 = vst [vmem:[%s588_s21] sm:$0xff] %v587_v51  ;;  %s1829_s21 = smov [#allocation16] }
 0x209   : >>> { %v839_v59 = vld [vmem:[%s1829_s21] sm:$0x3] }
 0x20b   : >>> { %v602_v52 = vpop.xlane.xlu0 %601 }
 0x20c   : >>> { %604 = vst [vmem:[%s603_s14] sm:$0xff] %v602_v52  ;;  %s1853_s14 = smov [#allocation23] }
 0x20f   : >>> { %v606_v60 = vld [vmem:[%s605_s22] sm:$0xff]  ;;  %s1851_s22 = smov [#allocation22] }
 0x210   : >>> { %v830_v62 = vld [vmem:[%s829_s11] sm:$0xff]  ;;  %v617_v63 = vmul.f32 %v613_v53, %v606_v60  ;;  %v620_v0 = vmul.f32 %v614_v54, %v606_v60  ;;  %v624_v1 = vmul.f32 %v615_v55, %v606_v60  ;;  %v627_v2 = vmul.f32 %v616_v56, %v606_v60  ;;  %s1849_s11 = smov [#allocation12] }
 0x211   : >>> { %v841_v3 = vmul.f32 %v837_v57, %v830_v62  ;;  %v844_v4 = vmul.f32 %v838_v58, %v830_v62  ;;  %v848_v5 = vmul.f32 %v839_v59, %v830_v62  ;;  %v851_v8 = vmul.f32 %v840_v61, %v830_v62 }
 0x213   : >>> { %v608_v9 = vld [vmem:[%s607_s26] sm:$0xff]  ;;  %s635_s26 = smov [#allocation30] }
 0x214   : >>> { %v832_v10 = vld [vmem:[%s831_s25] sm:$0xff]  ;;  %v618_v11 = vmul.f32 %v615_v55, %v608_v9  ;;  %v621_v12 = vmul.f32 %v616_v56, %v608_v9  ;;  %v623_v13 = vmul.f32 %v613_v53, %v608_v9  ;;  %v626_v14 = vmul.f32 %v614_v54, %v608_v9  ;;  %s633_s25 = smov [#allocation29] }
 0x215   : >>> { %v842_v15 = vmul.f32 %v839_v59, %v832_v10  ;;  %v845_v16 = vmul.f32 %v840_v61, %v832_v10  ;;  %v847_v17 = vmul.f32 %v837_v57, %v832_v10  ;;  %v850_v18 = vmul.f32 %v838_v58, %v832_v10  ;;  %v634_v27 = vld [vmem:[%s633_s25] ss:$0 sm:$0xff]  ;;  %s662_s25 = smov [#allocation27] }
 0x216   : >>> { %v619_v19 = vsub.f32 %v617_v63, %v618_v11  ;;  %v622_v20 = vsub.f32 %v620_v0, %v621_v12  ;;  %v625_v21 = vadd.f32 %v624_v1, %v623_v13  ;;  %v628_v22 = vadd.f32 %v627_v2, %v626_v14  ;;  %v636_v28 = vld [vmem:[%s635_s26] ss:$0 sm:$0xff]  ;;  %s661_s26 = smov [#allocation20] }
 0x217   : >>> { %v843_v23 = vsub.f32 %v841_v3, %v842_v15  ;;  %v846_v24 = vsub.f32 %v844_v4, %v845_v16  ;;  %v849_v25 = vadd.f32 %v848_v5, %v847_v17  ;;  %v852_v26 = vadd.f32 %v851_v8, %v850_v18  ;;  %v669_v63 = vld [vmem:[%s662_s25] ss:$0 sm:$0xff]  ;;  %s905_s25 = sadd.s32 (%p462_p9), 1, %s1645_s17  }
 0x218   : >>> { %630 = vst [vmem:[%s1819_s15] sm:$0x3] %v622_v20  ;;  %632 = vst [vmem:[%s1823_s16] sm:$0x3] %v628_v22  ;;  %s1855_s15 = smov [#allocation20]  ;;  %s703_s16 = smov [#allocation28] }
 0x219   : >>> { %629 = vst [vmem:[%s1817_s29] sm:$0x3] %v619_v19  ;;  %631 = vst [vmem:[%s1821_s24] sm:$0x3] %v625_v21  ;;  %s1857_s24 = smov [#allocation16]  ;;  %s1865_s29 = smov [#allocation21]  ;;  %v710_v59 = vld [vmem:[%s703_s16] ss:$0 sm:$0xff] }
 0x21a   : >>> { %853 = vst [vmem:[%s1825_s30] sm:$0x3] %v843_v23  ;;  %854 = vst [vmem:[%s1827_s23] sm:$0x3] %v846_v24  ;;  %s1859_s23 = smov [#allocation14]  ;;  %s689_s30 = smov [#allocation22] }
 0x21b   : >>> { %855 = vst [vmem:[%s1829_s21] sm:$0x3] %v849_v25  ;;  %856 = vst [vmem:[%s1833_s27] sm:$0x3] %v852_v26  ;;  %s1863_s27 = smov [#allocation18]  ;;  %s702_s21 = smov [#allocation23] }
 0x21c   : >>> { %s805_s16 = smov [#allocation21]  ;;  %p458_p10 = scmp.ge.s32.totalorder (%p462_p9), %s905_s25, 15 }
 0x21d   : >> { %s2042_s17 = smov (%p462_p9), %s905_s25 }
 0x21f   : >>> { %v644_v30 = vld [vmem:[%s1853_s14] sm:$0x3] }
 0x220   : >>> { %v643_v29 = vld [vmem:[%s1851_s22] sm:$0x3]  ;;  %v652_v36 = vmul.f32 %v644_v30, %v636_v28  ;;  %v655_v42 = vmul.f32 %v644_v30, %v634_v27 }
 0x221   : >>> { %v641_v31 = vld [vmem:[%s1855_s15] sm:$0x3]  ;;  %v651_v35 = vmul.f32 %v643_v29, %v634_v27  ;;  %v654_v37 = vmul.f32 %v643_v29, %v636_v28 }
 0x222   : >>> { %v859_v32 = vld [vmem:[%s1849_s11] ss:$0 sm:$0xff]  ;;  %v1531_v34 = vld [vmem:[%s1849_s11 + $0x1] ss:$0 sm:$0xff]  ;;  %v645_v48 = vmul.f32 %v641_v31, %v634_v27  ;;  %v648_v49 = vmul.f32 %v641_v31, %v636_v28 }
 0x223   : >>> { %v1530_v33 = vld [vmem:[%s1849_s11 - $0x1] sm:$0x2]  ;;  %v1533_v40 = vld [vmem:[%s1857_s24 + $0x1] sm:$0x1]  ;;  %v653_v47 = vsub.f32 %v651_v35, %v652_v36  ;;  %v656_v53 = vadd.f32 %v655_v42, %v654_v37 }
 0x224   : >>> { %v866_v38 = vsel %vm789_vm14, %v859_v32, %v1530_v33  ;;  %v870_v39 = vld [vmem:[%s1857_s24] ss:$0 sm:$0xff]  ;;  %v878_v43 = vsel %vm801_vm15, %v1531_v34, %v1533_v40  ;;  %v1535_v45 = vld [vmem:[%s1859_s23 + $0x1] ss:$0 sm:$0xff] }
 0x225   : >>> { %v883_v41 = vld [vmem:[%s1859_s23] ss:$0 sm:$0xff]  ;;  %869 = vst [vmem:[%s1849_s11] sm:$0x3] %v866_v38  ;;  %880 = vst [vmem:[%s1857_s24] sm:$0x3] %v878_v43  ;;  %v1537_v51 = vld [vmem:[%s1863_s27 + $0x1] sm:$0x1] }
 0x226   : >>> { %v1534_v44 = vld [vmem:[%s1859_s23 - $0x1] sm:$0x2]  ;;  %1532 = vst [vmem:[%s1849_s11 + $0x1] sm:$0x1] %v870_v39  ;;  %v902_v54 = vsel %vm801_vm15, %v1535_v45, %v1537_v51  ;;  %659 = vst [vmem:[%s1851_s22] sm:$0x3] %v653_v47  ;;  %s676_s11 = smov [#allocation21] }
 0x227   : >>> { %v894_v46 = vld [vmem:[%s1863_s27] ss:$0 sm:$0xff]  ;;  %v890_v50 = vsel %vm789_vm14, %v883_v41, %v1534_v44  ;;  %660 = vst [vmem:[%s1853_s14] sm:$0x3] %v656_v53  ;;  %s1907_s22 = smov [#allocation22]  ;;  %s1652_s14 = smov 1  }
 0x228   : >>> { %v642_v52 = vld [vmem:[%s1865_s29] sm:$0x3]  ;;  %893 = vst [vmem:[%s1859_s23] sm:$0x3] %v890_v50  ;;  %904 = vst [vmem:[%s1863_s27] sm:$0x3] %v902_v54  ;;  %s718_s24 = smov [#allocation21]  ;;  %s1910_s27 = smov [#allocation23] }
 0x229   : >>> { %v646_v55 = vmul.f32 %v642_v52, %v636_v28  ;;  %v649_v56 = vmul.f32 %v642_v52, %v634_v27  ;;  %1536 = vst [vmem:[%s1859_s23 + $0x1] sm:$0x1] %v894_v46  ;;  %s1653_s23 = smov 127  }
 0x22b   : >>> { %v647_v57 = vsub.f32 %v645_v48, %v646_v55  ;;  %v650_v58 = vadd.f32 %v649_v56, %v648_v49 }
 0x22d   : >>> { %657 = vst [vmem:[%s1855_s15] sm:$0x3] %v647_v57  ;;  %658 = vst [vmem:[%s1865_s29] sm:$0x3] %v650_v58  ;;  %v696_v60 = vld [vmem:[%s689_s30] sm:$0x3]  ;;  %s717_s15 = smov [#allocation20]  ;;  %s781_s29 = smov [#allocation20] }
 0x22e   : >>> { %v700_v61 = vsel %vm699_vm0, 0.0, %v696_v60  ;;  %v711_v62 = vld [vmem:[%s702_s21] sm:$0x3] }
 0x22f   : >>> { %701 = vst [vmem:[%s689_s30] sm:$0x3] %v700_v61  ;;  %v715_v0 = vsel %vm714_vm1, %v710_v59, %v711_v62  ;;  %s782_s30 = smov [#allocation22] }
 0x230   : >>> { %716 = vst [vmem:[%s702_s21] sm:$0x3] %v715_v0  ;;  %s806_s21 = smov [#allocation23] }
 0x234   : >>> { %v670_v1 = vld [vmem:[%s661_s26] sm:$0x3] }
 0x235   : >>> { %v683_v2 = vld [vmem:[%s676_s11] sm:$0x3]  ;;  %v674_v3 = vsel %vm673_vm3, %v669_v63, %v670_v1 }
 0x236   : >>> { %v687_v4 = vsel %vm686_vm4, 0.0, %v683_v2  ;;  %675 = vst [vmem:[%s661_s26] sm:$0x3] %v674_v3  ;;  %v755_v5 = vld [vmem:[%s1907_s22] sm:$0x3]  ;;  %s370_s26 = smov (%p462_p9), [#allocation20] }
 0x237   : >>> { %688 = vst [vmem:[%s676_s11] sm:$0x3] %v687_v4  ;;  %756 = vrot.lane.b32.xlu0 %v755_v5, %s1652_s14  ;;  %v751_v11 = vld [vmem:[%s1910_s27] sm:$0x3]  ;;  %s389_s11 = smov (%p462_p9), [#allocation21] }
 0x238   : >>> { %v772_v12 = vld [vmem:[%s1910_s27] sm:$0x3] }
 0x239   : >>> { %v754_v30 = vld [vmem:[%s1907_s22] sm:$0x3] }
 0x23d   : >>> { %v723_v8 = vld [vmem:[%s717_s15] sm:$0x3] }
 0x23e   : >>> { %724 = vrot.lane.b32.xlu1 %v723_v8, %s1652_s14  ;;  %v719_v9 = vld [vmem:[%s718_s24] sm:$0x3] }
 0x23f   : >>> { %v740_v10 = vld [vmem:[%s718_s24] sm:$0x3] }
 0x240   : >>> { %v722_v18 = vld [vmem:[%s717_s15] sm:$0x3] }
 0x242   : >>> { %720 = vrot.lane.b32.xlu1 %v719_v9, %s1652_s14 }
 0x246   : >>> { %741 = vrot.lane.b32.xlu1 %v740_v10, %s1653_s23 }
 0x24a   : >>> { %752 = vrot.lane.b32.xlu1 %v751_v11, %s1652_s14  ;;  %s423_s14 = smov (%p462_p9), [#allocation23] }
 0x24e   : >>> { %773 = vrot.lane.b32.xlu1 %v772_v12, %s1653_s23 }
 0x2a9   : >>> { %v757_v20 = vpop.permute.xlu0 %756 }
 0x2aa   : >>> { %v761_v22 = vsel %vm728_vm5, %v755_v5, %v757_v20 }
 0x2b0   : >>> { %v725_v13 = vpop.permute.xlu1 %724 }
 0x2b1   : >>> { %v729_v14 = vsel %vm728_vm5, %v723_v8, %v725_v13 }
 0x2b4   : >>> { %v721_v15 = vpop.permute.xlu1 %720 }
 0x2b5   : >>> { %v733_v16 = vsel %vm732_vm6, %v721_v15, %v729_v14 }
 0x2b6   : >>> { %v739_v17 = vsel %vm1391_vm2, %v733_v16, 0.0 }
 0x2b7   : >>> { %747 = vst [vmem:[%s717_s15] sm:$0x3] %v739_v17 }
 0x2b8   : >>> { %v742_v19 = vpop.permute.xlu1 %741 }
 0x2b9   : >>> { %v746_v21 = vsel %vm732_vm6, %v722_v18, %v742_v19 }
 0x2ba   : >>> { %748 = vst [vmem:[%s718_s24] sm:$0x3] %v746_v21 }
 0x2bc   : >>> { %v753_v23 = vpop.permute.xlu1 %752 }
 0x2bd   : >>> { %v765_v24 = vsel %vm732_vm6, %v753_v23, %v761_v22 }
 0x2be   : >>> { %v783_v25 = vld [vmem:[%s781_s29] ss:$0 sm:$0xff]  ;;  %v1523_v27 = vld [vmem:[%s781_s29 + $0x1] ss:$0 sm:$0xff]  ;;  %v771_v29 = vsel %vm1391_vm2, %v765_v24, 0.0 }
 0x2bf   : >>> { %v1522_v26 = vld [vmem:[%s781_s29 - $0x1] sm:$0x2]  ;;  %779 = vst [vmem:[%s1907_s22] sm:$0x3] %v771_v29  ;;  %s406_s22 = smov (%p462_p9), [#allocation22] }
 0x2c0   : >>> { %v790_v28 = vsel %vm789_vm14, %v783_v25, %v1522_v26  ;;  %v774_v31 = vpop.permute.xlu1 %773 }
 0x2c1   : >>> { %793 = vst [vmem:[%s781_s29] sm:$0x3] %v790_v28  ;;  %v807_v32 = vld [vmem:[%s805_s16] ss:$0 sm:$0xff]  ;;  %v1527_v34 = vld [vmem:[%s805_s16 + $0x1] ss:$0 sm:$0xff]  ;;  %v778_v35 = vsel %vm732_vm6, %v754_v30, %v774_v31 }
 0x2c2   : >>> { %v1526_v33 = vld [vmem:[%s805_s16 - $0x1] sm:$0x2]  ;;  %780 = vst [vmem:[%s1910_s27] sm:$0x3] %v778_v35 }
 0x2c3   : >>> { %v814_v36 = vsel %vm789_vm14, %v807_v32, %v1526_v33 }
 0x2c4   : >>> { %817 = vst [vmem:[%s805_s16] sm:$0x3] %v814_v36 }
 0x2c6   : >>> { %v794_v37 = vld [vmem:[%s782_s30] ss:$0 sm:$0xff]  ;;  %v1525_v38 = vld [vmem:[%s782_s30 + $0x1] sm:$0x1] }
 0x2c7   : >>> { %1524 = vst [vmem:[%s781_s29 + $0x1] sm:$0x1] %v794_v37  ;;  %v802_v39 = vsel %vm801_vm15, %v1523_v27, %v1525_v38  ;;  %464 = sbr.rel (!%p462_p9) target bundleno = 279 (0x117), region = 462 }
 0x2c8   : >>> { %804 = vst [vmem:[%s782_s30] sm:$0x3] %v802_v39 }
 0x2c9   : >>> { %v818_v40 = vld [vmem:[%s806_s21] ss:$0 sm:$0xff]  ;;  %v1529_v41 = vld [vmem:[%s806_s21 + $0x1] sm:$0x1] }
 0x2ca   : >>> { %1528 = vst [vmem:[%s805_s16 + $0x1] sm:$0x1] %v818_v40  ;;  %v826_v42 = vsel %vm801_vm15, %v1527_v34, %v1529_v41 }
 0x2cb   : >>> { %828 = vst [vmem:[%s806_s21] sm:$0x3] %v826_v42 }
 0x2ce   : >> { %v376_v43 = vld [vmem:[%s370_s26] sm:$0x3] }
 0x2cf   : >> { %v377_v45 = vsel %vm1391_vm2, %v376_v43, 0.0  ;;  %v412_v47 = vld [vmem:[%s406_s22] sm:$0x3] }
 0x2d0   : >> { %v378_v49 = vmul.f32 %v377_v45, %v377_v45  ;;  %v413_v51 = vsel %vm1391_vm2, %v412_v47, 0.0 }
 0x2d1   : >> { %v395_v44 = vld [vmem:[%s389_s11] sm:$0x3]  ;;  %v414_v53 = vmul.f32 %v413_v51, %v413_v51 }
 0x2d2   : >> { %v396_v46 = vsel %vm1391_vm2, %v395_v44, 0.0  ;;  %v429_v48 = vld [vmem:[%s423_s14] sm:$0x3]  ;;  %v382_v56 = vsel %vm381_vm7, 0.0, %v378_v49 }
 0x2d3   : >> { %v397_v50 = vmul.f32 %v396_v46, %v396_v46  ;;  %v430_v52 = vsel %vm1391_vm2, %v429_v48, 0.0 }
 0x2d4   : >> { %v431_v55 = vmul.f32 %v430_v52, %v430_v52 }
 0x2d5   : >> { %v399_v54 = vadd.f32 %v397_v50, %v378_v49  ;;  %v398_v57 = vadd.f32 %v397_v50, %v382_v56 }
 0x2d6   : >> { %v435_v60 = vsel %vm434_vm8, 0.0, %v431_v55 }
 0x2d7   : >> { %v416_v58 = vadd.f32 %v414_v53, %v399_v54  ;;  %v415_v59 = vadd.f32 %v414_v53, %v398_v57 }
 0x2d9   : >> { %v437_v61 = vadd.f32 %v431_v55, %v416_v58  ;;  %v436_v62 = vadd.f32 %v435_v60, %v415_v59 }
 0x2db   : >> { %438 = vadd.xlane.f32.xlu0 %v437_v61 }
 0x2df   : >> { %446 = vadd.xlane.f32.xlu0 %v436_v62 }
 0x368   : >> { %v439_v63 = vpop.xlane.xlu0 %438 }
 0x369   : >> { %v440_v0 = vrot.slane %v439_v63, 4 }
 0x36b   : >> { %v441_v1 = vadd.f32 %v440_v0, %v439_v63 }
 0x36c   : >> { %v447_v2 = vpop.xlane.xlu0 %446 }
 0x36d   : >> { %v442_v3 = vrot.slane %v441_v1, 2  ;;  %v448_v4 = vrot.slane %v447_v2, 4 }
 0x36f   : >> { %v449_v5 = vadd.f32 %v448_v4, %v447_v2  ;;  %v443_v8 = vadd.f32 %v442_v3, %v441_v1 }
 0x371   : >> { %v450_v9 = vrot.slane %v449_v5, 2  ;;  %v444_v11 = vrot.slane %v443_v8, 1 }
 0x373   : >> { %v451_v10 = vadd.f32 %v450_v9, %v449_v5  ;;  %v445_v14 = vadd.f32 %v444_v11, %v443_v8 }
 0x375   : >> { %v452_v12 = vrot.slane %v451_v10, 1 }
 0x377   : >> { %v453_v13 = vadd.f32 %v452_v12, %v451_v10 }
 0x379   : >> { %1556 = vpush %v453_v13 }
 0x37a   : >> { %1558 = vpush %v445_v14 }
 0x3aa   : >> { %s1557_s20 = spop %1556 }
 0x3ab   : >> { %s1559_s15 = spop %1558 }
 0x3ac   : >> { %s456_s24 = smul.f32 1e-10, %s1559_s15 }
 0x3ae   : >> { %p457_p11 = scmp.le.f32.partialorder %s1557_s20, %s456_s24 }
 0x3b0   : >> { %p459_p12 = por %p458_p10, %p457_p11 }
 0x3b2   : > { %907 = sbr.rel (!%p459_p12) target bundleno = 278 (0x116), region = 473 }
 0x3b9 PF: > { %s912_s23 = smov [#allocation20]  ;;  %v916_v6 = vmov %v1761_v6  ;;  %v919_v7 = vmov %v1763_v7  ;;  %v967_v15 = vld [vmem:[#allocation12] sm:$0x3]  ;;  %v973_v16 = vld [vmem:[#allocation14] sm:$0x3]  ;;  %s2043_s17 = scalar_lea.vmem [#allocation13], %s1757_s28 }
 0x3ba   : > { %v936_v6 = vmov %v1761_v6  ;;  %v939_v7 = vmov %v1763_v7  ;;  %v920_v17 = vld [vmem:[%s912_s23] sm:$0x3]  ;;  %vm923_vm9 = vcmp.eq.s32.totalorder %v919_v7, %v916_v6  ;;  %969 = vst [vmem:[%s2043_s17] sm:$0x3] %v967_v15  ;;  %s2044_s27 = scalar_lea.vmem [#allocation15], %s1757_s28  ;;  %s932_s29 = smov [#allocation23] }
 0x3bb   : > { %vm943_vm10 = vcmp.eq.s32.totalorder %v939_v7, %v936_v6  ;;  %975 = vst [vmem:[%s2044_s27] sm:$0x3] %v973_v16  ;;  %v979_v18 = vld [vmem:[#allocation16] sm:$0x3]  ;;  %v924_v19 = vsel %vm923_vm9, %v920_v17, 0.0  ;;  %s2045_s16 = scalar_lea.vmem [#allocation17], %s1757_s28  ;;  %s2046_s30 = scalar_lea.vmem [#allocation19], %s1757_s28 }
 0x3bc   : > { %981 = vst [vmem:[%s2045_s16] sm:$0x3] %v979_v18  ;;  %v985_v20 = vld [vmem:[#allocation18] sm:$0x3]  ;;  %v925_v21 = vrot.slane %v924_v19, 4  ;;  %v940_v22 = vld [vmem:[%s932_s29] sm:$0x3] }
 0x3bd   : > { %987 = vst [vmem:[%s2046_s30] sm:$0x3] %v985_v20  ;;  %v944_v23 = vsel %vm943_vm10, %v940_v22, 0.0  ;;  %s908_s21 = sand.u32 7, %s1720_s12   ;;  %s2047_s11 = scalar_lea.vmem [#allocation9], %s1759_s18 }
 0x3be   : > { %v926_v24 = vadd.f32 %v925_v21, %v924_v19  ;;  %v945_v25 = vrot.slane %v944_v23, 4  ;;  %s909_s25 = scalar_lea.vmem [#allocation8], %s908_s21  ;;  %s911_s26 = scalar_lea.vmem [#allocation10], %s908_s21 }
 0x3bf   : > { %s913_s25 = smov %s909_s25  ;;  %s933_s26 = smov %s911_s26 }
 0x3c0   : > { %v927_v26 = vrot.slane %v926_v24, 2  ;;  %v946_v6 = vadd.f32 %v945_v25, %v944_v23  ;;  %s2048_s22 = scalar_lea.vmem [#allocation11], %s1759_s18  ;;  %s1015_s14 = sshrl.u32 (%p1734_p3), %s1720_s12, 3 }
 0x3c1   : > { %s2049_s20 = scalar_lea.vmem (%p1734_p3), [#allocation9], %s1759_s18  ;;  %s1544_s15 = sshll.u32 (%p1734_p3), %s1015_s14, 1 }
 0x3c2   : > { %v928_v7 = vadd.f32 %v927_v26, %v926_v24  ;;  %v947_v27 = vrot.slane %v946_v6, 2  ;;  %s1017_s17 = scalar_lea.vmem (%p1734_p3), %s2034_s4, %s1544_s15 }
 0x3c4   : > { %v929_v28 = vrot.slane %v928_v7, 1  ;;  %v948_v29 = vadd.f32 %v947_v27, %v946_v6 }
 0x3c6   : > { %v930_v30 = vadd.f32 %v929_v28, %v928_v7  ;;  %v949_v31 = vrot.slane %v948_v29, 1 }
 0x3c8   : > { %931 = vst [vmem:[%s913_s25] sm:$0x1] %v930_v30  ;;  %v950_v32 = vadd.f32 %v949_v31, %v948_v29 }
 0x3ca   : > { %951 = vst [vmem:[%s933_s26] sm:$0x1] %v950_v32 }
 0x3cc   : > { %1014 = sbr.rel (!%p1734_p3) target bundleno = 985 (0x3d9), region = 158 }
 0x3cf   : > { %v955_v33 = vld [vmem:[#allocation8] sm:$0x3] }
 0x3d0   : > { %957 = vst [vmem:[%s2047_s11] sm:$0x3] %v955_v33 }
 0x3d1   : > { %v961_v34 = vld [vmem:[#allocation10] sm:$0x3] }
 0x3d2   : > { %963 = vst [vmem:[%s2048_s22] sm:$0x3] %v961_v34 }
 0x3d7   : > { %v1033_v35 = vld [vmem:[%s2049_s20] sm:$0x3] }
 0x3d8   : > { %1034 = vst [vmem:[%s1017_s17] sm:$0x3] %v1033_v35 }
 0x3d9 PF: > { %1051 = sbr.rel (!%p1734_p3) target bundleno = 993 (0x3e1), region = 192  ;;  %s1052_s27 = sshrl.u32 (%p1734_p3), %s1720_s12, 3 }
 0x3da   : > { %s2050_s29 = scalar_lea.vmem (%p1734_p3), [#allocation11], %s1759_s18  ;;  %s1545_s16 = sshll.u32 (%p1734_p3), %s1052_s27, 1 }
 0x3db   : > { %s1054_s25 = scalar_lea.vmem (%p1734_p3), %s2035_s5, %s1545_s16 }
 0x3df   : > { %v1070_v36 = vld [vmem:[%s2050_s29] sm:$0x3] (%p1734_p3) }
 0x3e0   : > { %1071 = vst [vmem:[%s1054_s25] sm:$0x3] %v1070_v36 }
 0x3e1 PF: > { %s1546_s26 = sshll.u32 %s1720_s12, 1  ;;  %s2051_s19 = scalar_lea.vmem [#allocation13], %s1757_s28 }
 0x3e2   : > { %v1103_v37 = vld [vmem:[%s2051_s19] sm:$0x3]  ;;  %s2052_s11 = scalar_lea.vmem [#allocation15], %s1757_s28  ;;  %s1087_s14 = scalar_lea.vmem %s2036_s6, %s1546_s26 }
 0x3e3   : > { %v1136_v38 = vld [vmem:[%s2052_s11] sm:$0x3]  ;;  %s1120_s24 = scalar_lea.vmem %s2037_s7, %s1546_s26  ;;  %s2053_s23 = scalar_lea.vmem [#allocation17], %s1757_s28  ;;  %1104 = vst [vmem:[%s1087_s14] sm:$0x3] %v1103_v37 }
 0x3e4   : > { %v1169_v39 = vld [vmem:[%s2053_s23] sm:$0x3]  ;;  %s2054_s17 = scalar_lea.vmem [#allocation19], %s1757_s28  ;;  %1137 = vst [vmem:[%s1120_s24] sm:$0x3] %v1136_v38  ;;  %s1153_s29 = scalar_lea.vmem %s2038_s8, %s1546_s26 }
 0x3e5   : > { %v1202_v40 = vld [vmem:[%s2054_s17] sm:$0x3]  ;;  %s1186_s21 = scalar_lea.vmem %s2039_s9, %s1546_s26  ;;  %1170 = vst [vmem:[%s1153_s29] sm:$0x3] %v1169_v39 }
 0x3e6   : > { %1203 = vst [vmem:[%s1186_s21] sm:$0x3] %v1202_v40 }
 0x3e7 PF: > { %s2055_s25 = sld [smem:[#allocation33_spill]]  ;;  %p13_p13 = scmp.ge.s32.totalorder %s1723_s13, 4  }
 0x3e8   : > { %s2056_s30 = smov %s1637_s10  ;;  %s2058_s11 = smov %s1723_s13 }
 0x3e9   :  { %15 = sbr.rel (!%p13_p13) target bundleno = 2 (0x2), region = 484 }
 0x3ed   : > { %s2057_s10 = smov %s2055_s25 }

// kernel: reverse
= control target key start
LH: loop header
LB: loop body
LE: loop exit
PB: predicated region body
PF: predicated region fallthrough
CT: control target
= control target key end

     0   :  { %v2_v0 = vlaneseq  ;;  %s105_s0 = inlined_call_operand.vmem [shape: f32[2,3], index: 0, kind: input, shape index: {}]   ;;  %s106_s1 = inlined_call_operand.vmem [shape: f32[2,3], index: 1, kind: output, shape index: {}]  }
   0x2   :  { %v3_v1 = vsub.s32 2, %v2_v0 }
   0x4   :  { %4 = vset.pattern.permute.xlu0 %v3_v1 }
   0x5   :  { %v20_v2 = vld [vmem:[%s105_s0] sm:$0x3] }
   0x6   :  { %21 = vst [vmem:[#allocation1] sm:$0x3] %v20_v2 }
   0xd   :  { %v38_v3 = vld [vmem:[#allocation1] sm:$0x3] }
   0xe   :  { %39 = vst [vmem:[#allocation0] sm:$0x3] %v38_v3 }
  0x15   :  { %v40_v4 = vld [vmem:[#allocation0] sm:$0xff] }
  0x16   :  { %41 = vperm.xlu0 %4, %v40_v4  }
  0x95   :  { %v42_v5 = vpop.permute.xlu0 %41 }
  0x96   :  { %43 = vst [vmem:[#allocation2] sm:$0xff] %v42_v5 }
  0x9d   :  { %v47_v6 = vld [vmem:[#allocation2] sm:$0x3] }
  0x9e   :  { %49 = vst [vmem:[#allocation3] sm:$0x3] %v47_v6 }
  0xa5   :  { %v65_v7 = vld [vmem:[#allocation3] sm:$0x3] }
  0xa6   :  { %66 = vst [vmem:[%s106_s1] sm:$0x3] %v65_v7 }

// kernel: custom-call.16
= control target key start
LH: loop header
LB: loop body
LE: loop exit
PB: predicated region body
PF: predicated region fallthrough
CT: control target
= control target key end

     0   :  { %s653_s9 = smov 0   ;;  %s655_s10 = smov 0   ;;  %s799_s0 = inlined_call_operand.vmem [shape: f32[2,3,3], index: 0, kind: input, shape index: {}]   ;;  %s800_s1 = inlined_call_operand.vmem [shape: f32[2,3,3], index: 1, kind: output, shape index: {0}]   ;;  %s801_s2 = inlined_call_operand.vmem [shape: f32[2,3], index: 2, kind: output, shape index: {1}]  }
   0x1   :  { %s657_s11 = smov 0   ;;  %s659_s12 = smov 0  }
   0x2   :  { %s661_s13 = smov 0  }
   0x3 LB: > { %s28_s14 = sadd.s32 1, %s626_s12  ;;  %s508_s15 = sadd.s32 4294967295, %s630_s13   ;;  %s630_s13 = sphi %s661_s13, %s9_s13   ;;  %s626_s12 = sphi %s659_s12, %s808_s12   ;;  %s622_s11 = sphi %s657_s11, %s807_s11   ;;  %s618_s10 = sphi %s655_s10, %s806_s10   ;;  %s614_s9 = sphi %s653_s9, %s805_s9  }
   0x4   : > { %p30_p0 = scmp.ge.s32.totalorder %s28_s14, 2  ;;  %s33_s16 = ssub.s32 0, %s626_s12 }
   0x5   : > { %s510_s17 = smin.u32 %s626_s12, %s33_s16  ;;  %p57_p1 = scmp.ne.s32.totalorder %s618_s10, %s614_s9 }
   0x6   : > { %s810_s14 = smov (%p30_p0, %s28_s14), 0  ;;  %s35_s18 = sshrl.u32 %s510_s17, 3 }
   0x7   : > { %s39_s19 = ssub.s32 0, %s810_s14  ;;  %p58_p2 = scmp.eq.s32.totalorder %s508_s15, 1 }
   0x8   : > { %s511_s20 = smin.u32 %s39_s19, %s810_s14  ;;  %s47_s24 = sadd.s32 1, %s618_s10 }
   0x9   : > { %s41_s21 = sshrl.u32 %s511_s20, 3  ;;  %p688_p3 = por %p58_p2, %p57_p1 }
   0xa   : > { %s44_s23 = ssub.s32 %s35_s18, %s41_s21  ;;  %p513_p5 = scmp.ge.s32.totalorder %s630_s13, 2 }
   0xb   : > { %p45_p4 = scmp.eq.s32.totalorder %s44_s23, 0  ;;  %s82_s26 = sand.u32 (!%p513_p5), 1, %s630_s13  }
   0xc   : > { %80 = sbr.rel (%p513_p5) target bundleno = 19 (0x13), region = 16  ;;  %s515_s27 = sshll.u32 (!%p513_p5), %s626_s12, 2 }
   0xd   : > { %s694_s25 = scalar_select %p45_p4, %s618_s10, %s47_s24  }
   0xe   : > { %s514_s28 = sshll.u32 (!%p513_p5), %s82_s26, 2  ;;  %s88_s3 = scalar_lea.vmem (!%p513_p5), %s799_s0, %s515_s27 }
   0xf   : > { %v104_v0 = vld [vmem:[%s88_s3] sm:$0xf] (!%p513_p5)  ;;  %s84_s4 = scalar_lea.vmem (!%p513_p5), [#allocation1], %s514_s28 }
  0x10   : > { %105 = vst [vmem:[%s84_s4] sm:$0xf] (!%p513_p5), %v104_v0 }
  0x13 PF: > { %p516_p6 = scmp.ge.s32.totalorder %s630_s13, 1  ;;  %p121_p7 = scmp.lt.s32.totalorder %s630_s13, 3 }
  0x15   : > { %p122_p8 = pnand %p516_p6, %p121_p7 }
  0x17   : > { %125 = sbr.rel (%p122_p8) target bundleno = 346 (0x15a), region = 50 }
  0x1e   : > { %s132_s5 = sand.u32 1, %s508_s15   ;;  %s142_s6 = sand.u32 1, %s614_s9   ;;  %v636_v2 = vmov 0.0  }
  0x1f   : > { %s517_s7 = sshll.u32 %s132_s5, 2  ;;  %s705_s8 = sshll.u32 %s142_s6, 1 }
  0x20   : > { %s134_s16 = scalar_lea.vmem [#allocation1], %s517_s7  ;;  %s155_s17 = sand.u32 7, %s622_s11  }
  0x21   : > { %v147_v1 = vld [vmem:[%s134_s16] sm:$0xf]  ;;  %s708_s18 = scalar_lea.vmem [#allocation4], %s155_s17  ;;  %s711_s19 = scalar_lea.vmem [#allocation3], %s517_s7 }
  0x22   : > { %148 = vst [vmem:[#allocation0] sm:$0xf] %v147_v1  ;;  %159 = vst [vmem:[%s708_s18] sm:$0x1] %v636_v2  ;;  %s144_s15 = scalar_lea.vmem [#allocation5], %s705_s8  ;;  %s714_s20 = smov 0  }
  0x29   : > { %v157_v3 = vld [vmem:[#allocation0] sm:$0xff] }
  0x2a   : > { %158 = vst [vmem:[#allocation2] sm:$0xff] %v157_v3 }
  0x2b LB: >> { %v167_v4 = vlaneseq  ;;  %v723_v6 = vstv %s634_s20  ;;  %s194_s9 = scalar_lea.vmem [#allocation2], %s634_s20  ;;  %s230_s21 = smov [#allocation2]  ;;  %v637_v60 = vmov 1.0   ;;  %v265_v61 = vld [vmem:[%s708_s18] ss:$0 sm:$0xff]  ;;  %s634_s20 = sphi %s714_s20, %s165_s20  }
  0x2c   : >> { %s252_s23 = scalar_lea.vmem [#allocation6], %s634_s20  ;;  %s268_s24 = smov [#allocation2] }
  0x2d   : >> { %v720_v5 = vshrl.u32 %v167_v4, 7  ;;  %v246_v49 = vand.u32 127, %v167_v4  ;;  %s269_s26 = smov [#allocation6] }
  0x2f   : >> { %vm171_vm0 = vcmp.gt.s32.totalorder %v720_v5, %v723_v6  ;;  %vm172_vm1 = vcmp.lt.s32.totalorder %v720_v5, 3  ;;  %v233_v5 = vmov %v720_v5  ;;  %vm738_vm12 = vcmp.eq.s32.totalorder %v246_v49, %v723_v6 }
  0x30   : >> { %vm173_vm2 = vmand %vm171_vm0, %vm172_vm1  ;;  %vm237_vm9 = vcmp.gt.s32.totalorder %v233_v5, %v723_v6  ;;  %vm238_vm10 = vcmp.lt.s32.totalorder %v233_v5, 3  ;;  %v272_v5 = vmov %v720_v5  ;;  %vm298_vm15 = vcmp.gt.s32.totalorder %v246_v49, %v723_v6 }
  0x31   : >> { %v166_v7 = vld [vmem:[#allocation2] sm:$0xff]  ;;  %v195_v16 = vld [vmem:[%s194_s9] ss:$0 sm:$0xff]  ;;  %vm239_vm11 = vmand %vm237_vm9, %vm238_vm10  ;;  %vm277_vm13 = vcmp.lt.s32.totalorder %v272_v5, 3  ;;  %v289_v5 = vmov %v720_v5 }
  0x32   : >> { %v174_v8 = vsel %vm173_vm2, %v166_v7, 0.0  ;;  %v196_v17 = vand.u32 2147483647, %v195_v16  ;;  %vm221_vm8 = vcmp.lt.f32.partialorder %v195_v16, 0.0  ;;  %v234_v46 = vld [vmem:[%s230_s21] sm:$0xff]  ;;  %vm306_vm14 = vcmp.ge.s32.totalorder %v289_v5, %v723_v6 }
  0x33   : >> { %v175_v9 = vmul.f32 %v174_v8, %v174_v8  ;;  %v240_v50 = vsel %vm239_vm11, %v234_v46, 0.0  ;;  %v275_v0 = vld [vmem:[%s268_s24] sm:$0xff]  ;;  %s285_s24 = smov %s268_s24  ;;  %vm307_vm0 = vmand %vm738_vm12, %vm306_vm14 }
  0x34   : >> { %v197_v22 = vmax.f32 %v196_v17, 0.0  ;;  %s310_s27 = scalar_lea.vmem %s285_s24, %s634_s20  ;;  %s165_s20 = sadd.s32 1, %s634_s20  }
  0x35   : >> { %v176_v10 = vrot.slane %v175_v9, 4  ;;  %p162_p9 = scmp.ge.s32.totalorder %s165_s20, 3  }
  0x36   : > { %s523_s28 = sshll.u32 (%p162_p9), %s622_s11, 2 }
  0x37   : >> { %v177_v11 = vadd.f32 %v176_v10, %v175_v9  ;;  %s341_s3 = scalar_lea.vmem (%p162_p9), %s800_s1, %s523_s28 }
  0x39   : >> { %v178_v12 = vrot.slane %v177_v11, 2 }
  0x3b   : >> { %v179_v13 = vadd.f32 %v178_v12, %v177_v11 }
  0x3d   : >> { %v180_v14 = vrot.slane %v179_v13, 1 }
  0x3f   : >> { %v181_v15 = vadd.f32 %v180_v14, %v179_v13  ;;  %v296_v14 = vld [vmem:[%s285_s24] sm:$0xff] }
  0x41   : >> { %578 = vrsqrt.f32 %v181_v15  ;;  %vm184_vm3 = vcmp.eq.f32.partialorder %v181_v15, inf  ;;  %v187_v19 = vand.u32 2147483648, %v181_v15  ;;  %vm186_vm4 = vcmp.eq.f32.partialorder %v181_v15, 0.0 }
  0x4b   : >> { %v579_v18 = vpop.eup %578 }
  0x4c   : >> { %v183_v20 = vmul.f32 %v579_v18, %v181_v15 }
  0x4e   : >> { %v185_v21 = vsel %vm184_vm3, %v181_v15, %v183_v20 }
  0x4f   : >> { %v188_v23 = vsel %vm186_vm4, %v187_v19, %v185_v21 }
  0x50   : >> { %v198_v24 = vand.u32 2147483647, %v188_v23 }
  0x52   : >> { %v199_v25 = vmax.f32 %v197_v22, %v198_v24 }
  0x54   : >> { %580 = vrcp.f32 %v199_v25  ;;  %vm211_vm7 = vcmp.eq.f32.partialorder %v199_v25, 0.0 }
  0x5e   : >> { %v581_v26 = vpop.eup %580 }
  0x5f   : >> { %v201_v27 = vmul.f32 %v581_v26, %v196_v17  ;;  %v204_v28 = vmul.f32 0.0, %v581_v26  ;;  %v208_v29 = vmul.f32 %v581_v26, %v198_v24 }
  0x61   : >> { %v202_v30 = vmul.f32 %v201_v27, %v201_v27  ;;  %v205_v31 = vmul.f32 %v204_v28, %v204_v28  ;;  %v209_v32 = vmul.f32 %v208_v29, %v208_v29 }
  0x63   : >> { %v206_v33 = vadd.f32 %v205_v31, %v202_v30 }
  0x65   : >> { %v210_v34 = vadd.f32 %v209_v32, %v206_v33 }
  0x67   : >> { %582 = vrsqrt.f32 %v210_v34  ;;  %vm214_vm5 = vcmp.eq.f32.partialorder %v210_v34, inf  ;;  %v217_v36 = vand.u32 2147483648, %v210_v34  ;;  %vm216_vm6 = vcmp.eq.f32.partialorder %v210_v34, 0.0 }
  0x71   : >> { %v583_v35 = vpop.eup %582 }
  0x72   : >> { %v213_v37 = vmul.f32 %v583_v35, %v210_v34 }
  0x74   : >> { %v215_v38 = vsel %vm214_vm5, %v210_v34, %v213_v37 }
  0x75   : >> { %v218_v39 = vsel %vm216_vm6, %v217_v36, %v215_v38 }
  0x76   : >> { %v219_v40 = vmul.f32 %v218_v39, %v199_v25 }
  0x78   : >> { %v220_v41 = vsel %vm211_vm7, 0.0, %v219_v40 }
  0x79   : >> { %v222_v42 = vxor.u32 2147483648, %v220_v41 }
  0x7b   : >> { %v223_v43 = vsel %vm221_vm8, %v220_v41, %v222_v42 }
  0x7c   : >> { %v731_v44 = vsel %vm186_vm4, %v195_v16, %v223_v43  ;;  %584 = vrcp.f32 %v223_v43  ;;  %v224_v47 = vsub.f32 %v223_v43, %v195_v16 }
  0x7d   : >> { %v229_v45 = vsub.f32 %v195_v16, %v731_v44 }
  0x7f   : >> { %586 = vrcp.f32 %v229_v45 }
  0x86   : >> { %v585_v48 = vpop.eup %584 }
  0x87   : >> { %v226_v51 = vmul.f32 %v585_v48, %v224_v47 }
  0x89   : >> { %v587_v52 = vpop.eup %586  ;;  %v228_v56 = vsel %vm186_vm4, 0.0, %v226_v51 }
  0x8a   : >> { %v242_v53 = vmul.f32 %v587_v52, %v240_v50  ;;  %v258_v58 = vsel %vm738_vm12, %v228_v56, 0.0 }
  0x8c   : >> { %v243_v55 = vsel %vm186_vm4, 0.0, %v242_v53 }
  0x8d   : >> { %v248_v57 = vsel %vm738_vm12, %v243_v55, 0.0 }
  0x8e   : >> { %249 = vadd.xlane.f32.xlu0 %v248_v57 }
  0x92   : >> { %259 = vadd.xlane.f32.xlu0 %v258_v58 }
 0x11b   : >> { %v250_v59 = vpop.xlane.xlu0 %249 }
 0x11c   : >> { %251 = vst [vmem:[#allocation6] sm:$0xff] %v250_v59 }
 0x11d   : >> { %253 = vst [vmem:[%s252_s23] sm:$0x1] %v637_v60 }
 0x11f   : >> { %v260_v62 = vpop.xlane.xlu0 %259 }
 0x120   : >> { %v266_v63 = vsel %vm738_vm12, %v260_v62, %v265_v61 }
 0x121   : >> { %267 = vst [vmem:[%s708_s18] sm:$0x1] %v266_v63 }
 0x124   : >> { %v274_v1 = vld [vmem:[%s269_s26] sm:$0xff]  ;;  %s286_s26 = smov %s269_s26 }
 0x125   : >> { %v276_v2 = vmul.f32 %v275_v0, %v274_v1  ;;  %v294_v13 = vld [vmem:[%s286_s26] sm:$0xff] }
 0x127   : >> { %v278_v3 = vsel %vm277_vm13, %v276_v2, 0.0 }
 0x128   : >> { %v279_v4 = vrot.slane %v278_v3, 4  ;;  %v327_v6 = vld [vmem:[#allocation4] sm:$0x3] (%p162_p9) }
 0x129   : > { %329 = vst [vmem:[%s144_s15] sm:$0x3] (%p162_p9), %v327_v6 }
 0x12a   : >> { %v280_v7 = vadd.f32 %v279_v4, %v278_v3 }
 0x12c   : >> { %v281_v8 = vrot.slane %v280_v7, 2 }
 0x12e   : >> { %v282_v9 = vadd.f32 %v281_v8, %v280_v7 }
 0x130   : >> { %v283_v10 = vrot.slane %v282_v9, 1 }
 0x132   : >> { %v284_v11 = vadd.f32 %v283_v10, %v282_v9 }
 0x134   : >> { %v290_v12 = vmul.f32 %v284_v11, %v260_v62 }
 0x136   : >> { %v295_v15 = vmul.f32 %v294_v13, %v290_v12 }
 0x138   : >> { %v299_v16 = vsub.f32 %v296_v14, %v295_v15 }
 0x13a   : >> { %v300_v17 = vsel %vm298_vm15, %v299_v16, %v296_v14 }
 0x13b   : >> { %v308_v18 = vsel %vm307_vm0, %v294_v13, %v300_v17 }
 0x13c   : >> { %309 = vst [vmem:[%s285_s24] sm:$0xff] %v308_v18 }
 0x13f   : > { %164 = sbr.rel (!%p162_p9) target bundleno = 43 (0x2b), region = 167 }
 0x143   : >> { %v311_v19 = vld [vmem:[%s310_s27] ss:$0 sm:$0xff] }
 0x144   : >> { %v316_v20 = vsel %vm738_vm12, %v731_v44, %v311_v19 }
 0x145   : >> { %317 = vst [vmem:[%s310_s27] sm:$0x1] %v316_v20 }
 0x146   : > { %p376_p10 = scmp.lt.s32.totalorder (%p688_p3), %s622_s11, 0  ;;  %s377_s4 = ssub.s32 (%p688_p3), 0, %s622_s11  ;;  %v399_v22 = vld [vmem:[%s144_s15] sm:$0x3] (%p688_p3) }
 0x147   : > { %s524_s5 = smin.u32 (%p688_p3), %s622_s11, %s377_s4 }
 0x148   : > { %s379_s6 = sshrl.u32 (%p688_p3), %s524_s5, 3 }
 0x149   : > { %s380_s7 = ssub.s32 (%p688_p3), 0, %s379_s6 }
 0x14c   : > { %v321_v5 = vld [vmem:[#allocation2] sm:$0xf] }
 0x14d   : > { %323 = vst [vmem:[%s711_s19] sm:$0xf] %v321_v5 }
 0x14f   : > { %375 = sbr.rel (!%p688_p3) target bundleno = 346 (0x15a), region = 91 }
 0x154   : > { %v357_v21 = vld [vmem:[%s711_s19] sm:$0xf] }
 0x155   : > { %358 = vst [vmem:[%s341_s3] sm:$0xf] %v357_v21 }
 0x156   : > { %s812_s7 = smov (!%p376_p10, %s380_s7), %s379_s6 }
 0x157   : > { %s525_s16 = sshll.u32 %s812_s7, 1 }
 0x158   : > { %s383_s19 = scalar_lea.vmem %s801_s2, %s525_s16 }
 0x159   : > { %400 = vst [vmem:[%s383_s19] sm:$0x3] %v399_v22 }
 0x15a PF: > { %s9_s13 = sadd.s32 1, %s630_s13   ;;  %s805_s9 = smov %s618_s10 }
 0x15b   : > { %p6_p11 = scmp.ge.s32.totalorder %s9_s13, 4   ;;  %s806_s10 = smov %s694_s25 }
 0x15c   : > { %s807_s11 = smov %s626_s12  ;;  %s808_s12 = smov %s810_s14 }
 0x15d   :  { %8 = sbr.rel (!%p6_p11) target bundleno = 3 (0x3), region = 178 }

// kernel: h2otr_forward.6
= control target key start
LH: loop header
LB: loop body
LE: loop exit
PB: predicated region body
PF: predicated region fallthrough
CT: control target
= control target key end

     0   :  { %s1117_s30 = smov 0   ;;  %s1187_s0 = inlined_call_operand.vmem [shape: f32[2,2,63], index: 0, kind: input, shape index: {}]   ;;  %s1188_s1 = inlined_call_operand.vmem [shape: f32[2,1,63], index: 1, kind: input, shape index: {}]   ;;  %s1189_s2 = inlined_call_operand.vmem [shape: f32[2,63,48], index: 2, kind: input, shape index: {}]   ;;  %s1190_s3 = inlined_call_operand.vmem [shape: f32[2,1,48], index: 3, kind: input, shape index: {}]   ;;  %s1191_s4 = inlined_call_operand.vmem [shape: f32[2,48,192], index: 4, kind: input, shape index: {}]   ;;  %s1192_s5 = inlined_call_operand.vmem [shape: f32[2,1,192], index: 5, kind: input, shape index: {}]   ;;  %s1193_s6 = inlined_call_operand.vmem [shape: f32[2,48,63], index: 6, kind: input, shape index: {}]   ;;  %s1194_s7 = inlined_call_operand.vmem [shape: f32[2,1,63], index: 7, kind: input, shape index: {}]   ;;  %s1195_s8 = inlined_call_operand.vmem [shape: f32[2,2,192], index: 8, kind: output, shape index: {0}]   ;;  %s1196_s9 = inlined_call_operand.vmem [shape: f32[2,2,63], index: 9, kind: output, shape index: {1}]  }
   0x1 LB: > { %s928_s10 = sadd.s32 4294967295, %s1060_s30   ;;  %p932_p0 = scmp.ge.s32.totalorder %s1060_s30, 1  ;;  %s1060_s30 = sphi %s1117_s30, %s20_s30  }
   0x2   : > { %p352_p1 = scmp.lt.s32.totalorder %s1060_s30, 3 }
   0x4   : > { %p353_p2 = pnand %p932_p0, %p352_p1 }
   0x5   : > { %p419_p3 = scmp.lt.s32.totalorder (!%p353_p2), %s928_s10, 1  ;;  %v1062_v0 = vmov (!%p353_p2), 0.0|0.0   ;;  %vm1063_vm0 = vmmov (!%p353_p2), 0   ;;  %v1064_v1 = vmov (!%p353_p2), 0.0   ;;  %vm489_vm1 = vcmask (!%p353_p2), 1046528  }
   0x6   : > { %356 = sbr.rel (%p353_p2) target bundleno = 490 (0x1ea), region = 52  ;;  %1003 = vmatprep.subr.bf16.mxu0 (!%p353_p2), %v1062_v0  ;;  %985 = vmatprep.mubr.msk.f32.mxu0 (!%p353_p2), %vm1063_vm0, %v1064_v1  ;;  %vm1065_vm2 = vmmov (!%p353_p2), 1   ;;  %vm485_vm4 = vcmask (!%p353_p2), 515072   ;;  %vm589_vm5 = vcmask (!%p353_p2), 392192   ;;  %v579_v51 = vlaneseq (!%p353_p2) }
   0x7   : > { %657 = vmatprep.mubr.f32.mxu1 (!%p353_p2), %v1064_v1  ;;  %vm1014_vm3 = vmpackc.low (!%p353_p2), %vm489_vm1, %vm1065_vm2  ;;  %v1066_v56 = vmov (!%p353_p2), 1983009808   ;;  %vm677_vm6 = vcmask (!%p353_p2), 1041408   ;;  %vm678_vm7 = vcmask (!%p353_p2), 519170   ;;  %vm765_vm9 = vcmask (!%p353_p2), 508928  }
   0x8   : > { %v580_v52 = vshrl.u32 (!%p353_p2), %v579_v51, 7  ;;  %v670_v57 = vunpack.c.l.s4 (!%p353_p2), %v1066_v56  ;;  %vm679_vm8 = vmor (!%p353_p2), %vm678_vm7, %vm677_vm6 }
   0xa   : > { %v581_v53 = vsub.s32 (!%p353_p2), 0, %v580_v52  ;;  %v585_v55 = vsub.s32 (!%p353_p2), 1, %v580_v52  ;;  %v671_v61 = vunpack.c.0.s8 (!%p353_p2), %v670_v57 }
   0xd   : > { %s1198_s10 = smov (!%p419_p3, %s928_s10), 1 }
   0xe   : > { %s951_s11 = sshll.u32 %s1198_s10, 6  ;;  %s1136_s15 = sshll.u32 %s1198_s10, 1 }
   0xf   : > { %s430_s14 = scalar_lea.vmem %s1189_s2, %s951_s11  ;;  %s422_s18 = scalar_lea.vmem %s1187_s0, %s1136_s15 }
  0x10   : > { %v470_v2 = vld [vmem:[%s430_s14] sm:$0xff]  ;;  %v471_v3 = vld [vmem:[%s430_s14 + $0x8] sm:$0xff]  ;;  %v472_v4 = vld [vmem:[%s430_s14 + $0x10] sm:$0xff]  ;;  %s425_s21 = scalar_lea.vmem %s1188_s1, %s1198_s10  ;;  %s1037_s22 = smul.u32 96, %s1198_s10 }
  0x11   : > { %v1004_v5 = vpack.c.bf16 %v471_v3, %v470_v2  ;;  %v473_v6 = vld [vmem:[%s430_s14 + $0x18] sm:$0xff]  ;;  %v474_v8 = vld [vmem:[%s430_s14 + $0x20] sm:$0xff]  ;;  %v475_v9 = vld [vmem:[%s430_s14 + $0x28] sm:$0xff]  ;;  %s433_s28 = scalar_lea.vmem %s1190_s3, %s1198_s10  ;;  %s1038_s29 = smul.u32 48, %s1198_s10  ;;  %v674_v3 = vsub.s32 %v671_v61, %v580_v52 }
  0x12   : > { %v1007_v7 = vpack.c.bf16 %v473_v6, %v472_v4  ;;  %v1010_v10 = vpack.c.bf16 %v475_v9, %v474_v8  ;;  %v460_v11 = vld [vmem:[%s422_s18] sm:$0x3]  ;;  %v476_v13 = vld [vmem:[%s430_s14 + $0x30] sm:$0xff]  ;;  %v477_v14 = vld [vmem:[%s430_s14 + $0x38] sm:$0x7f]  ;;  %s438_s25 = scalar_lea.vmem %s1191_s4, %s1037_s22  ;;  %s442_s17 = scalar_lea.vmem %s1192_s5, %s1136_s15 }
  0x13   : > { %1005 = vmatpush3.bf16.msra.mxu0 %v1004_v5  ;;  %v942_v12 = vld [vmem:[%s425_s21] ss:$0 sm:$0xff]  ;;  %v1013_v16 = vpack.c.bf16 %v477_v14, %v476_v13  ;;  %v566_v18 = vld [vmem:[%s438_s25 + $0x8] sm:$0xff]  ;;  %v568_v19 = vld [vmem:[%s438_s25 + $0x18] sm:$0xff]  ;;  %s447_s13 = scalar_lea.vmem %s1193_s6, %s1038_s29  ;;  %s952_s18 = sshll.u32 %s1198_s10, 2 }
  0x14   : > { %1006 = vmatprep.subr.bf16.mxu0 %v1062_v0  ;;  %v468_v15 = vsub.f32 %v460_v11, %v942_v12  ;;  %v1016_v20 = vpack.c.bf16 %v568_v19, %v566_v18  ;;  %v565_v21 = vld [vmem:[%s438_s25] sm:$0xff]  ;;  %v567_v22 = vld [vmem:[%s438_s25 + $0x10] sm:$0xff]  ;;  %v570_v24 = vld [vmem:[%s438_s25 + $0x28] sm:$0xff]  ;;  %s455_s21 = scalar_lea.vmem %s1195_s8, %s952_s18  ;;  %s450_s24 = scalar_lea.vmem %s1194_s7, %s1198_s10 }
  0x15   : > { %v1018_v23 = vpack.c.bf16 %v567_v22, %v565_v21  ;;  %v572_v25 = vld [vmem:[%s438_s25 + $0x38] sm:$0xff]  ;;  %v569_v27 = vld [vmem:[%s438_s25 + $0x20] sm:$0xff]  ;;  %v571_v28 = vld [vmem:[%s438_s25 + $0x30] sm:$0xff]  ;;  %s459_s27 = scalar_lea.vmem %s1196_s9, %s1136_s15 }
  0x16   : > { %v469_v17 = vmul.f32 0.01, %v468_v15  ;;  %1017 = vmatprep.subr.bf16.mxu1 %v1016_v20  ;;  %v1020_v26 = vpack.c.bf16 %v572_v25, %v570_v24  ;;  %v1022_v29 = vpack.c.bf16 %v571_v28, %v569_v27  ;;  %v574_v30 = vld [vmem:[%s438_s25 + $0x48] sm:$0xff]  ;;  %v576_v31 = vld [vmem:[%s438_s25 + $0x58] sm:$0xff]  ;;  %v573_v33 = vld [vmem:[%s438_s25 + $0x40] sm:$0xff] }
  0x17   : > { %1008 = vmatpush3.bf16.msra.mxu0 %v1007_v7  ;;  %1019 = vmatpush1.bf16.msra.mxu1 %v1018_v23  ;;  %v1024_v32 = vpack.c.bf16 %v576_v31, %v574_v30  ;;  %v575_v34 = vld [vmem:[%s438_s25 + $0x50] sm:$0xff]  ;;  %v943_v36 = vld [vmem:[%s433_s28] ss:$0 sm:$0xff]  ;;  %v682_v41 = vld [vmem:[%s447_s13 + $0x8] sm:$0xff] }
  0x18   : > { %1009 = vmatprep.subr.bf16.mxu0 %v1062_v0  ;;  %1021 = vmatprep.subr.bf16.mxu1 %v1020_v26  ;;  %v1026_v35 = vpack.c.bf16 %v575_v34, %v573_v33  ;;  %v681_v40 = vld [vmem:[%s447_s13] sm:$0xff]  ;;  %v683_v45 = vld [vmem:[%s447_s13 + $0x10] sm:$0xff]  ;;  %v684_v46 = vld [vmem:[%s447_s13 + $0x18] sm:$0xff] }
  0x19   : > { %v1029_v43 = vpack.c.bf16 %v682_v41, %v681_v40  ;;  %v1032_v47 = vpack.c.bf16 %v684_v46, %v683_v45  ;;  %v685_v48 = vld [vmem:[%s447_s13 + $0x20] sm:$0xff]  ;;  %v686_v49 = vld [vmem:[%s447_s13 + $0x28] sm:$0xff] }
  0x1a   : > { %v1035_v50 = vpack.c.bf16 %v686_v49, %v685_v48  ;;  %v577_v54 = vld [vmem:[%s442_s17] sm:$0x3] }
  0x1b   : > { %1011 = vmatpush3.bf16.msra.mxu0 %v1010_v10  ;;  %1023 = vmatpush1.bf16.msra.mxu1 %v1022_v29  ;;  %v582_v58 = vrot.slane %v577_v54, %v581_v53  ;;  %v586_v59 = vrot.slane %v577_v54, %v585_v55  ;;  %v947_v6 = vld [vmem:[%s450_s24] ss:$0 sm:$0xff] }
  0x1c   : > { %1012 = vmatprep.subr.bf16.mxu0 %v1062_v0  ;;  %1025 = vmatprep.subr.bf16.mxu1 %v1024_v32 }
  0x1f   : > { %1015 = vmatpush3.bf16.msk.msra.mxu0 %vm1014_vm3, %v1013_v16  ;;  %1027 = vmatpush1.bf16.msra.mxu1 %v1026_v35 }
  0x20   : > { %1028 = vmatprep.subr.bf16.mxu1 %v1062_v0 }
  0x22   : > { %986 = vmatmul.mubr.msk.f32.vlgmr.msra.gmra.mrb[0].mxu0 %vm485_vm4, %v469_v17 }
  0xf5   : > { %v559_v37 = vpop.f32.mrb[0].mxu0 }
  0xf6   : > { %v560_v38 = vadd.f32 %v943_v36, %v559_v37  ;;  %v987_v39 = vpop.f32.mrb[1].mxu0 }
  0xf8   : > { %1052 = vtanh.f32 %v560_v38 }
 0x102   : > { %v1053_v42 = vpop.eup %1052 }
 0x103   : > { %v564_v44 = vmul.f32 3.1415927, %v1053_v42 }
 0x105   : > { %946 = vmatmul.mubr.msk.f32.vlgmr.msra.gmra.mrb[0].mxu1 %vm589_vm5, %v564_v44 }
 0x106   : > { %1030 = vmatpush3.bf16.msra.mxu1 %v1029_v43  ;;  %1000 = vmatprep.mubr.msk.f32.mxu1 %vm1063_vm0, %v1064_v1 }
 0x107   : > { %1031 = vmatprep.subr.bf16.mxu1 %v1062_v0 }
 0x10a   : > { %1033 = vmatpush3.bf16.msra.mxu1 %v1032_v47 }
 0x10b   : > { %1034 = vmatprep.subr.bf16.mxu1 %v1062_v0 }
 0x10e   : > { %1036 = vmatpush3.bf16.msra.mxu1 %v1035_v50 }
 0x111   : > { %1001 = vmatmul.mubr.msk.f32.vlgmr.msra.gmra.mrb[2].mxu1 %vm589_vm5, %v564_v44 }
 0x1d8   : > { %v659_v60 = vpop.f32.mrb[0].mxu1 }
 0x1d9   : > { %v660_v62 = vadd.f32 %v659_v60, %v582_v58  ;;  %v661_v63 = vpop.f32.mrb[1].mxu1 }
 0x1da   : > { %v662_v0 = vadd.f32 %v661_v63, %v586_v59 }
 0x1db   : > { %v664_v1 = vmul.f32 100.0, %v660_v62 }
 0x1dc   : > { %v665_v2 = vmul.f32 100.0, %v662_v0 }
 0x1de   : > { %v668_v4 = vcombine.low %v664_v1, %v665_v2 }
 0x1e0   : > { %v675_v5 = vrot.slane %v668_v4, %v674_v3 }
 0x1e2   : > { %680 = vst.msk [vmem:[%s455_s21] sm:$0xf] %vm679_vm8, %v675_v5 }
 0x1e4   : > { %v760_v7 = vpop.f32.mrb[2].mxu1 }
 0x1e5   : > { %v761_v8 = vadd.f32 %v947_v6, %v760_v7  ;;  %v1002_v9 = vpop.f32.mrb[3].mxu1 }
 0x1e7   : > { %v764_v10 = vmul.f32 100.0, %v761_v8 }
 0x1e9   : > { %766 = vst.msk [vmem:[%s459_s27] sm:$0x3] %vm765_vm9, %v764_v10 }
 0x1ea PF: > { %s20_s30 = sadd.s32 1, %s1060_s30  }
 0x1eb   : > { %p17_p4 = scmp.ge.s32.totalorder %s20_s30, 4  }
 0x1ed   :  { %19 = sbr.rel (!%p17_p4) target bundleno = 1 (0x1), region = 115 }

// kernel: h2otr_forward.8
= control target key start
LH: loop header
LB: loop body
LE: loop exit
PB: predicated region body
PF: predicated region fallthrough
CT: control target
= control target key end

     0   :  { %s1511_s21 = smov 0   ;;  %s1944_s0 = inlined_call_operand.vmem [shape: f32[2,3,3], index: 0, kind: input, shape index: {}]   ;;  %s1945_s1 = inlined_call_operand.vmem [shape: f32[2,1,3], index: 1, kind: input, shape index: {}]   ;;  %s1946_s2 = inlined_call_operand.vmem [shape: f32[3,64], index: 2, kind: input, shape index: {}]   ;;  %s1947_s3 = inlined_call_operand.vmem [shape: f32[2,2,64,3], index: 3, kind: input, shape index: {}]   ;;  %s1948_s4 = inlined_call_operand.vmem [shape: f32[2,3,64], index: 4, kind: output, shape index: {0}]   ;;  %s1949_s5 = inlined_call_operand.vmem [shape: f32[2,2,64,1], index: 5, kind: output, shape index: {1}]   ;;  %s1950_s6 = inlined_call_operand.vmem [shape: f32[2,1,64], index: 6, kind: output, shape index: {2}]  }
   0x1 LB: > { %s1291_s22 = sadd.s32 4294967295, %s1471_s21   ;;  %p1295_p0 = scmp.ge.s32.totalorder %s1471_s21, 1  ;;  %s1471_s21 = sphi %s1511_s21, %s17_s21  }
   0x2   : > { %p234_p1 = scmp.lt.s32.totalorder %s1471_s21, 3 }
   0x4   : > { %p235_p2 = pnand %p1295_p0, %p234_p1 }
   0x5   : > { %p278_p3 = scmp.lt.s32.totalorder (!%p235_p2), %s1291_s22, 1  ;;  %v1473_v0 = vmov (!%p235_p2), 0   ;;  %v1474_v3 = vmov (!%p235_p2), 2   ;;  %v1475_v6 = vmov (!%p235_p2), 1   ;;  %v304_v37 = vld [vmem:[%s1946_s2] sm:$0x7] (!%p235_p2)  ;;  %v350_v43 = vlaneseq (!%p235_p2) }
   0x6   : > { %238 = sbr.rel (%p235_p2) target bundleno = 494 (0x1ee), region = 36  ;;  %1351 = vset.pattern.permute.xlu1 (!%p235_p2), %v1473_v0  ;;  %1352 = vset.pattern.permute.xlu0 (!%p235_p2), %v1473_v0  ;;  %v305_v40 = vmul.f32 (!%p235_p2), 1000.0, %v304_v37  ;;  %vm387_vm0 = vcmask (!%p235_p2), 1040384   ;;  %vm389_vm1 = vcmask (!%p235_p2), 1041408   ;;  %vm391_vm2 = vcmask (!%p235_p2), 518144  }
   0x7   : > { %v351_v50 = vshrl.u32 (!%p235_p2), %v350_v43, 7  ;;  %vm573_vm3 = vcmask (!%p235_p2), 523264   ;;  %vm1157_vm6 = vcmask (!%p235_p2), 516096   ;;  %vm1121_vm13 = vcmask (!%p235_p2), 7168  }
   0x8   : > { %v355_v44 = vrot.slane (!%p235_p2), %v305_v40, 7  ;;  %v333_v45 = vrot.slane (!%p235_p2), %v305_v40, 1  ;;  %v341_v53 = vrot.slane (!%p235_p2), %v305_v40, 2 }
   0x9   : > { %v352_v58 = vsub.s32 (!%p235_p2), 0, %v351_v50 }
   0xd   : > { %s1952_s22 = smov (!%p278_p3, %s1291_s22), 1 }
   0xe   : > { %s284_s25 = scalar_lea.vmem %s1945_s1, %s1952_s22  ;;  %s1338_s26 = sshll.u32 %s1952_s22, 7 }
   0xf   : > { %v303_v1 = vld [vmem:[%s284_s25] sm:$0x1]  ;;  %s1296_s27 = sshll.u32 %s1952_s22, 2  ;;  %s1532_s30 = scalar_lea.vmem %s1947_s3, %s1338_s26 }
  0x10   : > { %347 = vperm.xlu1 %1351, %v303_v1   ;;  %s281_s9 = scalar_lea.vmem %s1944_s0, %s1296_s27  ;;  %v1541_v4 = vld [vmem:[%s1532_s30 + $0x10] sm:$0xff]  ;;  %v1545_v5 = vld [vmem:[%s1532_s30 + $0x28] sm:$0xff]  ;;  %v1549_v7 = vld [vmem:[%s1532_s30 + $0x38] sm:$0xff]  ;;  %s293_s14 = scalar_lea.vmem %s1948_s4, %s1296_s27 }
  0x11   : > { %v302_v2 = vld [vmem:[%s281_s9] sm:$0x7]  ;;  %v315_v9 = vld [vmem:[%s1532_s30 + $0x48] sm:$0xff]  ;;  %v309_v12 = vld [vmem:[%s1532_s30 + $0x18] sm:$0xff]  ;;  %s301_s17 = scalar_lea.vmem %s1950_s6, %s1952_s22  ;;  %s1811_s20 = scalar_lea.vmem %s1949_s5, %s1338_s26 }
  0x12   : > { %324 = vperm.xlu0 %1352, %v302_v2   ;;  %v306_v8 = vld [vmem:[%s1532_s30] sm:$0xff]  ;;  %v307_v10 = vld [vmem:[%s1532_s30 + $0x8] sm:$0xff]  ;;  %v320_v13 = vld [vmem:[%s1532_s30 + $0x70] sm:$0xff] }
  0x13   : > { %v318_v11 = vld [vmem:[%s1532_s30 + $0x60] sm:$0xff]  ;;  %v312_v15 = vld [vmem:[%s1532_s30 + $0x30] sm:$0xff]  ;;  %v317_v17 = vld [vmem:[%s1532_s30 + $0x58] sm:$0xff] }
  0x14   : > { %1353 = vset.pattern.permute.xlu1 %v1474_v3  ;;  %v310_v14 = vld [vmem:[%s1532_s30 + $0x20] sm:$0xff]  ;;  %v319_v18 = vld [vmem:[%s1532_s30 + $0x68] sm:$0xff]  ;;  %v321_v19 = vld [vmem:[%s1532_s30 + $0x78] sm:$0xff] }
  0x15   : > { %338 = vperm.xlu1 %1353, %v302_v2   ;;  %v314_v16 = vld [vmem:[%s1532_s30 + $0x40] sm:$0xff]  ;;  %v316_v20 = vld [vmem:[%s1532_s30 + $0x50] sm:$0xff] }
  0x16   : > { %405 = vperm.xlu0 %1352, %v1541_v4  }
  0x19   : > { %1354 = vset.pattern.permute.xlu1 %v1475_v6 }
  0x1a   : > { %363 = vperm.xlu1 %1354, %v303_v1   ;;  %420 = vperm.xlu0 %1352, %v1545_v5  }
  0x1e   : > { %1355 = vset.pattern.permute.xlu1 %v1473_v0  ;;  %430 = vperm.xlu0 %1352, %v1549_v7  }
  0x1f   : > { %395 = vperm.xlu1 %1355, %v306_v8  }
  0x22   : > { %770 = vperm.xlu0 %1352, %v315_v9  }
  0x23   : > { %400 = vperm.xlu1 %1355, %v307_v10  }
  0x26   : > { %785 = vperm.xlu0 %1352, %v318_v11  }
  0x27   : > { %410 = vperm.xlu1 %1355, %v309_v12  }
  0x2a   : > { %795 = vperm.xlu0 %1352, %v320_v13  }
  0x2b   : > { %415 = vperm.xlu1 %1355, %v310_v14  }
  0x2e   : > { %1359 = vset.pattern.permute.xlu0 %v1475_v6 }
  0x2f   : > { %425 = vperm.xlu1 %1355, %v312_v15   ;;  %329 = vperm.xlu0 %1359, %v302_v2  }
  0x33   : > { %1356 = vset.pattern.permute.xlu1 %v1475_v6  ;;  %458 = vperm.xlu0 %1359, %v307_v10  }
  0x34   : > { %454 = vperm.xlu1 %1356, %v306_v8  }
  0x37   : > { %470 = vperm.xlu0 %1359, %v310_v14  }
  0x38   : > { %462 = vperm.xlu1 %1356, %v1541_v4  }
  0x3b   : > { %478 = vperm.xlu0 %1359, %v312_v15  }
  0x3c   : > { %466 = vperm.xlu1 %1356, %v309_v12  }
  0x3f   : > { %820 = vperm.xlu0 %1359, %v314_v16  }
  0x40   : > { %474 = vperm.xlu1 %1356, %v1545_v5  }
  0x43   : > { %832 = vperm.xlu0 %1359, %v317_v17  }
  0x44   : > { %482 = vperm.xlu1 %1356, %v1549_v7  }
  0x47   : > { %840 = vperm.xlu0 %1359, %v319_v18  }
  0x48   : > { %1357 = vset.pattern.permute.xlu1 %v1474_v3 }
  0x49   : > { %518 = vperm.xlu1 %1357, %v307_v10  }
  0x4b   : > { %848 = vperm.xlu0 %1359, %v321_v19  }
  0x4d   : > { %1358 = vset.pattern.permute.xlu1 %v1473_v0 }
  0x4e   : > { %765 = vperm.xlu1 %1358, %v314_v16  }
  0x4f   : > { %1361 = vset.pattern.permute.xlu0 %v1474_v3 }
  0x50   : > { %379 = vperm.xlu0 %1361, %v303_v1  }
  0x52   : > { %775 = vperm.xlu1 %1358, %v316_v20  }
  0x54   : > { %514 = vperm.xlu0 %1361, %v306_v8  }
  0x56   : > { %780 = vperm.xlu1 %1358, %v317_v17  }
  0x58   : > { %526 = vperm.xlu0 %1361, %v309_v12  }
  0x5a   : > { %790 = vperm.xlu1 %1358, %v319_v18  }
  0x5c   : > { %538 = vperm.xlu0 %1361, %v312_v15  }
  0x5e   : > { %800 = vperm.xlu1 %1358, %v321_v19  }
  0x60   : > { %876 = vperm.xlu0 %1361, %v314_v16  }
  0x62   : > { %1360 = vset.pattern.permute.xlu1 %v1475_v6 }
  0x63   : > { %824 = vperm.xlu1 %1360, %v315_v9  }
  0x64   : > { %884 = vperm.xlu0 %1361, %v316_v20  }
  0x67   : > { %828 = vperm.xlu1 %1360, %v316_v20  }
  0x68   : > { %892 = vperm.xlu0 %1361, %v318_v11  }
  0x6b   : > { %836 = vperm.xlu1 %1360, %v318_v11  }
  0x6c   : > { %900 = vperm.xlu0 %1361, %v320_v13  }
  0x6f   : > { %844 = vperm.xlu1 %1360, %v320_v13  }
  0x73   : > { %1362 = vset.pattern.permute.xlu1 %v1474_v3  ;;  %v371_v3 = vrot.slane %v305_v40, 6 }
  0x74   : > { %522 = vperm.xlu1 %1362, %v1541_v4  }
  0x78   : > { %530 = vperm.xlu1 %1362, %v310_v14  }
  0x7c   : > { %534 = vperm.xlu1 %1362, %v1545_v5   ;;  %v487_v5 = vsub.s32 1, %v351_v50 }
  0x80   : > { %542 = vperm.xlu1 %1362, %v1549_v7  }
  0x84   : > { %880 = vperm.xlu1 %1362, %v315_v9  }
  0x88   : > { %888 = vperm.xlu1 %1362, %v317_v17   ;;  %v547_v17 = vsub.s32 2, %v351_v50 }
  0x8c   : > { %896 = vperm.xlu1 %1362, %v319_v18  }
  0x8f   : > { %v348_v21 = vpop.permute.xlu1 %347 }
  0x90   : > { %904 = vperm.xlu1 %1362, %v321_v19   ;;  %v353_v1 = vrot.slane %v348_v21, %v352_v58 }
  0x91   : > { %v325_v22 = vpop.permute.xlu0 %324 }
  0x92   : > { %v327_v51 = vmul.f32 %v325_v22, %v305_v40  ;;  %v357_v52 = vmul.f32 %v355_v44, %v325_v22  ;;  %v373_v10 = vmul.f32 %v371_v3, %v325_v22 }
  0x94   : > { %v339_v23 = vpop.permute.xlu1 %338 }
  0x95   : > { %v1574_v24 = vpop.permute.xlu0 %405  ;;  %v343_v59 = vmul.f32 %v341_v53, %v339_v23  ;;  %v360_v60 = vmul.f32 %v339_v23, %v333_v45  ;;  %v376_v16 = vmul.f32 %v339_v23, %v305_v40 }
  0x99   : > { %v364_v25 = vpop.permute.xlu1 %363  ;;  %v1576_v26 = vpop.permute.xlu0 %420 }
  0x9a   : > { %v369_v2 = vrot.slane %v364_v25, %v352_v58 }
  0x9d   : > { %v1578_v27 = vpop.permute.xlu0 %430 }
  0x9e   : > { %v396_v28 = vpop.permute.xlu1 %395 }
  0xa1   : > { %v1580_v29 = vpop.permute.xlu0 %770 }
  0xa2   : > { %v401_v30 = vpop.permute.xlu1 %400 }
  0xa5   : > { %v1582_v31 = vpop.permute.xlu0 %785 }
  0xa6   : > { %v1584_v32 = vpop.permute.xlu1 %410 }
  0xa9   : > { %v1586_v33 = vpop.permute.xlu0 %795 }
  0xaa   : > { %v1588_v34 = vpop.permute.xlu1 %415 }
  0xae   : > { %v1590_v35 = vpop.permute.xlu1 %425  ;;  %v330_v36 = vpop.permute.xlu0 %329 }
  0xaf   : > { %v335_v48 = vmul.f32 %v333_v45, %v330_v36  ;;  %v358_v49 = vmul.f32 %v330_v36, %v305_v40  ;;  %v374_v9 = vmul.f32 %v355_v44, %v330_v36 }
  0xb1   : > { %v336_v56 = vadd.f32 %v335_v48, %v327_v51  ;;  %v359_v57 = vadd.f32 %v358_v49, %v357_v52  ;;  %v375_v14 = vadd.f32 %v374_v9, %v373_v10 }
  0xb2   : > { %v459_v38 = vpop.permute.xlu0 %458 }
  0xb3   : > { %v455_v39 = vpop.permute.xlu1 %454  ;;  %v344_v63 = vadd.f32 %v343_v59, %v336_v56  ;;  %v361_v0 = vadd.f32 %v360_v60, %v359_v57  ;;  %v377_v25 = vadd.f32 %v376_v16, %v375_v14 }
  0xb5   : > { %v354_v6 = vadd.f32 %v353_v1, %v344_v63  ;;  %v370_v7 = vadd.f32 %v369_v2, %v361_v0 }
  0xb6   : > { %v1595_v41 = vpop.permute.xlu0 %470 }
  0xb7   : > { %v1597_v42 = vpop.permute.xlu1 %462  ;;  %v1615_v12 = vrot.slane %v354_v6, %v352_v58  ;;  %v1617_v13 = vrot.slane %v370_v7, %v487_v5  ;;  %v388_v40 = vsel %vm387_vm0, %v354_v6, %v370_v7 }
  0xb9   : > { %v438_v18 = vsub.f32 %v401_v30, %v1615_v12  ;;  %v490_v19 = vsub.f32 %v459_v38, %v1617_v13  ;;  %v437_v21 = vsub.f32 %v396_v28, %v1615_v12  ;;  %v489_v22 = vsub.f32 %v455_v39, %v1617_v13 }
  0xba   : > { %v1599_v46 = vpop.permute.xlu0 %478  ;;  %v441_v6 = vsub.f32 %v1588_v34, %v1615_v12  ;;  %v493_v7 = vsub.f32 %v1595_v41, %v1617_v13  ;;  %v439_v9 = vsub.f32 %v1574_v24, %v1615_v12  ;;  %v491_v14 = vsub.f32 %v1597_v42, %v1617_v13 }
  0xbb   : > { %v1601_v47 = vpop.permute.xlu1 %466  ;;  %v446_v30 = vmul.f32 %v438_v18, %v438_v18  ;;  %v498_v38 = vmul.f32 %v490_v19, %v490_v19  ;;  %v445_v43 = vmul.f32 %v437_v21, %v437_v21  ;;  %v497_v44 = vmul.f32 %v489_v22, %v489_v22 }
  0xbc   : > { %v495_v10 = vsub.f32 %v1599_v46, %v1617_v13  ;;  %v443_v16 = vsub.f32 %v1590_v35, %v1615_v12  ;;  %v449_v41 = vmul.f32 %v441_v6, %v441_v6  ;;  %v501_v19 = vmul.f32 %v493_v7, %v493_v7 }
  0xbd   : > { %v506_v51 = vadd.f32 %v498_v38, %v446_v30  ;;  %v505_v52 = vadd.f32 %v497_v44, %v445_v43  ;;  %v440_v46 = vsub.f32 %v1584_v32, %v1615_v12  ;;  %v499_v21 = vmul.f32 %v491_v14, %v491_v14 }
  0xbe   : > { %v1603_v54 = vpop.permute.xlu0 %820  ;;  %v503_v24 = vmul.f32 %v495_v10, %v495_v10  ;;  %v442_v35 = vsub.f32 %v1576_v26, %v1615_v12  ;;  %v451_v22 = vmul.f32 %v443_v16, %v443_v16  ;;  %v509_v30 = vadd.f32 %v501_v19, %v449_v41 }
  0xbf   : > { %v1605_v55 = vpop.permute.xlu1 %474  ;;  %v851_v42 = vsub.f32 %v1603_v54, %v1617_v13  ;;  %v444_v38 = vsub.f32 %v1578_v27, %v1615_v12  ;;  %v448_v44 = vmul.f32 %v440_v46, %v440_v46  ;;  %v804_v54 = vsub.f32 %v1580_v29, %v1615_v12 }
  0xc0   : > { %v511_v43 = vadd.f32 %v503_v24, %v451_v22  ;;  %v807_v29 = vsub.f32 %v1582_v31, %v1615_v12 }
  0xc1   : > { %v812_v6 = vmul.f32 %v804_v54, %v804_v54 }
  0xc2   : > { %v1607_v61 = vpop.permute.xlu0 %832  ;;  %v815_v19 = vmul.f32 %v807_v29, %v807_v29 }
  0xc3   : > { %v1609_v62 = vpop.permute.xlu1 %482  ;;  %v854_v27 = vsub.f32 %v1607_v61, %v1617_v13 }
  0xc6   : > { %v1611_v4 = vpop.permute.xlu0 %840 }
  0xc8   : > { %v519_v8 = vpop.permute.xlu1 %518 }
  0xca   : > { %v1613_v11 = vpop.permute.xlu0 %848 }
  0xcd   : > { %v1619_v15 = vpop.permute.xlu1 %765 }
  0xcf   : > { %v380_v20 = vpop.permute.xlu0 %379 }
  0xd0   : > { %v385_v36 = vrot.slane %v380_v20, %v352_v58  ;;  %v447_v20 = vmul.f32 %v439_v9, %v439_v9 }
  0xd1   : > { %v1625_v37 = vpop.permute.xlu1 %775 }
  0xd2   : > { %v386_v23 = vadd.f32 %v385_v36, %v377_v25  ;;  %v805_v41 = vsub.f32 %v1625_v37, %v1615_v12 }
  0xd3   : > { %v515_v48 = vpop.permute.xlu0 %514 }
  0xd4   : > { %v390_v28 = vsel %vm389_vm1, %v388_v40, %v386_v23  ;;  %v1632_v45 = vrot.slane %v386_v23, %v547_v17  ;;  %v492_v17 = vsub.f32 %v1601_v47, %v1617_v13  ;;  %v494_v47 = vsub.f32 %v1605_v55, %v1617_v13 }
  0xd5   : > { %v1634_v39 = vpop.permute.xlu1 %780  ;;  %392 = vst.msk [vmem:[%s293_s14] sm:$0x7] %vm391_vm2, %v390_v28  ;;  %v507_v28 = vadd.f32 %v499_v21, %v447_v20  ;;  %v859_v55 = vmul.f32 %v851_v42, %v851_v42 }
  0xd6   : > { %v549_v49 = vsub.f32 %v515_v48, %v1632_v45  ;;  %v550_v50 = vsub.f32 %v519_v8, %v1632_v45  ;;  %v500_v25 = vmul.f32 %v492_v17, %v492_v17  ;;  %v450_v48 = vmul.f32 %v442_v35, %v442_v35 }
  0xd7   : > { %v527_v2 = vpop.permute.xlu0 %526  ;;  %v806_v42 = vsub.f32 %v1634_v39, %v1615_v12 }
  0xd8   : > { %v557_v53 = vmul.f32 %v549_v49, %v549_v49  ;;  %v558_v57 = vmul.f32 %v550_v50, %v550_v50  ;;  %v552_v36 = vsub.f32 %v527_v2, %v1632_v45  ;;  %v502_v49 = vmul.f32 %v494_v47, %v494_v47 }
  0xd9   : > { %v1638_v56 = vpop.permute.xlu1 %790  ;;  %v508_v50 = vadd.f32 %v500_v25, %v448_v44  ;;  %v496_v2 = vsub.f32 %v1609_v62, %v1617_v13 }
  0xda   : > { %v566_v58 = vadd.f32 %v558_v57, %v506_v51  ;;  %v565_v59 = vadd.f32 %v557_v53, %v505_v52  ;;  %v560_v51 = vmul.f32 %v552_v36, %v552_v36  ;;  %v452_v57 = vmul.f32 %v444_v38, %v444_v38 }
  0xdb   : > { %v539_v8 = vpop.permute.xlu0 %538  ;;  %v510_v9 = vadd.f32 %v502_v49, %v450_v48  ;;  %v504_v24 = vmul.f32 %v496_v2, %v496_v2 }
  0xdc   : > { %v1641_v60 = vsel %vm573_vm3, %v566_v58, inf  ;;  %v1644_v63 = vsel %vm573_vm3, %v565_v59, inf  ;;  %v555_v34 = vsub.f32 %v539_v8, %v1632_v45  ;;  %v803_v58 = vsub.f32 %v1619_v15, %v1615_v12 }
  0xdd   : > { %v1646_v0 = vpop.permute.xlu1 %800  ;;  %578 = vmin.xlane.f32.xlu1 %v1641_v60  ;;  %575 = vmin.xlane.f32.xlu0 %v1644_v63  ;;  %v809_v15 = vsub.f32 %v1586_v33, %v1615_v12  ;;  %v568_v17 = vadd.f32 %v560_v51, %v508_v50  ;;  %v862_v33 = vmul.f32 %v854_v27, %v854_v27 }
  0xde   : > { %v563_v23 = vmul.f32 %v555_v34, %v555_v34  ;;  %v811_v34 = vmul.f32 %v803_v58, %v803_v58  ;;  %v512_v39 = vadd.f32 %v504_v24, %v452_v57  ;;  %v808_v58 = vsub.f32 %v1638_v56, %v1615_v12 }
  0xdf   : > { %v877_v32 = vpop.permute.xlu0 %876  ;;  %v817_v44 = vmul.f32 %v809_v15, %v809_v15  ;;  %v856_v15 = vsub.f32 %v1611_v4, %v1617_v13 }
  0xe0   : > { %v571_v53 = vadd.f32 %v563_v23, %v511_v43  ;;  %v907_v10 = vsub.f32 %v877_v32, %v1632_v45  ;;  %v583_v23 = vsel %vm573_vm3, %v568_v17, inf  ;;  %v867_v38 = vadd.f32 %v859_v55, %v811_v34 }
  0xe1   : > { %v813_v32 = vmul.f32 %v805_v41, %v805_v41  ;;  %v816_v24 = vmul.f32 %v808_v58, %v808_v58 }
  0xe2   : > { %v1650_v1 = vpop.permute.xlu1 %824  ;;  %v1702_v62 = vsel %vm573_vm3, %v571_v53, inf  ;;  %v915_v35 = vmul.f32 %v907_v10, %v907_v10 }
  0xe3   : > { %v885_v14 = vpop.permute.xlu0 %884  ;;  %v852_v47 = vsub.f32 %v1650_v1, %v1617_v13 }
  0xe4   : > { %v923_v48 = vadd.f32 %v915_v35, %v867_v38 }
  0xe6   : > { %v829_v3 = vpop.permute.xlu1 %828 }
  0xe7   : > { %v853_v61 = vsub.f32 %v829_v3, %v1617_v13 }
  0xe9   : > { %v861_v37 = vmul.f32 %v853_v61, %v853_v61 }
  0xea   : > { %v1652_v5 = vpop.permute.xlu1 %836 }
  0xeb   : > { %v855_v22 = vsub.f32 %v1652_v5, %v1617_v13  ;;  %v860_v5 = vmul.f32 %v852_v47, %v852_v47  ;;  %v864_v47 = vmul.f32 %v856_v15, %v856_v15 }
  0xed   : > { %v863_v49 = vmul.f32 %v855_v22, %v855_v22  ;;  %v868_v2 = vadd.f32 %v860_v5, %v812_v6 }
  0xee   : > { %v1669_v18 = vpop.permute.xlu1 %844 }
  0xef   : > { %v857_v55 = vsub.f32 %v1669_v18, %v1617_v13  ;;  %v871_v10 = vadd.f32 %v863_v49, %v815_v19  ;;  %v810_v19 = vsub.f32 %v1646_v0, %v1615_v12 }
  0xf3   : > { %v523_v40 = vpop.permute.xlu1 %522 }
  0xf4   : > { %v551_v26 = vsub.f32 %v523_v40, %v1632_v45  ;;  %v893_v40 = vpop.permute.xlu0 %892 }
  0xf5   : > { %v911_v29 = vsub.f32 %v893_v40, %v1632_v45 }
  0xf6   : > { %v559_v52 = vmul.f32 %v551_v26, %v551_v26  ;;  %v814_v26 = vmul.f32 %v806_v42, %v806_v42 }
  0xf7   : > { %v531_v59 = vpop.permute.xlu1 %530  ;;  %v919_v34 = vmul.f32 %v911_v29, %v911_v29 }
  0xf8   : > { %v553_v7 = vsub.f32 %v531_v59, %v1632_v45  ;;  %v567_v8 = vadd.f32 %v559_v52, %v507_v28  ;;  %v869_v28 = vadd.f32 %v861_v37, %v813_v32  ;;  %v870_v56 = vadd.f32 %v862_v33, %v814_v26 }
  0xf9   : > { %v927_v35 = vadd.f32 %v919_v34, %v871_v10 }
  0xfa   : > { %v561_v16 = vmul.f32 %v553_v7, %v553_v7  ;;  %v1699_v31 = vsel %vm573_vm3, %v567_v8, inf  ;;  %v901_v7 = vpop.permute.xlu0 %900 }
  0xfb   : > { %v535_v20 = vpop.permute.xlu1 %534  ;;  %581 = vmin.xlane.f32.xlu0 %v1699_v31  ;;  %v752_v3 = vmin.f32 %v1699_v31, %v1702_v62  ;;  %v913_v6 = vsub.f32 %v901_v7, %v1632_v45  ;;  %v943_v38 = vsel %vm573_vm3, %v927_v35, inf }
  0xfc   : > { %v554_v46 = vsub.f32 %v535_v20, %v1632_v45  ;;  %v569_v21 = vadd.f32 %v561_v16, %v509_v30  ;;  %v909_v30 = vsub.f32 %v885_v14, %v1632_v45  ;;  %v865_v14 = vmul.f32 %v857_v55, %v857_v55 }
  0xfd   : > { %v921_v12 = vmul.f32 %v913_v6, %v913_v6 }
  0xfe   : > { %v562_v25 = vmul.f32 %v554_v46, %v554_v46  ;;  %v586_v36 = vsel %vm573_vm3, %v569_v21, inf  ;;  %v917_v52 = vmul.f32 %v909_v30, %v909_v30  ;;  %v873_v33 = vadd.f32 %v865_v14, %v817_v44 }
  0xff   : > { %v543_v43 = vpop.permute.xlu1 %542  ;;  %587 = vmin.xlane.f32.xlu1 %v586_v36  ;;  %584 = vmin.xlane.f32.xlu0 %v583_v23  ;;  %v750_v53 = vmin.f32 %v1644_v63, %v586_v36 }
 0x100   : > { %v556_v1 = vsub.f32 %v543_v43, %v1632_v45  ;;  %v570_v54 = vadd.f32 %v562_v25, %v510_v9  ;;  %v931_v9 = vsel %vm573_vm3, %v923_v48, inf  ;;  %v925_v63 = vadd.f32 %v917_v52, %v869_v28 }
 0x101   : > { %v858_v25 = vsub.f32 %v1613_v11, %v1617_v13  ;;  %v929_v32 = vadd.f32 %v921_v12, %v873_v33  ;;  %v1107_v26 = vmin.f32 %v931_v9, %v943_v38 }
 0x102   : > { %v564_v50 = vmul.f32 %v556_v1, %v556_v1  ;;  %v589_v51 = vsel %vm573_vm3, %v570_v54, inf  ;;  %v937_v4 = vsel %vm573_vm3, %v925_v63, inf }
 0x103   : > { %v881_v27 = vpop.permute.xlu1 %880  ;;  %v751_v57 = vmin.f32 %v1641_v60, %v589_v51  ;;  %590 = vmin.xlane.f32.xlu0 %v589_v51  ;;  %593 = vmin.xlane.f32.xlu1 %v1702_v62  ;;  %v872_v62 = vadd.f32 %v864_v47, %v816_v24  ;;  %v866_v40 = vmul.f32 %v858_v25, %v858_v25  ;;  %v949_v1 = vsel %vm573_vm3, %v929_v32, inf }
 0x104   : > { %v908_v59 = vsub.f32 %v881_v27, %v1632_v45  ;;  %v572_v18 = vadd.f32 %v564_v50, %v512_v39  ;;  %v1109_v50 = vmin.f32 %v937_v4, %v949_v1 }
 0x105   : > { %v754_v8 = vmin.f32 %v750_v53, %v751_v57 }
 0x106   : > { %v916_v60 = vmul.f32 %v908_v59, %v908_v59  ;;  %v595_v61 = vsel %vm573_vm3, %v572_v18, inf }
 0x107   : > { %v889_v16 = vpop.permute.xlu1 %888  ;;  %596 = vmin.xlane.f32.xlu0 %v595_v61  ;;  %v753_v17 = vmin.f32 %v583_v23, %v595_v61  ;;  %932 = vmin.xlane.f32.xlu1 %v931_v9 }
 0x108   : > { %v910_v41 = vsub.f32 %v889_v16, %v1632_v45  ;;  %v924_v20 = vadd.f32 %v916_v60, %v868_v2 }
 0x109   : > { %v755_v46 = vmin.f32 %v752_v3, %v753_v17  ;;  %v818_v3 = vmul.f32 %v810_v19, %v810_v19 }
 0x10a   : > { %v918_v21 = vmul.f32 %v910_v41, %v910_v41  ;;  %v934_v42 = vsel %vm573_vm3, %v924_v20, inf }
 0x10b   : > { %v756_v37 = vmin.f32 %v754_v8, %v755_v46  ;;  %v897_v22 = vpop.permute.xlu1 %896  ;;  %935 = vmin.xlane.f32.xlu0 %v934_v42  ;;  %938 = vmin.xlane.f32.xlu1 %v937_v4  ;;  %v874_v11 = vadd.f32 %v866_v40, %v818_v3 }
 0x10c   : > { %v912_v0 = vsub.f32 %v897_v22, %v1632_v45  ;;  %v926_v31 = vadd.f32 %v918_v21, %v870_v56 }
 0x10d   : > { %v757_v54 = vrot.slane %v756_v37, 4 }
 0x10e   : > { %v920_v36 = vmul.f32 %v912_v0, %v912_v0  ;;  %v940_v23 = vsel %vm573_vm3, %v926_v31, inf }
 0x10f   : > { %v905_v30 = vpop.permute.xlu1 %904  ;;  %941 = vmin.xlane.f32.xlu0 %v940_v23  ;;  %944 = vmin.xlane.f32.xlu1 %v943_v38  ;;  %v758_v55 = vmin.f32 %v756_v37, %v757_v54 }
 0x110   : > { %v914_v43 = vsub.f32 %v905_v30, %v1632_v45  ;;  %v928_v39 = vadd.f32 %v920_v36, %v872_v62 }
 0x111   : > { %v759_v52 = vrot.slane %v758_v55, 2 }
 0x112   : > { %v922_v13 = vmul.f32 %v914_v43, %v914_v43  ;;  %v946_v44 = vsel %vm573_vm3, %v928_v39, inf }
 0x113   : > { %v1108_v5 = vmin.f32 %v934_v42, %v946_v44  ;;  %947 = vmin.xlane.f32.xlu0 %v946_v44  ;;  %950 = vmin.xlane.f32.xlu1 %v949_v1  ;;  %v760_v57 = vmin.f32 %v758_v55, %v759_v52 }
 0x114   : > { %v930_v28 = vadd.f32 %v922_v13, %v874_v11 }
 0x115   : > { %v1111_v48 = vmin.f32 %v1107_v26, %v1108_v5  ;;  %v761_v59 = vrot.slane %v760_v57, 1 }
 0x116   : > { %v952_v49 = vsel %vm573_vm3, %v930_v28, inf }
 0x117   : > { %v1110_v51 = vmin.f32 %v940_v23, %v952_v49  ;;  %953 = vmin.xlane.f32.xlu0 %v952_v49  ;;  %v762_v7 = vmin.f32 %v760_v57, %v761_v59 }
 0x119   : > { %v1112_v45 = vmin.f32 %v1109_v50, %v1110_v51 }
 0x11b   : > { %v1113_v53 = vmin.f32 %v1111_v48, %v1112_v45 }
 0x11d   : > { %v1114_v27 = vrot.slane %v1113_v53, 4 }
 0x11f   : > { %v1115_v58 = vmin.f32 %v1113_v53, %v1114_v27 }
 0x121   : > { %v1116_v29 = vrot.slane %v1115_v58, 2 }
 0x123   : > { %v1117_v18 = vmin.f32 %v1115_v58, %v1116_v29 }
 0x125   : > { %v1118_v2 = vrot.slane %v1117_v18, 1 }
 0x127   : > { %v1119_v8 = vmin.f32 %v1117_v18, %v1118_v2 }
 0x129   : > { %v1120_v9 = vmin.f32 %v762_v7, %v1119_v8 }
 0x12b   : > { %v1138_v63 = vmax.f32 %v1120_v9, 0.0 }
 0x12d   : > { %1363 = vrsqrt.f32 %v1138_v63  ;;  %vm1141_vm4 = vcmp.eq.f32.partialorder %v1138_v63, inf  ;;  %v1144_v60 = vand.u32 2147483648, %v1138_v63  ;;  %vm1143_vm5 = vcmp.eq.f32.partialorder %v1138_v63, 0.0 }
 0x137   : > { %v1364_v10 = vpop.eup %1363 }
 0x138   : > { %v1140_v14 = vmul.f32 %v1364_v10, %v1138_v63 }
 0x13a   : > { %v1142_v61 = vsel %vm1141_vm4, %v1138_v63, %v1140_v14 }
 0x13b   : > { %v1145_v15 = vsel %vm1143_vm5, %v1144_v60, %v1142_v61 }
 0x13c   : > { %v1146_v56 = vmul.f32 100.0, %v1145_v15 }
 0x13e   : > { %v1334_v16 = vmul.f32 -2.0, %v1146_v56 }
 0x140   : > { %v1149_v17 = vmul.f32 1.442695, %v1334_v16 }
 0x142   : > { %1365 = vpow2.f32 %v1149_v17 }
 0x14c   : > { %v1366_v34 = vpop.eup %1365 }
 0x14d   : > { %v1151_v6 = vadd.f32 1.0, %v1366_v34 }
 0x14f   : > { %1367 = vrcp.f32 %v1151_v6 }
 0x159   : > { %v1368_v41 = vpop.eup %1367 }
 0x15a   : > { %v1335_v20 = vadd.f32 -0.5, %v1368_v41 }
 0x15c   : > { %v1155_v24 = vmul.f32 2.0, %v1335_v20 }
 0x15e   : > { %v1156_v19 = vsub.f32 1.0, %v1155_v24 }
 0x160   : > { %1158 = vst.msk [vmem:[%s301_s17] sm:$0x1] %vm1157_vm6, %v1156_v19 }
 0x16a   : > { %v579_v46 = vpop.xlane.xlu1 %578  ;;  %v576_v4 = vpop.xlane.xlu0 %575 }
 0x16b   : > { %v599_v33 = vmax.f32 %v579_v46, 0.0  ;;  %v598_v21 = vmax.f32 %v576_v4, 0.0 }
 0x16d   : > { %1369 = vrsqrt.f32 %v599_v33  ;;  %vm615_vm7 = vcmp.eq.f32.partialorder %v599_v33, inf  ;;  %v618_v37 = vand.u32 2147483648, %v599_v33  ;;  %vm617_vm8 = vcmp.eq.f32.partialorder %v599_v33, 0.0 }
 0x16e   : > { %1371 = vrsqrt.f32 %v598_v21  ;;  %vm608_vm9 = vcmp.eq.f32.partialorder %v598_v21, inf  ;;  %v611_v12 = vand.u32 2147483648, %v598_v21  ;;  %vm610_vm10 = vcmp.eq.f32.partialorder %v598_v21, 0.0 }
 0x177   : > { %v1370_v42 = vpop.eup %1369 }
 0x178   : > { %v1372_v35 = vpop.eup %1371  ;;  %v614_v47 = vmul.f32 %v1370_v42, %v599_v33 }
 0x179   : > { %v607_v22 = vmul.f32 %v1372_v35, %v598_v21 }
 0x17a   : > { %v616_v25 = vsel %vm615_vm7, %v599_v33, %v614_v47 }
 0x17b   : > { %v619_v0 = vsel %vm617_vm8, %v618_v37, %v616_v25  ;;  %v609_v31 = vsel %vm608_vm9, %v598_v21, %v607_v22 }
 0x17c   : > { %v663_v62 = vmul.f32 100.0, %v619_v0  ;;  %v612_v3 = vsel %vm610_vm10, %v611_v12, %v609_v31 }
 0x17d   : > { %v662_v36 = vmul.f32 100.0, %v612_v3 }
 0x17e   : > { %v1303_v23 = vmul.f32 -2.0, %v663_v62 }
 0x17f   : > { %v1302_v38 = vmul.f32 -2.0, %v662_v36 }
 0x180   : > { %v688_v32 = vmul.f32 1.442695, %v1303_v23 }
 0x181   : > { %v686_v30 = vmul.f32 1.442695, %v1302_v38 }
 0x182   : > { %1373 = vpow2.f32 %v688_v32 }
 0x183   : > { %1375 = vpow2.f32 %v686_v30 }
 0x188   : > { %v582_v40 = vpop.xlane.xlu0 %581 }
 0x189   : > { %v600_v43 = vmax.f32 %v582_v40, 0.0 }
 0x18b   : > { %1377 = vrsqrt.f32 %v600_v43  ;;  %vm622_vm11 = vcmp.eq.f32.partialorder %v600_v43, inf  ;;  %vm624_vm12 = vcmp.eq.f32.partialorder %v600_v43, 0.0  ;;  %v625_v52 = vand.u32 2147483648, %v600_v43 }
 0x18c   : > { %v588_v39 = vpop.xlane.xlu1 %587  ;;  %v585_v11 = vpop.xlane.xlu0 %584 }
 0x18d   : > { %v1374_v13 = vpop.eup %1373  ;;  %v1756_v44 = vmax.f32 %v588_v39, 0.0  ;;  %v1758_v26 = vmax.f32 %v585_v11, 0.0 }
 0x18e   : > { %v1376_v1 = vpop.eup %1375  ;;  %v703_v54 = vadd.f32 1.0, %v1374_v13 }
 0x18f   : > { %v702_v5 = vadd.f32 1.0, %v1376_v1  ;;  %1379 = vrsqrt.f32 %v1756_v44  ;;  %vm636_vm14 = vcmp.eq.f32.partialorder %v1756_v44, inf  ;;  %vm638_vm15 = vcmp.eq.f32.partialorder %v1756_v44, 0.0 }
 0x190   : > { %1381 = vrcp.f32 %v703_v54  ;;  %v594_v28 = vpop.xlane.xlu1 %593  ;;  %v591_v48 = vpop.xlane.xlu0 %590  ;;  %v639_v58 = vand.u32 2147483648, %v1756_v44  ;;  %vm629_vm0 = vcmp.eq.f32.partialorder %v1758_v26, inf  ;;  %vm631_vm1 = vcmp.eq.f32.partialorder %v1758_v26, 0.0 }
 0x191   : > { %1383 = vrcp.f32 %v702_v5  ;;  %v1761_v49 = vmax.f32 %v594_v28, 0.0  ;;  %v1763_v55 = vmax.f32 %v591_v48, 0.0  ;;  %v632_v29 = vand.u32 2147483648, %v1758_v26 }
 0x192   : > { %1385 = vrsqrt.f32 %v1758_v26 }
 0x193   : > { %1387 = vrsqrt.f32 %v1761_v49  ;;  %vm650_vm2 = vcmp.eq.f32.partialorder %v1761_v49, inf  ;;  %v653_v18 = vand.u32 2147483648, %v1761_v49  ;;  %vm652_vm3 = vcmp.eq.f32.partialorder %v1761_v49, 0.0 }
 0x194   : > { %1389 = vrsqrt.f32 %v1763_v55  ;;  %v933_v50 = vpop.xlane.xlu1 %932  ;;  %v597_v51 = vpop.xlane.xlu0 %596  ;;  %vm643_vm4 = vcmp.eq.f32.partialorder %v1763_v55, inf  ;;  %vm645_vm5 = vcmp.eq.f32.partialorder %v1763_v55, 0.0  ;;  %v646_v15 = vand.u32 2147483648, %v1763_v55 }
 0x195   : > { %v1378_v45 = vpop.eup %1377  ;;  %v1768_v53 = vmax.f32 %v933_v50, 0.0  ;;  %v1770_v27 = vmax.f32 %v597_v51, 0.0 }
 0x196   : > { %v621_v57 = vmul.f32 %v1378_v45, %v600_v43 }
 0x197   : > { %1391 = vrsqrt.f32 %v1768_v53  ;;  %vm965_vm6 = vcmp.eq.f32.partialorder %v1768_v53, inf  ;;  %v968_v17 = vand.u32 2147483648, %v1768_v53  ;;  %vm967_vm7 = vcmp.eq.f32.partialorder %v1768_v53, 0.0 }
 0x198   : > { %v623_v59 = vsel %vm622_vm11, %v600_v43, %v621_v57  ;;  %1393 = vrsqrt.f32 %v1770_v27  ;;  %v939_v2 = vpop.xlane.xlu1 %938  ;;  %v936_v7 = vpop.xlane.xlu0 %935  ;;  %v660_v24 = vand.u32 2147483648, %v1770_v27  ;;  %vm657_vm8 = vcmp.eq.f32.partialorder %v1770_v27, inf }
 0x199   : > { %v1380_v8 = vpop.eup %1379  ;;  %v626_v9 = vsel %vm624_vm12, %v625_v52, %v623_v59  ;;  %v1786_v63 = vmax.f32 %v939_v2, 0.0  ;;  %v1788_v10 = vmax.f32 %v936_v7, 0.0  ;;  %vm659_vm9 = vcmp.eq.f32.partialorder %v1770_v27, 0.0 }
 0x19a   : > { %v1382_v14 = vpop.eup %1381  ;;  %v664_v60 = vmul.f32 100.0, %v626_v9  ;;  %v635_v61 = vmul.f32 %v1380_v8, %v1756_v44 }
 0x19b   : > { %v1384_v56 = vpop.eup %1383  ;;  %v1311_v16 = vadd.f32 -0.5, %v1382_v14  ;;  %1395 = vrsqrt.f32 %v1786_v63  ;;  %vm979_vm10 = vcmp.eq.f32.partialorder %v1786_v63, inf  ;;  %vm981_vm11 = vcmp.eq.f32.partialorder %v1786_v63, 0.0 }
 0x19c   : > { %v1386_v34 = vpop.eup %1385  ;;  %v1310_v6 = vadd.f32 -0.5, %v1384_v56  ;;  %v1304_v41 = vmul.f32 -2.0, %v664_v60  ;;  %v637_v20 = vsel %vm636_vm14, %v1756_v44, %v635_v61  ;;  %1397 = vrsqrt.f32 %v1788_v10  ;;  %v945_v32 = vpop.xlane.xlu1 %944 }
 0x19d   : > { %v1388_v19 = vpop.eup %1387  ;;  %v735_v46 = vmul.f32 2.0, %v1311_v16  ;;  %v640_v4 = vsel %vm638_vm15, %v639_v58, %v637_v20  ;;  %v628_v33 = vmul.f32 %v1386_v34, %v1758_v26  ;;  %v982_v5 = vand.u32 2147483648, %v1786_v63  ;;  %v942_v45 = vpop.xlane.xlu0 %941 }
 0x19e   : > { %v1390_v21 = vpop.eup %1389  ;;  %v734_v42 = vmul.f32 2.0, %v1310_v6  ;;  %v690_v35 = vmul.f32 1.442695, %v1304_v41  ;;  %v666_v47 = vmul.f32 100.0, %v640_v4  ;;  %v649_v37 = vmul.f32 %v1388_v19, %v1761_v49 }
 0x19f   : > { %v743_v22 = vsub.f32 1.0, %v735_v46  ;;  %v630_v25 = vsel %vm629_vm0, %v1758_v26, %v628_v33  ;;  %v642_v12 = vmul.f32 %v1390_v21, %v1763_v55  ;;  %v1843_v28 = vmax.f32 %v945_v32, 0.0 }
 0x1a0   : > { %v742_v0 = vsub.f32 1.0, %v734_v42  ;;  %1399 = vpow2.f32 %v690_v35  ;;  %v1306_v31 = vmul.f32 -2.0, %v666_v47  ;;  %v633_v62 = vsel %vm631_vm1, %v632_v29, %v630_v25  ;;  %v951_v6 = vpop.xlane.xlu1 %950 }
 0x1a1   : > { %v1392_v3 = vpop.eup %1391  ;;  %1123 = vst.msk [vmem:[%s1811_s20 + $0x8] sm:$0xff] %vm1121_vm13, %v743_v22  ;;  %v665_v36 = vmul.f32 100.0, %v633_v62  ;;  %v651_v23 = vsel %vm650_vm2, %v1761_v49, %v649_v37  ;;  %v644_v38 = vsel %vm643_vm4, %v1763_v55, %v642_v12  ;;  %vm972_vm12 = vcmp.eq.f32.partialorder %v1788_v10, inf  ;;  %v948_v41 = vpop.xlane.xlu0 %947 }
 0x1a2   : > { %v1394_v30 = vpop.eup %1393  ;;  %1122 = vst.msk [vmem:[%s1811_s20] sm:$0xff] %vm1121_vm13, %v742_v0  ;;  %v694_v40 = vmul.f32 1.442695, %v1306_v31  ;;  %v654_v43 = vsel %vm652_vm3, %v653_v18, %v651_v23  ;;  %v647_v39 = vsel %vm645_vm5, %v646_v15, %v644_v38  ;;  %v964_v11 = vmul.f32 %v1392_v3, %v1768_v53 }
 0x1a3   : > { %v1305_v13 = vmul.f32 -2.0, %v665_v36  ;;  %v668_v44 = vmul.f32 100.0, %v654_v43  ;;  %v667_v1 = vmul.f32 100.0, %v647_v39  ;;  %v656_v54 = vmul.f32 %v1394_v30, %v1770_v27 }
 0x1a4   : > { %1401 = vpow2.f32 %v694_v40  ;;  %v966_v26 = vsel %vm965_vm6, %v1768_v53, %v964_v11  ;;  %v975_v60 = vand.u32 2147483648, %v1788_v10  ;;  %vm974_vm14 = vcmp.eq.f32.partialorder %v1788_v10, 0.0 }
 0x1a5   : > { %v1396_v48 = vpop.eup %1395  ;;  %v692_v49 = vmul.f32 1.442695, %v1305_v13  ;;  %v1308_v55 = vmul.f32 -2.0, %v668_v44  ;;  %v1307_v50 = vmul.f32 -2.0, %v667_v1  ;;  %v969_v51 = vsel %vm967_vm7, %v968_v17, %v966_v26  ;;  %v954_v25 = vpop.xlane.xlu0 %953 }
 0x1a6   : > { %v1019_v52 = vmul.f32 100.0, %v969_v51  ;;  %v658_v57 = vsel %vm657_vm8, %v1770_v27, %v656_v54  ;;  %v978_v58 = vmul.f32 %v1396_v48, %v1786_v63  ;;  %1403 = vrsqrt.f32 %v1843_v28  ;;  %v1398_v29 = vpop.eup %1397 }
 0x1a7   : > { %1405 = vpow2.f32 %v692_v49  ;;  %v698_v59 = vmul.f32 1.442695, %v1308_v55  ;;  %v696_v18 = vmul.f32 1.442695, %v1307_v50  ;;  %v661_v2 = vsel %vm659_vm9, %v660_v24, %v658_v57 }
 0x1a8   : > { %v1318_v7 = vmul.f32 -2.0, %v1019_v52  ;;  %v669_v53 = vmul.f32 100.0, %v661_v2  ;;  %v980_v8 = vsel %vm979_vm10, %v1786_v63, %v978_v58  ;;  %v971_v9 = vmul.f32 %v1398_v29, %v1788_v10 }
 0x1a9   : > { %1407 = vpow2.f32 %v698_v59  ;;  %v983_v14 = vsel %vm981_vm11, %v982_v5, %v980_v8  ;;  %v1864_v34 = vmax.f32 %v942_v45, 0.0  ;;  %v1866_v33 = vmax.f32 %v951_v6, 0.0 }
 0x1aa   : > { %v1400_v61 = vpop.eup %1399  ;;  %1409 = vpow2.f32 %v696_v18  ;;  %v1043_v27 = vmul.f32 1.442695, %v1318_v7  ;;  %v1309_v15 = vmul.f32 -2.0, %v669_v53  ;;  %v1021_v56 = vmul.f32 100.0, %v983_v14 }
 0x1ab   : > { %v704_v16 = vadd.f32 1.0, %v1400_v61  ;;  %v973_v17 = vsel %vm972_vm12, %v1788_v10, %v971_v9  ;;  %v1870_v22 = vmax.f32 %v948_v41, 0.0  ;;  %vm993_vm15 = vcmp.eq.f32.partialorder %v1843_v28, inf }
 0x1ac   : > { %1411 = vpow2.f32 %v1043_v27  ;;  %v700_v63 = vmul.f32 1.442695, %v1309_v15  ;;  %v1320_v20 = vmul.f32 -2.0, %v1021_v56  ;;  %v976_v24 = vsel %vm974_vm14, %v975_v60, %v973_v17 }
 0x1ad   : > { %1413 = vrcp.f32 %v704_v16  ;;  %v1020_v19 = vmul.f32 100.0, %v976_v24  ;;  %v996_v0 = vand.u32 2147483648, %v1843_v28  ;;  %vm995_vm0 = vcmp.eq.f32.partialorder %v1843_v28, 0.0 }
 0x1ae   : > { %v1402_v46 = vpop.eup %1401  ;;  %1415 = vpow2.f32 %v700_v63  ;;  %v1047_v4 = vmul.f32 1.442695, %v1320_v20  ;;  %v1877_v38 = vmax.f32 %v954_v25, 0.0  ;;  %vm986_vm1 = vcmp.eq.f32.partialorder %v1864_v34, inf }
 0x1af   : > { %v706_v21 = vadd.f32 1.0, %v1402_v46  ;;  %v1319_v42 = vmul.f32 -2.0, %v1020_v19  ;;  %1417 = vrsqrt.f32 %v1864_v34  ;;  %vm988_vm2 = vcmp.eq.f32.partialorder %v1864_v34, 0.0 }
 0x1b0   : > { %v1404_v10 = vpop.eup %1403  ;;  %1419 = vpow2.f32 %v1047_v4  ;;  %v989_v49 = vand.u32 2147483648, %v1864_v34  ;;  %vm1007_vm3 = vcmp.eq.f32.partialorder %v1866_v33, inf  ;;  %vm1009_vm4 = vcmp.eq.f32.partialorder %v1866_v33, 0.0 }
 0x1b1   : > { %v1406_v35 = vpop.eup %1405  ;;  %1421 = vrcp.f32 %v706_v21  ;;  %v1045_v47 = vmul.f32 1.442695, %v1319_v42  ;;  %v992_v37 = vmul.f32 %v1404_v10, %v1843_v28  ;;  %v1010_v18 = vand.u32 2147483648, %v1866_v33 }
 0x1b2   : > { %v705_v12 = vadd.f32 1.0, %v1406_v35  ;;  %1423 = vrsqrt.f32 %v1866_v33  ;;  %vm1000_vm5 = vcmp.eq.f32.partialorder %v1870_v22, inf  ;;  %vm1002_vm6 = vcmp.eq.f32.partialorder %v1870_v22, 0.0 }
 0x1b3   : > { %v1408_v31 = vpop.eup %1407  ;;  %1425 = vpow2.f32 %v1045_v47  ;;  %v994_v62 = vsel %vm993_vm15, %v1843_v28, %v992_v37  ;;  %v1003_v61 = vand.u32 2147483648, %v1870_v22  ;;  %vm1014_vm7 = vcmp.eq.f32.partialorder %v1877_v38, inf }
 0x1b4   : > { %v1410_v3 = vpop.eup %1409  ;;  %1427 = vrcp.f32 %v705_v12  ;;  %v708_v36 = vadd.f32 1.0, %v1408_v31  ;;  %v997_v23 = vsel %vm995_vm0, %v996_v0, %v994_v62  ;;  %vm1016_vm8 = vcmp.eq.f32.partialorder %v1877_v38, 0.0 }
 0x1b5   : > { %v707_v32 = vadd.f32 1.0, %v1410_v3  ;;  %v1023_v30 = vmul.f32 100.0, %v997_v23  ;;  %1429 = vrsqrt.f32 %v1870_v22 }
 0x1b6   : > { %v1412_v40 = vpop.eup %1411  ;;  %1431 = vrcp.f32 %v708_v36 }
 0x1b7   : > { %v1414_v43 = vpop.eup %1413  ;;  %1433 = vrcp.f32 %v707_v32  ;;  %v1059_v39 = vadd.f32 1.0, %v1412_v40  ;;  %v1322_v11 = vmul.f32 -2.0, %v1023_v30  ;;  %v1017_v32 = vand.u32 2147483648, %v1877_v38 }
 0x1b8   : > { %v1416_v13 = vpop.eup %1415  ;;  %v1312_v44 = vadd.f32 -0.5, %v1414_v43  ;;  %1435 = vrsqrt.f32 %v1877_v38 }
 0x1b9   : > { %v1418_v1 = vpop.eup %1417  ;;  %1437 = vrcp.f32 %v1059_v39  ;;  %v709_v54 = vadd.f32 1.0, %v1416_v13  ;;  %v1051_v26 = vmul.f32 1.442695, %v1322_v11 }
 0x1ba   : > { %v1420_v5 = vpop.eup %1419  ;;  %v736_v28 = vmul.f32 2.0, %v1312_v44  ;;  %v985_v48 = vmul.f32 %v1418_v1, %v1864_v34 }
 0x1bb   : > { %v1422_v55 = vpop.eup %1421  ;;  %1439 = vrcp.f32 %v709_v54  ;;  %v1061_v50 = vadd.f32 1.0, %v1420_v5 }
 0x1bc   : > { %v1424_v51 = vpop.eup %1423  ;;  %v744_v45 = vsub.f32 1.0, %v736_v28  ;;  %v1314_v52 = vadd.f32 -0.5, %v1422_v55  ;;  %1441 = vpow2.f32 %v1051_v26  ;;  %v987_v57 = vsel %vm986_vm1, %v1864_v34, %v985_v48 }
 0x1bd   : > { %v1426_v58 = vpop.eup %1425  ;;  %1443 = vrcp.f32 %v1061_v50  ;;  %v990_v29 = vsel %vm988_vm2, %v989_v49, %v987_v57  ;;  %v1006_v59 = vmul.f32 %v1424_v51, %v1866_v33 }
 0x1be   : > { %v1428_v2 = vpop.eup %1427  ;;  %1124 = vst.msk [vmem:[%s1811_s20 + $0x10] sm:$0xff] %vm1121_vm13, %v744_v45  ;;  %v738_v7 = vmul.f32 2.0, %v1314_v52  ;;  %v1060_v53 = vadd.f32 1.0, %v1426_v58  ;;  %v1022_v8 = vmul.f32 100.0, %v990_v29 }
 0x1bf   : > { %v1430_v9 = vpop.eup %1429  ;;  %v1313_v14 = vadd.f32 -0.5, %v1428_v2  ;;  %v1008_v60 = vsel %vm1007_vm3, %v1866_v33, %v1006_v59 }
 0x1c0   : > { %v1432_v27 = vpop.eup %1431  ;;  %v746_v15 = vsub.f32 1.0, %v738_v7  ;;  %1445 = vrcp.f32 %v1060_v53  ;;  %v1321_v56 = vmul.f32 -2.0, %v1022_v8  ;;  %v1011_v16 = vsel %vm1009_vm4, %v1010_v18, %v1008_v60 }
 0x1c1   : > { %v1434_v17 = vpop.eup %1433  ;;  %v737_v34 = vmul.f32 2.0, %v1313_v14  ;;  %v1316_v6 = vadd.f32 -0.5, %v1432_v27  ;;  %v1025_v41 = vmul.f32 100.0, %v1011_v16  ;;  %v999_v63 = vmul.f32 %v1430_v9, %v1870_v22 }
 0x1c2   : > { %v1436_v20 = vpop.eup %1435  ;;  %1126 = vst.msk [vmem:[%s1811_s20 + $0x20] sm:$0xff] %vm1121_vm13, %v746_v15  ;;  %v1315_v24 = vadd.f32 -0.5, %v1434_v17  ;;  %v1049_v19 = vmul.f32 1.442695, %v1321_v56 }
 0x1c3   : > { %v1438_v46 = vpop.eup %1437  ;;  %v745_v4 = vsub.f32 1.0, %v737_v34  ;;  %v740_v33 = vmul.f32 2.0, %v1316_v6  ;;  %v1324_v21 = vmul.f32 -2.0, %v1025_v41  ;;  %v1001_v42 = vsel %vm1000_vm5, %v1870_v22, %v999_v63 }
 0x1c4   : > { %v739_v10 = vmul.f32 2.0, %v1315_v24  ;;  %v1326_v35 = vadd.f32 -0.5, %v1438_v46  ;;  %1447 = vpow2.f32 %v1049_v19  ;;  %v1004_v47 = vsel %vm1002_vm6, %v1003_v61, %v1001_v42 }
 0x1c5   : > { %v1440_v37 = vpop.eup %1439  ;;  %1125 = vst.msk [vmem:[%s1811_s20 + $0x18] sm:$0xff] %vm1121_vm13, %v745_v4  ;;  %v748_v25 = vsub.f32 1.0, %v740_v33  ;;  %v1055_v12 = vmul.f32 1.442695, %v1324_v21  ;;  %v1024_v0 = vmul.f32 100.0, %v1004_v47  ;;  %v1013_v31 = vmul.f32 %v1436_v20, %v1877_v38 }
 0x1c6   : > { %v1442_v62 = vpop.eup %1441  ;;  %v747_v3 = vsub.f32 1.0, %v739_v10  ;;  %v1091_v36 = vmul.f32 2.0, %v1326_v35  ;;  %v1317_v23 = vadd.f32 -0.5, %v1440_v37 }
 0x1c7   : > { %v1444_v30 = vpop.eup %1443  ;;  %1128 = vst.msk [vmem:[%s1811_s20 + $0x30] sm:$0xff] %vm1121_vm13, %v748_v25  ;;  %v1063_v22 = vadd.f32 1.0, %v1442_v62  ;;  %1449 = vpow2.f32 %v1055_v12  ;;  %v1323_v40 = vmul.f32 -2.0, %v1024_v0  ;;  %v1015_v43 = vsel %vm1014_vm7, %v1877_v38, %v1013_v31 }
 0x1c8   : > { %1127 = vst.msk [vmem:[%s1811_s20 + $0x28] sm:$0xff] %vm1121_vm13, %v747_v3  ;;  %v1099_v39 = vsub.f32 1.0, %v1091_v36  ;;  %v741_v11 = vmul.f32 2.0, %v1317_v23  ;;  %v1328_v13 = vadd.f32 -0.5, %v1444_v30  ;;  %v1018_v44 = vsel %vm1016_vm8, %v1017_v32, %v1015_v43 }
 0x1c9   : > { %1451 = vrcp.f32 %v1063_v22  ;;  %v1053_v1 = vmul.f32 1.442695, %v1323_v40  ;;  %v1026_v54 = vmul.f32 100.0, %v1018_v44 }
 0x1ca   : > { %v1446_v26 = vpop.eup %1445  ;;  %1130 = vst.msk [vmem:[%s1811_s20 + $0x40] sm:$0xff] %vm1121_vm13, %v1099_v39  ;;  %v749_v5 = vsub.f32 1.0, %v741_v11  ;;  %v1093_v28 = vmul.f32 2.0, %v1328_v13 }
 0x1cb   : > { %v1327_v48 = vadd.f32 -0.5, %v1446_v26  ;;  %1453 = vpow2.f32 %v1053_v1  ;;  %v1325_v49 = vmul.f32 -2.0, %v1026_v54 }
 0x1cc   : > { %1129 = vst.msk [vmem:[%s1811_s20 + $0x38] sm:$0xff] %vm1121_vm13, %v749_v5  ;;  %v1101_v55 = vsub.f32 1.0, %v1093_v28 }
 0x1cd   : > { %v1092_v50 = vmul.f32 2.0, %v1327_v48  ;;  %v1057_v51 = vmul.f32 1.442695, %v1325_v49 }
 0x1ce   : > { %v1448_v38 = vpop.eup %1447  ;;  %1132 = vst.msk [vmem:[%s1811_s20 + $0x50] sm:$0xff] %vm1121_vm13, %v1101_v55 }
 0x1cf   : > { %v1100_v45 = vsub.f32 1.0, %v1092_v50  ;;  %v1062_v52 = vadd.f32 1.0, %v1448_v38  ;;  %1455 = vpow2.f32 %v1057_v51 }
 0x1d1   : > { %v1450_v57 = vpop.eup %1449  ;;  %1131 = vst.msk [vmem:[%s1811_s20 + $0x48] sm:$0xff] %vm1121_vm13, %v1100_v45  ;;  %1457 = vrcp.f32 %v1062_v52 }
 0x1d2   : > { %v1065_v58 = vadd.f32 1.0, %v1450_v57 }
 0x1d3   : > { %v1452_v29 = vpop.eup %1451 }
 0x1d4   : > { %v1330_v59 = vadd.f32 -0.5, %v1452_v29  ;;  %1459 = vrcp.f32 %v1065_v58 }
 0x1d5   : > { %v1454_v18 = vpop.eup %1453 }
 0x1d6   : > { %v1095_v2 = vmul.f32 2.0, %v1330_v59  ;;  %v1064_v7 = vadd.f32 1.0, %v1454_v18 }
 0x1d8   : > { %v1103_v53 = vsub.f32 1.0, %v1095_v2  ;;  %1461 = vrcp.f32 %v1064_v7 }
 0x1d9   : > { %v1456_v8 = vpop.eup %1455 }
 0x1da   : > { %1134 = vst.msk [vmem:[%s1811_s20 + $0x60] sm:$0xff] %vm1121_vm13, %v1103_v53  ;;  %v1066_v9 = vadd.f32 1.0, %v1456_v8 }
 0x1db   : > { %v1458_v14 = vpop.eup %1457 }
 0x1dc   : > { %v1329_v60 = vadd.f32 -0.5, %v1458_v14  ;;  %1463 = vrcp.f32 %v1066_v9 }
 0x1de   : > { %v1460_v61 = vpop.eup %1459  ;;  %v1094_v27 = vmul.f32 2.0, %v1329_v60 }
 0x1df   : > { %v1332_v15 = vadd.f32 -0.5, %v1460_v61 }
 0x1e0   : > { %v1102_v56 = vsub.f32 1.0, %v1094_v27 }
 0x1e1   : > { %v1097_v16 = vmul.f32 2.0, %v1332_v15 }
 0x1e2   : > { %v1462_v17 = vpop.eup %1461  ;;  %1133 = vst.msk [vmem:[%s1811_s20 + $0x58] sm:$0xff] %vm1121_vm13, %v1102_v56 }
 0x1e3   : > { %v1105_v34 = vsub.f32 1.0, %v1097_v16  ;;  %v1331_v6 = vadd.f32 -0.5, %v1462_v17 }
 0x1e5   : > { %1136 = vst.msk [vmem:[%s1811_s20 + $0x70] sm:$0xff] %vm1121_vm13, %v1105_v34  ;;  %v1096_v41 = vmul.f32 2.0, %v1331_v6 }
 0x1e6   : > { %v1464_v63 = vpop.eup %1463 }
 0x1e7   : > { %v1104_v20 = vsub.f32 1.0, %v1096_v41  ;;  %v1333_v24 = vadd.f32 -0.5, %v1464_v63 }
 0x1e9   : > { %1135 = vst.msk [vmem:[%s1811_s20 + $0x68] sm:$0xff] %vm1121_vm13, %v1104_v20  ;;  %v1098_v19 = vmul.f32 2.0, %v1333_v24 }
 0x1eb   : > { %v1106_v46 = vsub.f32 1.0, %v1098_v19 }
 0x1ed   : > { %1137 = vst.msk [vmem:[%s1811_s20 + $0x78] sm:$0xff] %vm1121_vm13, %v1106_v46 }
 0x1ee PF: > { %s17_s21 = sadd.s32 1, %s1471_s21  }
 0x1ef   : > { %p14_p4 = scmp.ge.s32.totalorder %s17_s21, 4  }
 0x1f1   :  { %16 = sbr.rel (!%p14_p4) target bundleno = 1 (0x1), region = 96 }

// kernel: h2otr_forward.9
= control target key start
LH: loop header
LB: loop body
LE: loop exit
PB: predicated region body
PF: predicated region fallthrough
CT: control target
= control target key end

     0   :  { %v835_v43 = vmov 1983009808   ;;  %v133_v45 = vlaneseq  ;;  %s1208_s0 = inlined_call_operand.vmem [shape: f32[2,772], index: 0, kind: input, shape index: {}]   ;;  %s1209_s1 = inlined_call_operand.vmem [shape: f32[772,32], index: 1, kind: input, shape index: {}]   ;;  %s1210_s2 = inlined_call_operand.vmem [shape: f32[1,32], index: 2, kind: input, shape index: {}]   ;;  %s1211_s3 = inlined_call_operand.vmem [shape: f32[32,6], index: 3, kind: input, shape index: {}]   ;;  %s1212_s4 = inlined_call_operand.vmem [shape: f32[1,6], index: 4, kind: input, shape index: {}]   ;;  %s1213_s5 = inlined_call_operand.hbm [shape: f32[1,6], index: 5, kind: output, shape index: {}]  }
   0x1   :  { %v39_v0 = vld [vmem:[%s1209_s1 + $0x80] sm:$0xff]  ;;  %v40_v1 = vld [vmem:[%s1209_s1 + $0x88] sm:$0xff]  ;;  %v41_v11 = vld [vmem:[%s1209_s1 + $0x90] sm:$0xff]  ;;  %v131_v44 = vunpack.c.l.s4 %v835_v43 }
   0x2   :  { %v23_v2 = vld [vmem:[%s1209_s1] sm:$0xff]  ;;  %v700_v3 = vpack.c.bf16 %v40_v1, %v39_v0  ;;  %v24_v4 = vld [vmem:[%s1209_s1 + $0x8] sm:$0xff]  ;;  %v42_v13 = vld [vmem:[%s1209_s1 + $0x98] sm:$0xff]  ;;  %v134_v60 = vshrl.u32 %v133_v45, 7 }
   0x3   :  { %v71_v5 = vld [vmem:[%s1209_s1 + $0x180] sm:$0xff]  ;;  %v72_v6 = vld [vmem:[%s1209_s1 + $0x188] sm:$0xff]  ;;  %v702_v7 = vpack.c.bf16 %v24_v4, %v23_v2  ;;  %v25_v14 = vld [vmem:[%s1209_s1 + $0x10] sm:$0xff]  ;;  %v704_v16 = vpack.c.bf16 %v42_v13, %v41_v11  ;;  %v132_v59 = vunpack.c.0.s8 %v131_v44 }
   0x4   :  { %v732_v8 = vpack.c.bf16 %v72_v6, %v71_v5  ;;  %v55_v9 = vld [vmem:[%s1209_s1 + $0x100] sm:$0xff]  ;;  %v56_v10 = vld [vmem:[%s1209_s1 + $0x108] sm:$0xff]  ;;  %701 = vmatprep.subr.bf16.mxu0 %v700_v3  ;;  %v26_v15 = vld [vmem:[%s1209_s1 + $0x18] sm:$0xff] }
   0x5   :  { %v734_v12 = vpack.c.bf16 %v56_v10, %v55_v9  ;;  %703 = vmatpush3.bf16.msra.mxu0 %v702_v7  ;;  %v706_v17 = vpack.c.bf16 %v26_v15, %v25_v14  ;;  %v73_v18 = vld [vmem:[%s1209_s1 + $0x190] sm:$0xff]  ;;  %v74_v19 = vld [vmem:[%s1209_s1 + $0x198] sm:$0xff]  ;;  %v43_v23 = vld [vmem:[%s1209_s1 + $0xa0] sm:$0xff]  ;;  %v1014_v10 = vsub.s32 %v132_v59, %v134_v60 }
   0x6   :  { %733 = vmatprep.subr.bf16.mxu1 %v732_v8  ;;  %v57_v20 = vld [vmem:[%s1209_s1 + $0x110] sm:$0xff]  ;;  %v736_v21 = vpack.c.bf16 %v74_v19, %v73_v18  ;;  %v58_v22 = vld [vmem:[%s1209_s1 + $0x118] sm:$0xff]  ;;  %v44_v24 = vld [vmem:[%s1209_s1 + $0xa8] sm:$0xff]  ;;  %705 = vmatprep.subr.bf16.mxu0 %v704_v16 }
   0x7   :  { %735 = vmatpush3.bf16.msra.mxu1 %v734_v12  ;;  %v738_v25 = vpack.c.bf16 %v58_v22, %v57_v20  ;;  %v708_v26 = vpack.c.bf16 %v44_v24, %v43_v23  ;;  %v27_v27 = vld [vmem:[%s1209_s1 + $0x20] sm:$0xff]  ;;  %v28_v28 = vld [vmem:[%s1209_s1 + $0x28] sm:$0xff]  ;;  %v45_v35 = vld [vmem:[%s1209_s1 + $0xb0] sm:$0xff] }
   0x8   :  { %v75_v29 = vld [vmem:[%s1209_s1 + $0x1a0] sm:$0xff]  ;;  %737 = vmatprep.subr.bf16.mxu1 %v736_v21  ;;  %v76_v30 = vld [vmem:[%s1209_s1 + $0x1a8] sm:$0xff]  ;;  %v710_v33 = vpack.c.bf16 %v28_v28, %v27_v27  ;;  %v46_v36 = vld [vmem:[%s1209_s1 + $0xb8] sm:$0xff] }
   0x9   :  { %v59_v31 = vld [vmem:[%s1209_s1 + $0x120] sm:$0xff]  ;;  %v60_v32 = vld [vmem:[%s1209_s1 + $0x128] sm:$0xff]  ;;  %707 = vmatpush3.bf16.msra.mxu0 %v706_v17  ;;  %v740_v34 = vpack.c.bf16 %v76_v30, %v75_v29  ;;  %v29_v37 = vld [vmem:[%s1209_s1 + $0x30] sm:$0xff]  ;;  %v712_v39 = vpack.c.bf16 %v46_v36, %v45_v35 }
   0xa   :  { %709 = vmatprep.subr.bf16.mxu0 %v708_v26  ;;  %v742_v38 = vpack.c.bf16 %v60_v32, %v59_v31  ;;  %v30_v40 = vld [vmem:[%s1209_s1 + $0x38] sm:$0xff]  ;;  %v77_v41 = vld [vmem:[%s1209_s1 + $0x1b0] sm:$0xff]  ;;  %v47_v49 = vld [vmem:[%s1209_s1 + $0xc0] sm:$0xff] }
   0xb   :  { %739 = vmatpush3.bf16.msra.mxu1 %v738_v25  ;;  %v78_v42 = vld [vmem:[%s1209_s1 + $0x1b8] sm:$0xff]  ;;  %v61_v47 = vld [vmem:[%s1209_s1 + $0x130] sm:$0xff]  ;;  %v48_v50 = vld [vmem:[%s1209_s1 + $0xc8] sm:$0xff]  ;;  %v714_v51 = vpack.c.bf16 %v30_v40, %v29_v37 }
   0xc   :  { %741 = vmatprep.subr.bf16.mxu1 %v740_v34  ;;  %v744_v46 = vpack.c.bf16 %v78_v42, %v77_v41  ;;  %v62_v48 = vld [vmem:[%s1209_s1 + $0x138] sm:$0xff]  ;;  %v79_v52 = vld [vmem:[%s1209_s1 + $0x1c0] sm:$0xff]  ;;  %v80_v53 = vld [vmem:[%s1209_s1 + $0x1c8] sm:$0xff]  ;;  %v716_v55 = vpack.c.bf16 %v48_v50, %v47_v49 }
   0xd   :  { %711 = vmatpush3.bf16.msra.mxu0 %v710_v33  ;;  %v746_v54 = vpack.c.bf16 %v62_v48, %v61_v47  ;;  %v31_v56 = vld [vmem:[%s1209_s1 + $0x40] sm:$0xff]  ;;  %v32_v57 = vld [vmem:[%s1209_s1 + $0x48] sm:$0xff]  ;;  %v748_v61 = vpack.c.bf16 %v80_v53, %v79_v52  ;;  %v49_v63 = vld [vmem:[%s1209_s1 + $0xd0] sm:$0xff] }
   0xe   :  { %713 = vmatprep.subr.bf16.mxu0 %v712_v39  ;;  %v63_v58 = vld [vmem:[%s1209_s1 + $0x140] sm:$0xff]  ;;  %v64_v62 = vld [vmem:[%s1209_s1 + $0x148] sm:$0xff]  ;;  %v50_v0 = vld [vmem:[%s1209_s1 + $0xd8] sm:$0xff]  ;;  %v718_v3 = vpack.c.bf16 %v32_v57, %v31_v56 }
   0xf   :  { %743 = vmatpush3.bf16.msra.mxu1 %v742_v38  ;;  %v81_v1 = vld [vmem:[%s1209_s1 + $0x1d0] sm:$0xff]  ;;  %v82_v2 = vld [vmem:[%s1209_s1 + $0x1d8] sm:$0xff]  ;;  %v750_v5 = vpack.c.bf16 %v64_v62, %v63_v58  ;;  %v720_v6 = vpack.c.bf16 %v50_v0, %v49_v63  ;;  %v51_v12 = vld [vmem:[%s1209_s1 + $0xe0] sm:$0xff] }
  0x10   :  { %745 = vmatprep.subr.bf16.mxu1 %v744_v46  ;;  %v33_v4 = vld [vmem:[%s1209_s1 + $0x50] sm:$0xff]  ;;  %v34_v7 = vld [vmem:[%s1209_s1 + $0x58] sm:$0xff]  ;;  %v752_v11 = vpack.c.bf16 %v82_v2, %v81_v1  ;;  %v52_v13 = vld [vmem:[%s1209_s1 + $0xe8] sm:$0xff] }
  0x11   :  { %715 = vmatpush3.bf16.msra.mxu0 %v714_v51  ;;  %v65_v8 = vld [vmem:[%s1209_s1 + $0x150] sm:$0xff]  ;;  %v66_v9 = vld [vmem:[%s1209_s1 + $0x158] sm:$0xff]  ;;  %v83_v14 = vld [vmem:[%s1209_s1 + $0x1e0] sm:$0xff]  ;;  %v722_v16 = vpack.c.bf16 %v34_v7, %v33_v4  ;;  %v724_v19 = vpack.c.bf16 %v52_v13, %v51_v12 }
  0x12   :  { %717 = vmatprep.subr.bf16.mxu0 %v716_v55  ;;  %v84_v15 = vld [vmem:[%s1209_s1 + $0x1e8] sm:$0xff]  ;;  %v754_v17 = vpack.c.bf16 %v66_v9, %v65_v8  ;;  %v21_v18 = vld [vmem:[%s1208_s0] sm:$0xff]  ;;  %v53_v27 = vld [vmem:[%s1209_s1 + $0xf0] sm:$0xff] }
  0x13   :  { %747 = vmatpush3.bf16.msra.mxu1 %v746_v54  ;;  %v35_v20 = vld [vmem:[%s1209_s1 + $0x60] sm:$0xff]  ;;  %v36_v21 = vld [vmem:[%s1209_s1 + $0x68] sm:$0xff]  ;;  %v136_v23 = vrot.slane %v21_v18, %v1014_v10  ;;  %v129_v24 = vcombine.high %v21_v18, %v21_v18  ;;  %v756_v25 = vpack.c.bf16 %v84_v15, %v83_v14  ;;  %v54_v28 = vld [vmem:[%s1209_s1 + $0xf8] sm:$0xff] }
  0x14   :  { %749 = vmatprep.subr.bf16.mxu1 %v748_v61  ;;  %v67_v22 = vld [vmem:[%s1209_s1 + $0x160] sm:$0xff]  ;;  %v68_v26 = vld [vmem:[%s1209_s1 + $0x168] sm:$0xff]  ;;  %v85_v29 = vld [vmem:[%s1209_s1 + $0x1f0] sm:$0xff]  ;;  %v726_v33 = vpack.c.bf16 %v36_v21, %v35_v20  ;;  %v728_v35 = vpack.c.bf16 %v54_v28, %v53_v27 }
  0x15   :  { %719 = vmatpush3.bf16.msra.mxu0 %v718_v3  ;;  %v86_v30 = vld [vmem:[%s1209_s1 + $0x1f8] sm:$0xff]  ;;  %v144_v31 = vcombine.high %v136_v23, %v136_v23  ;;  %v143_v32 = vrot.slane %v129_v24, %v1014_v10  ;;  %v758_v34 = vpack.c.bf16 %v68_v26, %v67_v22  ;;  %v37_v36 = vld [vmem:[%s1209_s1 + $0x70] sm:$0xff]  ;;  %v103_v42 = vld [vmem:[%s1209_s1 + $0x280] sm:$0xff] }
  0x16   :  { %721 = vmatprep.subr.bf16.mxu0 %v720_v6  ;;  %v38_v37 = vld [vmem:[%s1209_s1 + $0x78] sm:$0xff]  ;;  %v69_v38 = vld [vmem:[%s1209_s1 + $0x170] sm:$0xff]  ;;  %v760_v40 = vpack.c.bf16 %v86_v30, %v85_v29  ;;  %v104_v43 = vld [vmem:[%s1209_s1 + $0x288] sm:$0xff] }
  0x17   :  { %751 = vmatpush3.bf16.msra.mxu1 %v750_v5  ;;  %v145_v39 = vcombine.high %v143_v32, %v143_v32  ;;  %239 = vmatprep.mubr.f32.mxu0 %v144_v31  ;;  %v70_v41 = vld [vmem:[%s1209_s1 + $0x178] sm:$0xff]  ;;  %v730_v44 = vpack.c.bf16 %v38_v37, %v37_v36  ;;  %v764_v46 = vpack.c.bf16 %v104_v43, %v103_v42  ;;  %v87_v47 = vld [vmem:[%s1209_s1 + $0x200] sm:$0xff]  ;;  %v88_v48 = vld [vmem:[%s1209_s1 + $0x208] sm:$0xff] }
  0x18   :  { %753 = vmatprep.subr.bf16.mxu1 %v752_v11  ;;  %v762_v45 = vpack.c.bf16 %v70_v41, %v69_v38  ;;  %v105_v49 = vld [vmem:[%s1209_s1 + $0x290] sm:$0xff]  ;;  %v106_v50 = vld [vmem:[%s1209_s1 + $0x298] sm:$0xff]  ;;  %v766_v51 = vpack.c.bf16 %v88_v48, %v87_v47  ;;  %v22_v52 = vld [vmem:[%s1208_s0 + $0x8] sm:$0x3f] }
  0x19   :  { %723 = vmatpush3.bf16.msra.mxu0 %v722_v16  ;;  %309 = vmatprep.mubr.f32.mxu1 %v145_v39  ;;  %v768_v53 = vpack.c.bf16 %v106_v50, %v105_v49  ;;  %v89_v54 = vld [vmem:[%s1209_s1 + $0x210] sm:$0xff]  ;;  %v90_v55 = vld [vmem:[%s1209_s1 + $0x218] sm:$0xff]  ;;  %v146_v56 = vcombine.high %v22_v52, %v22_v52  ;;  %v1097_v57 = vrot.slane %v22_v52, %v1014_v10 }
  0x1a   :  { %725 = vmatprep.subr.bf16.mxu0 %v724_v19 }
  0x1b   :  { %755 = vmatpush3.bf16.msra.mxu1 %v754_v17 }
  0x1c   :  { %757 = vmatprep.subr.bf16.mxu1 %v756_v25 }
  0x1d   :  { %727 = vmatpush3.bf16.msra.mxu0 %v726_v33 }
  0x1e   :  { %729 = vmatprep.subr.bf16.mxu0 %v728_v35 }
  0x1f   :  { %759 = vmatpush3.bf16.msra.mxu1 %v758_v34 }
  0x20   :  { %761 = vmatprep.subr.bf16.mxu1 %v760_v40 }
  0x21   :  { %731 = vmatpush3.bf16.msra.mxu0 %v730_v44 }
  0x22   :  { %765 = vmatprep.subr.bf16.mxu0 %v764_v46 }
  0x23   :  { %763 = vmatpush3.bf16.msra.mxu1 %v762_v45 }
  0x24   :  { %10 = vsyncpa [#allocation3], 0  ;;  %v107_v58 = vld [vmem:[%s1209_s1 + $0x2a0] sm:$0xff]  ;;  %v108_v59 = vld [vmem:[%s1209_s1 + $0x2a8] sm:$0xff]  ;;  %v836_v60 = vmov 0.0   ;;  %240 = vmatmul.mubr.f32.vlgmr.msra.gmra.mrb[0].mxu0 %v136_v23  ;;  %v161_v61 = vcombine.high %v1097_v57, %v1097_v57  ;;  %vm171_vm0 = vcmask 1043456   ;;  %v770_v63 = vpack.c.bf16 %v90_v55, %v89_v54 }
  0x25   :  { %684 = vmatprep.subr.mxu1 %v836_v60  ;;  %v119_v62 = vld [vmem:[%s1209_s1 + $0x300] sm:$0xf]  ;;  %767 = vmatpush3.bf16.msra.mxu0 %v766_v51  ;;  %v160_v0 = vrot.slane %v146_v56, %v1014_v10  ;;  %v772_v1 = vpack.c.bf16 %v108_v59, %v107_v58  ;;  %v92_v3 = vld [vmem:[%s1209_s1 + $0x228] sm:$0xff]  ;;  %vm168_vm1 = vcmask 31744   ;;  %v109_v4 = vld [vmem:[%s1209_s1 + $0x2b0] sm:$0xff]  ;;  %vm837_vm2 = vmmov 0  }
  0x26   :  { %310 = vmatmul.mubr.f32.vlgmr.msra.gmra.mrb[0].mxu1 %v143_v32  ;;  %769 = vmatprep.subr.bf16.mxu0 %v768_v53  ;;  %v91_v2 = vld [vmem:[%s1209_s1 + $0x220] sm:$0xff]  ;;  %v110_v5 = vld [vmem:[%s1209_s1 + $0x2b8] sm:$0xff]  ;;  %v93_v8 = vld [vmem:[%s1209_s1 + $0x230] sm:$0xff]  ;;  %v838_v38 = vmov 0.0|0.0   ;;  %vm467_vm3 = vcmask 261120   ;;  %vm541_vm4 = vcmask 41984  }
  0x27   :  { %379 = vmatprep.mubr.f32.mxu0 %v161_v61  ;;  %685 = vmatpush3.msk.msra.mxu1 %vm171_vm0, %v119_v62  ;;  %v774_v6 = vpack.c.bf16 %v92_v3, %v91_v2  ;;  %v776_v7 = vpack.c.bf16 %v110_v5, %v109_v4  ;;  %v94_v9 = vld [vmem:[%s1209_s1 + $0x238] sm:$0xff]  ;;  %v111_v10 = vld [vmem:[%s1209_s1 + $0x2c0] sm:$0xff]  ;;  %v112_v11 = vld [vmem:[%s1209_s1 + $0x2c8] sm:$0xff]  ;;  %s839_s22 = smov [#allocation2]   ;;  %vm551_vm5 = vcmask 40960  }
  0x28   :  { %686 = vmatprep.mubr.msk.f32.mxu1 %vm837_vm2, %v836_v60  ;;  %v778_v12 = vpack.c.bf16 %v94_v9, %v93_v8  ;;  %v780_v13 = vpack.c.bf16 %v112_v11, %v111_v10  ;;  %v95_v14 = vld [vmem:[%s1209_s1 + $0x240] sm:$0xff]  ;;  %v96_v15 = vld [vmem:[%s1209_s1 + $0x248] sm:$0xff]  ;;  %v113_v16 = vld [vmem:[%s1209_s1 + $0x2d0] sm:$0xff]  ;;  %796 = vmatprep.subr.bf16.mxu1 %v838_v38  ;;  %s559_s23 = sshll.u32 %s839_s22, 4  ;;  %s560_s23 = int_to_ptr.vmem [resolvable:$true] %s559_s23 }
  0x29   :  { %771 = vmatpush3.bf16.msra.mxu0 %v770_v63  ;;  %v114_v17 = vld [vmem:[%s1209_s1 + $0x2d8] sm:$0xff]  ;;  %v782_v18 = vpack.c.bf16 %v96_v15, %v95_v14  ;;  %v97_v20 = vld [vmem:[%s1209_s1 + $0x250] sm:$0xff]  ;;  %v115_v22 = vld [vmem:[%s1209_s1 + $0x2e0] sm:$0xff]  ;;  %s811_s24 = scalar_lea.vmem %s560_s23, 16  ;;  %p816_p1 = scmp.lt.s32.totalorder %s560_s23, %s560_s23 }
  0x2a   :  { %687 = vmatmul.mubr.msk.f32.vlgmr.msra.gmra.mrb[2].mxu1 %vm168_vm1, %v160_v0  ;;  %773 = vmatprep.subr.bf16.mxu0 %v772_v1  ;;  %v784_v19 = vpack.c.bf16 %v114_v17, %v113_v16  ;;  %v98_v21 = vld [vmem:[%s1209_s1 + $0x258] sm:$0xff]  ;;  %v116_v23 = vld [vmem:[%s1209_s1 + $0x2e8] sm:$0xff]  ;;  %v99_v26 = vld [vmem:[%s1209_s1 + $0x260] sm:$0xff]  ;;  %p812_p0 = scmp.ne.s32.totalorder %s560_s23, %s811_s24 }
  0x2b   :  { %697 = vmatprep.mubr.msk.f32.mxu1 %vm837_vm2, %v836_v60  ;;  %v786_v24 = vpack.c.bf16 %v98_v21, %v97_v20  ;;  %v788_v25 = vpack.c.bf16 %v116_v23, %v115_v22  ;;  %v100_v27 = vld [vmem:[%s1209_s1 + $0x268] sm:$0xff]  ;;  %v117_v28 = vld [vmem:[%s1209_s1 + $0x2f0] sm:$0xff]  ;;  %v118_v29 = vld [vmem:[%s1209_s1 + $0x2f8] sm:$0xff] }
  0x2c   :  { %v790_v30 = vpack.c.bf16 %v100_v27, %v99_v26  ;;  %v792_v31 = vpack.c.bf16 %v118_v29, %v117_v28  ;;  %v101_v32 = vld [vmem:[%s1209_s1 + $0x270] sm:$0xff]  ;;  %v102_v33 = vld [vmem:[%s1209_s1 + $0x278] sm:$0xff]  ;;  %v456_v35 = vld [vmem:[%s1211_s3] sm:$0xff] }
  0x2d   :  { %775 = vmatpush3.bf16.msra.mxu0 %v774_v6  ;;  %v794_v34 = vpack.c.bf16 %v102_v33, %v101_v32  ;;  %v457_v36 = vld [vmem:[%s1211_s3 + $0x8] sm:$0xff]  ;;  %v458_v37 = vld [vmem:[%s1211_s3 + $0x10] sm:$0xff]  ;;  %v459_v40 = vld [vmem:[%s1211_s3 + $0x18] sm:$0xff] }
  0x2e   :  { %777 = vmatprep.subr.bf16.mxu0 %v776_v7  ;;  %v797_v39 = vpack.c.bf16 %v457_v36, %v456_v35  ;;  %v800_v41 = vpack.c.bf16 %v459_v40, %v458_v37  ;;  %v567_v43 = vld [vmem:[%s1210_s2] ss:$0 sm:$0xff] }
  0x2f   :  { %v570_v59 = vld [vmem:[%s1212_s4] ss:$0 sm:$0xff]  ;;  %s815_s4 = scalar_lea.vmem %s560_s23, 32 }
  0x30   :  { %798 = vmatpush3.bf16.msra.mxu1 %v797_v39  ;;  %p817_p2 = scmp.lt.s32.totalorder %s815_s4, %s811_s24 }
  0x31   :  { %779 = vmatpush3.bf16.msra.mxu0 %v778_v12  ;;  %799 = vmatprep.subr.bf16.mxu1 %v838_v38 }
  0x32   :  { %781 = vmatprep.subr.bf16.mxu0 %v780_v13  ;;  %p818_p3 = por %p817_p2, %p816_p1 }
  0x34   :  { %801 = vmatpush3.bf16.msra.mxu1 %v800_v41  ;;  %p819_p4 = pnand %p818_p3, %p812_p0 }
  0x35   :  { %783 = vmatpush3.bf16.msra.mxu0 %v782_v18 }
  0x36   :  { %785 = vmatprep.subr.bf16.mxu0 %v784_v19 }
  0x39   :  { %787 = vmatpush3.bf16.msra.mxu0 %v786_v24 }
  0x3a   :  { %789 = vmatprep.subr.bf16.mxu0 %v788_v25 }
  0x3d   :  { %791 = vmatpush3.bf16.msra.mxu0 %v790_v30 }
  0x3e   :  { %793 = vmatprep.subr.bf16.mxu0 %v792_v31 }
  0x41   :  { %795 = vmatpush3.bf16.msra.mxu0 %v794_v34 }
  0x44   :  { %380 = vmatmul.mubr.f32.vlgmr.msra.gmra.mrb[2].mxu0 %v1097_v57 }
  0xf7   :  { %v604_v42 = vpop.f32.mrb[0].mxu0 }
  0xf8   :  { %v605_v44 = vpop.f32.mrb[1].mxu0 }
  0xf9   :  { %v639_v45 = vpop.f32.mrb[0].mxu1  ;;  %v606_v46 = vadd.f32 %v605_v44, %v604_v42 }
  0xfa   :  { %v640_v47 = vpop.f32.mrb[1].mxu1 }
  0xfb   :  { %v641_v48 = vadd.f32 %v640_v47, %v639_v45  ;;  %v242_v49 = vadd.f32 %v606_v46, %v567_v43 }
  0xfd   :  { %v451_v50 = vpop.f32.mrb[2].mxu1  ;;  %v312_v51 = vadd.f32 %v641_v48, %v242_v49 }
  0xfe   :  { %v688_v52 = vpop.f32.mrb[3].mxu1 }
 0x117   :  { %v674_v53 = vpop.f32.mrb[2].mxu0 }
 0x118   :  { %v675_v54 = vpop.f32.mrb[3].mxu0 }
 0x119   :  { %v676_v55 = vadd.f32 %v675_v54, %v674_v53 }
 0x11b   :  { %v382_v56 = vadd.f32 %v676_v55, %v312_v51 }
 0x11d   :  { %v452_v57 = vadd.f32 %v451_v50, %v382_v56 }
 0x11f   :  { %809 = vtanh.f32 %v452_v57 }
 0x129   :  { %v810_v58 = vpop.eup %809 }
 0x12a   :  { %698 = vmatmul.mubr.msk.f32.vlgmr.msra.gmra.mrb[4].mxu1 %vm467_vm3, %v810_v58 }
 0x1fd   :  { %v537_v60 = vpop.f32.mrb[4].mxu1 }
 0x1fe   :  { %v538_v61 = vadd.f32 %v570_v59, %v537_v60  ;;  %v699_v62 = vpop.f32.mrb[5].mxu1 }
 0x200   :  { %v542_v63 = vsel %vm541_vm4, %v538_v61, 0.0 }
 0x201   :  { %v543_v0 = vrot.slane %v542_v63, 4 }
 0x203   :  { %v544_v1 = vadd.f32 %v543_v0, %v542_v63 }
 0x205   :  { %v545_v2 = vrot.slane %v544_v1, 2 }
 0x207   :  { %v546_v3 = vadd.f32 %v545_v2, %v544_v1 }
 0x209   :  { %v547_v4 = vrot.slane %v546_v3, 1 }
 0x20b   :  { %v548_v5 = vadd.f32 %v547_v4, %v546_v3 }
 0x20d   :  { %v550_v6 = vmul.f32 0.5, %v548_v5 }
 0x20f   :  { %552 = vst.msk [vmem:[#allocation2] sm:$0x1] %vm551_vm5, %v550_v6 }
 0x210   :  { %822 = shalt.err (!%p819_p4)
}
 0x211   :  { %s823_s27 = scalar_lea.hbm %s1213_s5, 16 }
 0x212   :  { %p824_p5 = scmp.ne.s32.totalorder %s1213_s5, %s823_s27  ;;  %p827_p6 = scmp.lt.u32.totalorder %s823_s27, %s1213_s5 }
 0x214   :  { %p829_p7 = pnand %p827_p6, %p824_p5 }
 0x216   :  { %832 = shalt.err (!%p829_p7)
}
 0x217   :  { %562 = dma.vmem_to_hbm [thread:$0]  %s560_s23, 16, %s1213_s5, [#allocation3]  }
 0x218   :  { %833 = dma.done.wait [#allocation3], 16  }
 0x219   :  { %834 = vsyncadd [#allocation3], 4294967280 }
 0x21a   :  { %566 = vsyncpa [#allocation3], 1 }

</bundles_post_ra>
